<compile_context>
chip_gen: v5e
topology: v5e:2x2
jax: 0.10.0
libtpu: 0.0.40
codegen_flags: <defaults>
</compile_context>

<pallas_src>
import jax
import jax.numpy as jnp
from jax import lax
from jax.experimental import pallas as pl
from jax.experimental.pallas import tpu as pltpu

# Module hyper-parameters (defaults of Cnn_Digits.__init__)
CH_IN = 1
N_PATTERNS = 6
SIZE_IM = (16, 16)
KERNEL_POOL = 2
D_HIDDEN = 32
D_OUT = 10

HP = SIZE_IM[0] // KERNEL_POOL          # 8
WP = SIZE_IM[1] // KERNEL_POOL          # 8
D_FLAT = N_PATTERNS * HP * WP           # 384


# ------------------------------ fused kernel ------------------------------- #

def _fused_kernel(xe_ref, cw_ref, cb_ref, w1_ref, b1_ref, w2_ref, b2_ref,
                  out_ref, flat_ref):
    """conv + bias + ReLU + 2x2 max-pool + flatten + fc1 + ReLU + fc2.

    xe_ref:  (4*CH_IN, B, 9, 9) VMEM  polyphase-split padded input:
             xe[(2p+q)*CH_IN + c, b, r, s] = xpad[b, c, 2r+p, 2s+q]
    cw_ref:  (N_PATTERNS, CH_IN*9) SMEM  conv weights, (c, ky, kx) order
    cb_ref:  (1, N_PATTERNS)       SMEM  conv bias
    w1_ref:  (D_FLAT, D_HIDDEN)    VMEM  bf16 fc1 weight (columns = torch (c,i,j))
    b1_ref:  (1, D_HIDDEN)         VMEM  f32
    w2_ref:  (D_HIDDEN, D_OUT)     VMEM  bf16
    b2_ref:  (1, D_OUT)            VMEM  f32
    out_ref: (B, D_OUT)            VMEM  logits
    flat_ref:(B, D_FLAT)           VMEM  pooled activations, torch flatten order
    """
    # 1) Load each distinct shifted window once (contiguous static slices).
    #    Window (a, b) covers padded rows {2i + a}, cols {2j + b}:
    #    slice [a>>1 : a>>1+HP, b>>1 : b>>1+WP] of polyphase block (a&1, b&1).
    S = {}
    for ci in range(CH_IN):
        for a in range(KERNEL_POOL + 2):          # a = di + ky in [0, 3]
            for b in range(KERNEL_POOL + 2):      # b = dj + kx in [0, 3]
                blk = (2 * (a & 1) + (b & 1)) * CH_IN + ci
                a2, b2 = a >> 1, b >> 1
                S[(ci, a, b)] = xe_ref[blk, :, a2:a2 + HP, b2:b2 + WP]  # (B,HP,WP)

    # 2) Conv (VPU broadcast-FMAs) + max-pool over the 4 phases + bias + ReLU,
    #    one output channel at a time; store straight into the lane-dense
    #    flat output in torch (c, i, j) column order.
    for co in range(N_PATTERNS):
        w_co = [cw_ref[co, t] for t in range(CH_IN * 9)]      # SMEM scalars
        b_co = cb_ref[0, co]
        pooled = None
        for di in range(KERNEL_POOL):
            for dj in range(KERNEL_POOL):
                acc = None
                for ci in range(CH_IN):
                    for ky in range(3):
                        for kx in range(3):
                            term = w_co[ci * 9 + ky * 3 + kx] * S[(ci, di + ky, dj + kx)]
                            acc = term if acc is None else acc + term
                pooled = acc if pooled is None else jnp.maximum(pooled, acc)
        pooled = jnp.maximum(pooled + b_co, 0.0)               # (B, HP, WP)
        base = co * HP * WP
        for i in range(HP):
            flat_ref[:, base + i * WP: base + (i + 1) * WP] = pooled[:, i, :]

    # 3) fc1 -> ReLU -> fc2 on the MXU (bf16 operands, f32 accumulation).
    flat = flat_ref[...]                                       # (B, D_FLAT) f32
    h = jnp.dot(flat.astype(jnp.bfloat16), w1_ref[...],
                preferred_element_type=jnp.float32)
    h = jnp.maximum(h + b1_ref[...], 0.0)
    o = jnp.dot(h.astype(jnp.bfloat16), w2_ref[...],
                preferred_element_type=jnp.float32)
    out_ref[...] = o + b2_ref[...]


# ------------------------ parameter packing (once) ------------------------- #

def pack_params(params):
    """Repack torch-layout parameters for the kernel (runs once, outside jit)."""
    return {
        "conv_w": params["conv_w"].astype(jnp.float32).reshape(N_PATTERNS, CH_IN * 9),
        "conv_b": params["conv_b"].astype(jnp.float32).reshape(1, N_PATTERNS),
        "fc1_w": params["fc1_w"].astype(jnp.float32).T.astype(jnp.bfloat16),  # (D_FLAT, 32)
        "fc1_b": params["fc1_b"].astype(jnp.float32).reshape(1, D_HIDDEN),
        "fc2_w": params["fc2_w"].astype(jnp.float32).T.astype(jnp.bfloat16),  # (32, D_OUT)
        "fc2_b": params["fc2_b"].astype(jnp.float32).reshape(1, D_OUT),
    }


# ------------------------------ forward (jit) ------------------------------ #

@jax.jit
def cnn_digits_forward(x, packed):
    B = x.shape[0]
    x = x.astype(jnp.float32)
    xpad = jnp.pad(x, ((0, 0), (0, 0), (1, 1), (1, 1)))         # (B, C, 18, 18)
    Hh, Wh = xpad.shape[2] // 2, xpad.shape[3] // 2              # 9, 9
    # Polyphase split: xe[(2p+q)*C + c, b, r, s] = xpad[b, c, 2r+p, 2s+q]
    xe = (xpad.reshape(B, CH_IN, Hh, 2, Wh, 2)
              .transpose(3, 5, 1, 0, 2, 4)
              .reshape(4 * CH_IN, B, Hh, Wh))

    out, flat = pl.pallas_call(
        _fused_kernel,
        out_shape=(jax.ShapeDtypeStruct((B, D_OUT), jnp.float32),
                   jax.ShapeDtypeStruct((B, D_FLAT), jnp.float32)),
        in_specs=[
            pl.BlockSpec(memory_space=pltpu.MemorySpace.VMEM),   # xe
            pl.BlockSpec(memory_space=pltpu.MemorySpace.SMEM),   # conv weights
            pl.BlockSpec(memory_space=pltpu.MemorySpace.SMEM),   # conv bias
            pl.BlockSpec(memory_space=pltpu.MemorySpace.VMEM),   # fc1 weight (bf16)
            pl.BlockSpec(memory_space=pltpu.MemorySpace.VMEM),   # fc1 bias
            pl.BlockSpec(memory_space=pltpu.MemorySpace.VMEM),   # fc2 weight (bf16)
            pl.BlockSpec(memory_space=pltpu.MemorySpace.VMEM),   # fc2 bias
        ],
        out_specs=(pl.BlockSpec(memory_space=pltpu.MemorySpace.VMEM),
                   pl.BlockSpec(memory_space=pltpu.MemorySpace.VMEM)),
    )(xe, packed["conv_w"], packed["conv_b"],
      packed["fc1_w"], packed["fc1_b"], packed["fc2_w"], packed["fc2_b"])

    # torch stores detected_patterns in NCHW; flat is already in (c, i, j)
    # column order so this reshape is free (no data movement).
    detected_patterns = flat.reshape(B, N_PATTERNS, HP, WP)
    return out, detected_patterns


# --------------------------- pure-JAX reference ---------------------------- #

def reference_forward(x, params):
    y = lax.conv_general_dilated(
        x, params["conv_w"], window_strides=(1, 1), padding=((1, 1), (1, 1)),
        dimension_numbers=("NCHW", "OIHW", "NCHW"))
    y = jnp.maximum(y + params["conv_b"][None, :, None, None], 0.0)
    y = lax.reduce_window(y, -jnp.inf, lax.max,
                          (1, 1, KERNEL_POOL, KERNEL_POOL),
                          (1, 1, 2, 2), "VALID")                 # (B, C, HP, WP)
    flat = y.reshape(y.shape[0], -1)                             # (c, i, j) order
    h = jnp.maximum(flat @ params["fc1_w"].T + params["fc1_b"], 0.0)
    return h @ params["fc2_w"].T + params["fc2_b"], y


# ---------------------------------- main ----------------------------------- #

if __name__ == "__main__":
    key = jax.random.PRNGKey(0)
    kx, k1, k2, k3, k4, k5, k6 = jax.random.split(key, 7)

    B = 2
    x = jax.random.normal(kx, (B, CH_IN, SIZE_IM[0], SIZE_IM[1]), jnp.float32)

    params = {
        "conv_w": 0.2 * jax.random.normal(k1, (N_PATTERNS, CH_IN, 3, 3), jnp.float32),
        "conv_b": 0.1 * jax.random.normal(k2, (N_PATTERNS,), jnp.float32),
        "fc1_w": 0.05 * jax.random.normal(k3, (D_HIDDEN, D_FLAT), jnp.float32),
        "fc1_b": 0.1 * jax.random.normal(k4, (D_HIDDEN,), jnp.float32),
        "fc2_w": 0.1 * jax.random.normal(k5, (D_OUT, D_HIDDEN), jnp.float32),
        "fc2_b": 0.1 * jax.random.normal(k6, (D_OUT,), jnp.float32),
    }

    packed = pack_params(params)                  # one-time weight repack
    out, detected_patterns = cnn_digits_forward(x, packed)
    out = jax.block_until_ready(out)
    detected_patterns = jax.block_until_ready(detected_patterns)

    ref_out, ref_pool = reference_forward(x, params)

    assert out.shape == (B, D_OUT)
    assert detected_patterns.shape == (B, N_PATTERNS, HP, WP)
    # conv/pool path is pure f32 -> tight tolerance
    assert jnp.allclose(detected_patterns, ref_pool, rtol=1e-4, atol=1e-4), "pooled mismatch"
    # MLP uses bf16 MXU operands (f32 accumulate) -> modest tolerance vs f32 ref
    assert jnp.allclose(out, ref_out, rtol=2e-2, atol=2e-2), (out, ref_out)

    print("KERNEL_OK")
</pallas_src>

<mosaic_0001>
module attributes {stable_mosaic.version = 11 : i64} {
  func.func @_fused_kernel(%arg0: memref<4x2x9x9xf32, #tpu.memory_space<vmem>>, %arg1: memref<6x9xf32, #tpu.memory_space<smem>>, %arg2: memref<1x6xf32, #tpu.memory_space<smem>>, %arg3: memref<384x32xbf16, #tpu.memory_space<vmem>>, %arg4: memref<1x32xf32, #tpu.memory_space<vmem>>, %arg5: memref<32x10xbf16, #tpu.memory_space<vmem>>, %arg6: memref<1x10xf32, #tpu.memory_space<vmem>>, %arg7: memref<2x10xf32, #tpu.memory_space<vmem>>, %arg8: memref<2x384xf32, #tpu.memory_space<vmem>>) attributes {dimension_semantics = [], scalar_prefetch = 0 : i64, scratch_operands = 0 : i64, tpu.core_type = #tpu.core_type<tc>} {
    %c0 = arith.constant 0 : index
    %c0_0 = arith.constant 0 : index
    %c0_1 = arith.constant 0 : index
    %c0_2 = arith.constant 0 : index
    %0 = vector.load %arg0[%c0, %c0_0, %c0_1, %c0_2] : memref<4x2x9x9xf32, #tpu.memory_space<vmem>>, vector<1x2x8x8xf32>
    %1 = vector.shape_cast %0 : vector<1x2x8x8xf32> to vector<2x8x8xf32>
    %c1 = arith.constant 1 : index
    %c0_3 = arith.constant 0 : index
    %c0_4 = arith.constant 0 : index
    %c0_5 = arith.constant 0 : index
    %2 = vector.load %arg0[%c1, %c0_3, %c0_4, %c0_5] : memref<4x2x9x9xf32, #tpu.memory_space<vmem>>, vector<1x2x8x8xf32>
    %3 = vector.shape_cast %2 : vector<1x2x8x8xf32> to vector<2x8x8xf32>
    %c0_6 = arith.constant 0 : index
    %c0_7 = arith.constant 0 : index
    %c0_8 = arith.constant 0 : index
    %c1_9 = arith.constant 1 : index
    %4 = vector.load %arg0[%c0_6, %c0_7, %c0_8, %c1_9] : memref<4x2x9x9xf32, #tpu.memory_space<vmem>>, vector<1x2x8x8xf32>
    %5 = vector.shape_cast %4 : vector<1x2x8x8xf32> to vector<2x8x8xf32>
    %c1_10 = arith.constant 1 : index
    %c0_11 = arith.constant 0 : index
    %c0_12 = arith.constant 0 : index
    %c1_13 = arith.constant 1 : index
    %6 = vector.load %arg0[%c1_10, %c0_11, %c0_12, %c1_13] : memref<4x2x9x9xf32, #tpu.memory_space<vmem>>, vector<1x2x8x8xf32>
    %7 = vector.shape_cast %6 : vector<1x2x8x8xf32> to vector<2x8x8xf32>
    %c2 = arith.constant 2 : index
    %c0_14 = arith.constant 0 : index
    %c0_15 = arith.constant 0 : index
    %c0_16 = arith.constant 0 : index
    %8 = vector.load %arg0[%c2, %c0_14, %c0_15, %c0_16] : memref<4x2x9x9xf32, #tpu.memory_space<vmem>>, vector<1x2x8x8xf32>
    %9 = vector.shape_cast %8 : vector<1x2x8x8xf32> to vector<2x8x8xf32>
    %c3 = arith.constant 3 : index
    %c0_17 = arith.constant 0 : index
    %c0_18 = arith.constant 0 : index
    %c0_19 = arith.constant 0 : index
    %10 = vector.load %arg0[%c3, %c0_17, %c0_18, %c0_19] : memref<4x2x9x9xf32, #tpu.memory_space<vmem>>, vector<1x2x8x8xf32>
    %11 = vector.shape_cast %10 : vector<1x2x8x8xf32> to vector<2x8x8xf32>
    %c2_20 = arith.constant 2 : index
    %c0_21 = arith.constant 0 : index
    %c0_22 = arith.constant 0 : index
    %c1_23 = arith.constant 1 : index
    %12 = vector.load %arg0[%c2_20, %c0_21, %c0_22, %c1_23] : memref<4x2x9x9xf32, #tpu.memory_space<vmem>>, vector<1x2x8x8xf32>
    %13 = vector.shape_cast %12 : vector<1x2x8x8xf32> to vector<2x8x8xf32>
    %c3_24 = arith.constant 3 : index
    %c0_25 = arith.constant 0 : index
    %c0_26 = arith.constant 0 : index
    %c1_27 = arith.constant 1 : index
    %14 = vector.load %arg0[%c3_24, %c0_25, %c0_26, %c1_27] : memref<4x2x9x9xf32, #tpu.memory_space<vmem>>, vector<1x2x8x8xf32>
    %15 = vector.shape_cast %14 : vector<1x2x8x8xf32> to vector<2x8x8xf32>
    %c0_28 = arith.constant 0 : index
    %c0_29 = arith.constant 0 : index
    %c1_30 = arith.constant 1 : index
    %c0_31 = arith.constant 0 : index
    %16 = vector.load %arg0[%c0_28, %c0_29, %c1_30, %c0_31] : memref<4x2x9x9xf32, #tpu.memory_space<vmem>>, vector<1x2x8x8xf32>
    %17 = vector.shape_cast %16 : vector<1x2x8x8xf32> to vector<2x8x8xf32>
    %c1_32 = arith.constant 1 : index
    %c0_33 = arith.constant 0 : index
    %c1_34 = arith.constant 1 : index
    %c0_35 = arith.constant 0 : index
    %18 = vector.load %arg0[%c1_32, %c0_33, %c1_34, %c0_35] : memref<4x2x9x9xf32, #tpu.memory_space<vmem>>, vector<1x2x8x8xf32>
    %19 = vector.shape_cast %18 : vector<1x2x8x8xf32> to vector<2x8x8xf32>
    %c0_36 = arith.constant 0 : index
    %c0_37 = arith.constant 0 : index
    %c1_38 = arith.constant 1 : index
    %c1_39 = arith.constant 1 : index
    %20 = vector.load %arg0[%c0_36, %c0_37, %c1_38, %c1_39] : memref<4x2x9x9xf32, #tpu.memory_space<vmem>>, vector<1x2x8x8xf32>
    %21 = vector.shape_cast %20 : vector<1x2x8x8xf32> to vector<2x8x8xf32>
    %c1_40 = arith.constant 1 : index
    %c0_41 = arith.constant 0 : index
    %c1_42 = arith.constant 1 : index
    %c1_43 = arith.constant 1 : index
    %22 = vector.load %arg0[%c1_40, %c0_41, %c1_42, %c1_43] : memref<4x2x9x9xf32, #tpu.memory_space<vmem>>, vector<1x2x8x8xf32>
    %23 = vector.shape_cast %22 : vector<1x2x8x8xf32> to vector<2x8x8xf32>
    %c2_44 = arith.constant 2 : index
    %c0_45 = arith.constant 0 : index
    %c1_46 = arith.constant 1 : index
    %c0_47 = arith.constant 0 : index
    %24 = vector.load %arg0[%c2_44, %c0_45, %c1_46, %c0_47] : memref<4x2x9x9xf32, #tpu.memory_space<vmem>>, vector<1x2x8x8xf32>
    %25 = vector.shape_cast %24 : vector<1x2x8x8xf32> to vector<2x8x8xf32>
    %c3_48 = arith.constant 3 : index
    %c0_49 = arith.constant 0 : index
    %c1_50 = arith.constant 1 : index
    %c0_51 = arith.constant 0 : index
    %26 = vector.load %arg0[%c3_48, %c0_49, %c1_50, %c0_51] : memref<4x2x9x9xf32, #tpu.memory_space<vmem>>, vector<1x2x8x8xf32>
    %27 = vector.shape_cast %26 : vector<1x2x8x8xf32> to vector<2x8x8xf32>
    %c2_52 = arith.constant 2 : index
    %c0_53 = arith.constant 0 : index
    %c1_54 = arith.constant 1 : index
    %c1_55 = arith.constant 1 : index
    %28 = vector.load %arg0[%c2_52, %c0_53, %c1_54, %c1_55] : memref<4x2x9x9xf32, #tpu.memory_space<vmem>>, vector<1x2x8x8xf32>
    %29 = vector.shape_cast %28 : vector<1x2x8x8xf32> to vector<2x8x8xf32>
    %c3_56 = arith.constant 3 : index
    %c0_57 = arith.constant 0 : index
    %c1_58 = arith.constant 1 : index
    %c1_59 = arith.constant 1 : index
    %30 = vector.load %arg0[%c3_56, %c0_57, %c1_58, %c1_59] : memref<4x2x9x9xf32, #tpu.memory_space<vmem>>, vector<1x2x8x8xf32>
    %31 = vector.shape_cast %30 : vector<1x2x8x8xf32> to vector<2x8x8xf32>
    %c0_60 = arith.constant 0 : index
    %c0_61 = arith.constant 0 : index
    %32 = memref.load %arg1[%c0_60, %c0_61] : memref<6x9xf32, #tpu.memory_space<smem>>
    %c0_62 = arith.constant 0 : index
    %c1_63 = arith.constant 1 : index
    %33 = memref.load %arg1[%c0_62, %c1_63] : memref<6x9xf32, #tpu.memory_space<smem>>
    %c0_64 = arith.constant 0 : index
    %c2_65 = arith.constant 2 : index
    %34 = memref.load %arg1[%c0_64, %c2_65] : memref<6x9xf32, #tpu.memory_space<smem>>
    %c0_66 = arith.constant 0 : index
    %c3_67 = arith.constant 3 : index
    %35 = memref.load %arg1[%c0_66, %c3_67] : memref<6x9xf32, #tpu.memory_space<smem>>
    %c0_68 = arith.constant 0 : index
    %c4 = arith.constant 4 : index
    %36 = memref.load %arg1[%c0_68, %c4] : memref<6x9xf32, #tpu.memory_space<smem>>
    %c0_69 = arith.constant 0 : index
    %c5 = arith.constant 5 : index
    %37 = memref.load %arg1[%c0_69, %c5] : memref<6x9xf32, #tpu.memory_space<smem>>
    %c0_70 = arith.constant 0 : index
    %c6 = arith.constant 6 : index
    %38 = memref.load %arg1[%c0_70, %c6] : memref<6x9xf32, #tpu.memory_space<smem>>
    %c0_71 = arith.constant 0 : index
    %c7 = arith.constant 7 : index
    %39 = memref.load %arg1[%c0_71, %c7] : memref<6x9xf32, #tpu.memory_space<smem>>
    %c0_72 = arith.constant 0 : index
    %c8 = arith.constant 8 : index
    %40 = memref.load %arg1[%c0_72, %c8] : memref<6x9xf32, #tpu.memory_space<smem>>
    %c0_73 = arith.constant 0 : index
    %c0_74 = arith.constant 0 : index
    %41 = memref.load %arg2[%c0_73, %c0_74] : memref<1x6xf32, #tpu.memory_space<smem>>
    %42 = vector.broadcast %32 : f32 to vector<2x8x8xf32>
    %43 = arith.mulf %42, %1 : vector<2x8x8xf32>
    %44 = vector.broadcast %33 : f32 to vector<2x8x8xf32>
    %45 = arith.mulf %44, %3 : vector<2x8x8xf32>
    %46 = arith.addf %43, %45 : vector<2x8x8xf32>
    %47 = vector.broadcast %34 : f32 to vector<2x8x8xf32>
    %48 = arith.mulf %47, %5 : vector<2x8x8xf32>
    %49 = arith.addf %46, %48 : vector<2x8x8xf32>
    %50 = vector.broadcast %35 : f32 to vector<2x8x8xf32>
    %51 = arith.mulf %50, %9 : vector<2x8x8xf32>
    %52 = arith.addf %49, %51 : vector<2x8x8xf32>
    %53 = vector.broadcast %36 : f32 to vector<2x8x8xf32>
    %54 = arith.mulf %53, %11 : vector<2x8x8xf32>
    %55 = arith.addf %52, %54 : vector<2x8x8xf32>
    %56 = vector.broadcast %37 : f32 to vector<2x8x8xf32>
    %57 = arith.mulf %56, %13 : vector<2x8x8xf32>
    %58 = arith.addf %55, %57 : vector<2x8x8xf32>
    %59 = vector.broadcast %38 : f32 to vector<2x8x8xf32>
    %60 = arith.mulf %59, %17 : vector<2x8x8xf32>
    %61 = arith.addf %58, %60 : vector<2x8x8xf32>
    %62 = vector.broadcast %39 : f32 to vector<2x8x8xf32>
    %63 = arith.mulf %62, %19 : vector<2x8x8xf32>
    %64 = arith.addf %61, %63 : vector<2x8x8xf32>
    %65 = vector.broadcast %40 : f32 to vector<2x8x8xf32>
    %66 = arith.mulf %65, %21 : vector<2x8x8xf32>
    %67 = arith.addf %64, %66 : vector<2x8x8xf32>
    %68 = vector.broadcast %32 : f32 to vector<2x8x8xf32>
    %69 = arith.mulf %68, %3 : vector<2x8x8xf32>
    %70 = vector.broadcast %33 : f32 to vector<2x8x8xf32>
    %71 = arith.mulf %70, %5 : vector<2x8x8xf32>
    %72 = arith.addf %69, %71 : vector<2x8x8xf32>
    %73 = vector.broadcast %34 : f32 to vector<2x8x8xf32>
    %74 = arith.mulf %73, %7 : vector<2x8x8xf32>
    %75 = arith.addf %72, %74 : vector<2x8x8xf32>
    %76 = vector.broadcast %35 : f32 to vector<2x8x8xf32>
    %77 = arith.mulf %76, %11 : vector<2x8x8xf32>
    %78 = arith.addf %75, %77 : vector<2x8x8xf32>
    %79 = vector.broadcast %36 : f32 to vector<2x8x8xf32>
    %80 = arith.mulf %79, %13 : vector<2x8x8xf32>
    %81 = arith.addf %78, %80 : vector<2x8x8xf32>
    %82 = vector.broadcast %37 : f32 to vector<2x8x8xf32>
    %83 = arith.mulf %82, %15 : vector<2x8x8xf32>
    %84 = arith.addf %81, %83 : vector<2x8x8xf32>
    %85 = vector.broadcast %38 : f32 to vector<2x8x8xf32>
    %86 = arith.mulf %85, %19 : vector<2x8x8xf32>
    %87 = arith.addf %84, %86 : vector<2x8x8xf32>
    %88 = vector.broadcast %39 : f32 to vector<2x8x8xf32>
    %89 = arith.mulf %88, %21 : vector<2x8x8xf32>
    %90 = arith.addf %87, %89 : vector<2x8x8xf32>
    %91 = vector.broadcast %40 : f32 to vector<2x8x8xf32>
    %92 = arith.mulf %91, %23 : vector<2x8x8xf32>
    %93 = arith.addf %90, %92 : vector<2x8x8xf32>
    %94 = arith.maximumf %67, %93 : vector<2x8x8xf32>
    %95 = vector.broadcast %32 : f32 to vector<2x8x8xf32>
    %96 = arith.mulf %95, %9 : vector<2x8x8xf32>
    %97 = vector.broadcast %33 : f32 to vector<2x8x8xf32>
    %98 = arith.mulf %97, %11 : vector<2x8x8xf32>
    %99 = arith.addf %96, %98 : vector<2x8x8xf32>
    %100 = vector.broadcast %34 : f32 to vector<2x8x8xf32>
    %101 = arith.mulf %100, %13 : vector<2x8x8xf32>
    %102 = arith.addf %99, %101 : vector<2x8x8xf32>
    %103 = vector.broadcast %35 : f32 to vector<2x8x8xf32>
    %104 = arith.mulf %103, %17 : vector<2x8x8xf32>
    %105 = arith.addf %102, %104 : vector<2x8x8xf32>
    %106 = vector.broadcast %36 : f32 to vector<2x8x8xf32>
    %107 = arith.mulf %106, %19 : vector<2x8x8xf32>
    %108 = arith.addf %105, %107 : vector<2x8x8xf32>
    %109 = vector.broadcast %37 : f32 to vector<2x8x8xf32>
    %110 = arith.mulf %109, %21 : vector<2x8x8xf32>
    %111 = arith.addf %108, %110 : vector<2x8x8xf32>
    %112 = vector.broadcast %38 : f32 to vector<2x8x8xf32>
    %113 = arith.mulf %112, %25 : vector<2x8x8xf32>
    %114 = arith.addf %111, %113 : vector<2x8x8xf32>
    %115 = vector.broadcast %39 : f32 to vector<2x8x8xf32>
    %116 = arith.mulf %115, %27 : vector<2x8x8xf32>
    %117 = arith.addf %114, %116 : vector<2x8x8xf32>
    %118 = vector.broadcast %40 : f32 to vector<2x8x8xf32>
    %119 = arith.mulf %118, %29 : vector<2x8x8xf32>
    %120 = arith.addf %117, %119 : vector<2x8x8xf32>
    %121 = arith.maximumf %94, %120 : vector<2x8x8xf32>
    %122 = vector.broadcast %32 : f32 to vector<2x8x8xf32>
    %123 = arith.mulf %122, %11 : vector<2x8x8xf32>
    %124 = vector.broadcast %33 : f32 to vector<2x8x8xf32>
    %125 = arith.mulf %124, %13 : vector<2x8x8xf32>
    %126 = arith.addf %123, %125 : vector<2x8x8xf32>
    %127 = vector.broadcast %34 : f32 to vector<2x8x8xf32>
    %128 = arith.mulf %127, %15 : vector<2x8x8xf32>
    %129 = arith.addf %126, %128 : vector<2x8x8xf32>
    %130 = vector.broadcast %35 : f32 to vector<2x8x8xf32>
    %131 = arith.mulf %130, %19 : vector<2x8x8xf32>
    %132 = arith.addf %129, %131 : vector<2x8x8xf32>
    %133 = vector.broadcast %36 : f32 to vector<2x8x8xf32>
    %134 = arith.mulf %133, %21 : vector<2x8x8xf32>
    %135 = arith.addf %132, %134 : vector<2x8x8xf32>
    %136 = vector.broadcast %37 : f32 to vector<2x8x8xf32>
    %137 = arith.mulf %136, %23 : vector<2x8x8xf32>
    %138 = arith.addf %135, %137 : vector<2x8x8xf32>
    %139 = vector.broadcast %38 : f32 to vector<2x8x8xf32>
    %140 = arith.mulf %139, %27 : vector<2x8x8xf32>
    %141 = arith.addf %138, %140 : vector<2x8x8xf32>
    %142 = vector.broadcast %39 : f32 to vector<2x8x8xf32>
    %143 = arith.mulf %142, %29 : vector<2x8x8xf32>
    %144 = arith.addf %141, %143 : vector<2x8x8xf32>
    %145 = vector.broadcast %40 : f32 to vector<2x8x8xf32>
    %146 = arith.mulf %145, %31 : vector<2x8x8xf32>
    %147 = arith.addf %144, %146 : vector<2x8x8xf32>
    %148 = arith.maximumf %121, %147 : vector<2x8x8xf32>
    %149 = vector.broadcast %41 : f32 to vector<2x8x8xf32>
    %150 = arith.addf %148, %149 : vector<2x8x8xf32>
    %cst = arith.constant 0.000000e+00 : f32
    %151 = vector.broadcast %cst : f32 to vector<2x8x8xf32>
    %152 = arith.maximumf %150, %151 : vector<2x8x8xf32>
    %153 = vector.extract_strided_slice %152 {offsets = [0, 0, 0], sizes = [2, 1, 8], strides = [1, 1, 1]} : vector<2x8x8xf32> to vector<2x1x8xf32>
    %154 = vector.shape_cast %153 : vector<2x1x8xf32> to vector<2x8xf32>
    %c0_75 = arith.constant 0 : index
    %c0_76 = arith.constant 0 : index
    %155 = vector.load %arg8[%c0_75, %c0_76] : memref<2x384xf32, #tpu.memory_space<vmem>>, vector<2x8xf32>
    tpu.vector_store %arg8[%c0_75, %c0_76], %154 {strides = array<i32>} : memref<2x384xf32, #tpu.memory_space<vmem>>, vector<2x8xf32>,
    %156 = vector.extract_strided_slice %152 {offsets = [0, 1, 0], sizes = [2, 1, 8], strides = [1, 1, 1]} : vector<2x8x8xf32> to vector<2x1x8xf32>
    %157 = vector.shape_cast %156 : vector<2x1x8xf32> to vector<2x8xf32>
    %c0_77 = arith.constant 0 : index
    %c8_78 = arith.constant 8 : index
    %158 = vector.load %arg8[%c0_77, %c8_78] : memref<2x384xf32, #tpu.memory_space<vmem>>, vector<2x8xf32>
    tpu.vector_store %arg8[%c0_77, %c8_78], %157 {strides = array<i32>} : memref<2x384xf32, #tpu.memory_space<vmem>>, vector<2x8xf32>,
    %159 = vector.extract_strided_slice %152 {offsets = [0, 2, 0], sizes = [2, 1, 8], strides = [1, 1, 1]} : vector<2x8x8xf32> to vector<2x1x8xf32>
    %160 = vector.shape_cast %159 : vector<2x1x8xf32> to vector<2x8xf32>
    %c0_79 = arith.constant 0 : index
    %c16 = arith.constant 16 : index
    %161 = vector.load %arg8[%c0_79, %c16] : memref<2x384xf32, #tpu.memory_space<vmem>>, vector<2x8xf32>
    tpu.vector_store %arg8[%c0_79, %c16], %160 {strides = array<i32>} : memref<2x384xf32, #tpu.memory_space<vmem>>, vector<2x8xf32>,
    %162 = vector.extract_strided_slice %152 {offsets = [0, 3, 0], sizes = [2, 1, 8], strides = [1, 1, 1]} : vector<2x8x8xf32> to vector<2x1x8xf32>
    %163 = vector.shape_cast %162 : vector<2x1x8xf32> to vector<2x8xf32>
    %c0_80 = arith.constant 0 : index
    %c24 = arith.constant 24 : index
    %164 = vector.load %arg8[%c0_80, %c24] : memref<2x384xf32, #tpu.memory_space<vmem>>, vector<2x8xf32>
    tpu.vector_store %arg8[%c0_80, %c24], %163 {strides = array<i32>} : memref<2x384xf32, #tpu.memory_space<vmem>>, vector<2x8xf32>,
    %165 = vector.extract_strided_slice %152 {offsets = [0, 4, 0], sizes = [2, 1, 8], strides = [1, 1, 1]} : vector<2x8x8xf32> to vector<2x1x8xf32>
    %166 = vector.shape_cast %165 : vector<2x1x8xf32> to vector<2x8xf32>
    %c0_81 = arith.constant 0 : index
    %c32 = arith.constant 32 : index
    %167 = vector.load %arg8[%c0_81, %c32] : memref<2x384xf32, #tpu.memory_space<vmem>>, vector<2x8xf32>
    tpu.vector_store %arg8[%c0_81, %c32], %166 {strides = array<i32>} : memref<2x384xf32, #tpu.memory_space<vmem>>, vector<2x8xf32>,
    %168 = vector.extract_strided_slice %152 {offsets = [0, 5, 0], sizes = [2, 1, 8], strides = [1, 1, 1]} : vector<2x8x8xf32> to vector<2x1x8xf32>
    %169 = vector.shape_cast %168 : vector<2x1x8xf32> to vector<2x8xf32>
    %c0_82 = arith.constant 0 : index
    %c40 = arith.constant 40 : index
    %170 = vector.load %arg8[%c0_82, %c40] : memref<2x384xf32, #tpu.memory_space<vmem>>, vector<2x8xf32>
    tpu.vector_store %arg8[%c0_82, %c40], %169 {strides = array<i32>} : memref<2x384xf32, #tpu.memory_space<vmem>>, vector<2x8xf32>,
    %171 = vector.extract_strided_slice %152 {offsets = [0, 6, 0], sizes = [2, 1, 8], strides = [1, 1, 1]} : vector<2x8x8xf32> to vector<2x1x8xf32>
    %172 = vector.shape_cast %171 : vector<2x1x8xf32> to vector<2x8xf32>
    %c0_83 = arith.constant 0 : index
    %c48 = arith.constant 48 : index
    %173 = vector.load %arg8[%c0_83, %c48] : memref<2x384xf32, #tpu.memory_space<vmem>>, vector<2x8xf32>
    tpu.vector_store %arg8[%c0_83, %c48], %172 {strides = array<i32>} : memref<2x384xf32, #tpu.memory_space<vmem>>, vector<2x8xf32>,
    %174 = vector.extract_strided_slice %152 {offsets = [0, 7, 0], sizes = [2, 1, 8], strides = [1, 1, 1]} : vector<2x8x8xf32> to vector<2x1x8xf32>
    %175 = vector.shape_cast %174 : vector<2x1x8xf32> to vector<2x8xf32>
    %c0_84 = arith.constant 0 : index
    %c56 = arith.constant 56 : index
    %176 = vector.load %arg8[%c0_84, %c56] : memref<2x384xf32, #tpu.memory_space<vmem>>, vector<2x8xf32>
    tpu.vector_store %arg8[%c0_84, %c56], %175 {strides = array<i32>} : memref<2x384xf32, #tpu.memory_space<vmem>>, vector<2x8xf32>,
    %c1_85 = arith.constant 1 : index
    %c0_86 = arith.constant 0 : index
    %177 = memref.load %arg1[%c1_85, %c0_86] : memref<6x9xf32, #tpu.memory_space<smem>>
    %c1_87 = arith.constant 1 : index
    %c1_88 = arith.constant 1 : index
    %178 = memref.load %arg1[%c1_87, %c1_88] : memref<6x9xf32, #tpu.memory_space<smem>>
    %c1_89 = arith.constant 1 : index
    %c2_90 = arith.constant 2 : index
    %179 = memref.load %arg1[%c1_89, %c2_90] : memref<6x9xf32, #tpu.memory_space<smem>>
    %c1_91 = arith.constant 1 : index
    %c3_92 = arith.constant 3 : index
    %180 = memref.load %arg1[%c1_91, %c3_92] : memref<6x9xf32, #tpu.memory_space<smem>>
    %c1_93 = arith.constant 1 : index
    %c4_94 = arith.constant 4 : index
    %181 = memref.load %arg1[%c1_93, %c4_94] : memref<6x9xf32, #tpu.memory_space<smem>>
    %c1_95 = arith.constant 1 : index
    %c5_96 = arith.constant 5 : index
    %182 = memref.load %arg1[%c1_95, %c5_96] : memref<6x9xf32, #tpu.memory_space<smem>>
    %c1_97 = arith.constant 1 : index
    %c6_98 = arith.constant 6 : index
    %183 = memref.load %arg1[%c1_97, %c6_98] : memref<6x9xf32, #tpu.memory_space<smem>>
    %c1_99 = arith.constant 1 : index
    %c7_100 = arith.constant 7 : index
    %184 = memref.load %arg1[%c1_99, %c7_100] : memref<6x9xf32, #tpu.memory_space<smem>>
    %c1_101 = arith.constant 1 : index
    %c8_102 = arith.constant 8 : index
    %185 = memref.load %arg1[%c1_101, %c8_102] : memref<6x9xf32, #tpu.memory_space<smem>>
    %c0_103 = arith.constant 0 : index
    %c1_104 = arith.constant 1 : index
    %186 = memref.load %arg2[%c0_103, %c1_104] : memref<1x6xf32, #tpu.memory_space<smem>>
    %187 = vector.broadcast %177 : f32 to vector<2x8x8xf32>
    %188 = arith.mulf %187, %1 : vector<2x8x8xf32>
    %189 = vector.broadcast %178 : f32 to vector<2x8x8xf32>
    %190 = arith.mulf %189, %3 : vector<2x8x8xf32>
    %191 = arith.addf %188, %190 : vector<2x8x8xf32>
    %192 = vector.broadcast %179 : f32 to vector<2x8x8xf32>
    %193 = arith.mulf %192, %5 : vector<2x8x8xf32>
    %194 = arith.addf %191, %193 : vector<2x8x8xf32>
    %195 = vector.broadcast %180 : f32 to vector<2x8x8xf32>
    %196 = arith.mulf %195, %9 : vector<2x8x8xf32>
    %197 = arith.addf %194, %196 : vector<2x8x8xf32>
    %198 = vector.broadcast %181 : f32 to vector<2x8x8xf32>
    %199 = arith.mulf %198, %11 : vector<2x8x8xf32>
    %200 = arith.addf %197, %199 : vector<2x8x8xf32>
    %201 = vector.broadcast %182 : f32 to vector<2x8x8xf32>
    %202 = arith.mulf %201, %13 : vector<2x8x8xf32>
    %203 = arith.addf %200, %202 : vector<2x8x8xf32>
    %204 = vector.broadcast %183 : f32 to vector<2x8x8xf32>
    %205 = arith.mulf %204, %17 : vector<2x8x8xf32>
    %206 = arith.addf %203, %205 : vector<2x8x8xf32>
    %207 = vector.broadcast %184 : f32 to vector<2x8x8xf32>
    %208 = arith.mulf %207, %19 : vector<2x8x8xf32>
    %209 = arith.addf %206, %208 : vector<2x8x8xf32>
    %210 = vector.broadcast %185 : f32 to vector<2x8x8xf32>
    %211 = arith.mulf %210, %21 : vector<2x8x8xf32>
    %212 = arith.addf %209, %211 : vector<2x8x8xf32>
    %213 = vector.broadcast %177 : f32 to vector<2x8x8xf32>
    %214 = arith.mulf %213, %3 : vector<2x8x8xf32>
    %215 = vector.broadcast %178 : f32 to vector<2x8x8xf32>
    %216 = arith.mulf %215, %5 : vector<2x8x8xf32>
    %217 = arith.addf %214, %216 : vector<2x8x8xf32>
    %218 = vector.broadcast %179 : f32 to vector<2x8x8xf32>
    %219 = arith.mulf %218, %7 : vector<2x8x8xf32>
    %220 = arith.addf %217, %219 : vector<2x8x8xf32>
    %221 = vector.broadcast %180 : f32 to vector<2x8x8xf32>
    %222 = arith.mulf %221, %11 : vector<2x8x8xf32>
    %223 = arith.addf %220, %222 : vector<2x8x8xf32>
    %224 = vector.broadcast %181 : f32 to vector<2x8x8xf32>
    %225 = arith.mulf %224, %13 : vector<2x8x8xf32>
    %226 = arith.addf %223, %225 : vector<2x8x8xf32>
    %227 = vector.broadcast %182 : f32 to vector<2x8x8xf32>
    %228 = arith.mulf %227, %15 : vector<2x8x8xf32>
    %229 = arith.addf %226, %228 : vector<2x8x8xf32>
    %230 = vector.broadcast %183 : f32 to vector<2x8x8xf32>
    %231 = arith.mulf %230, %19 : vector<2x8x8xf32>
    %232 = arith.addf %229, %231 : vector<2x8x8xf32>
    %233 = vector.broadcast %184 : f32 to vector<2x8x8xf32>
    %234 = arith.mulf %233, %21 : vector<2x8x8xf32>
    %235 = arith.addf %232, %234 : vector<2x8x8xf32>
    %236 = vector.broadcast %185 : f32 to vector<2x8x8xf32>
    %237 = arith.mulf %236, %23 : vector<2x8x8xf32>
    %238 = arith.addf %235, %237 : vector<2x8x8xf32>
    %239 = arith.maximumf %212, %238 : vector<2x8x8xf32>
    %240 = vector.broadcast %177 : f32 to vector<2x8x8xf32>
    %241 = arith.mulf %240, %9 : vector<2x8x8xf32>
    %242 = vector.broadcast %178 : f32 to vector<2x8x8xf32>
    %243 = arith.mulf %242, %11 : vector<2x8x8xf32>
    %244 = arith.addf %241, %243 : vector<2x8x8xf32>
    %245 = vector.broadcast %179 : f32 to vector<2x8x8xf32>
    %246 = arith.mulf %245, %13 : vector<2x8x8xf32>
    %247 = arith.addf %244, %246 : vector<2x8x8xf32>
    %248 = vector.broadcast %180 : f32 to vector<2x8x8xf32>
    %249 = arith.mulf %248, %17 : vector<2x8x8xf32>
    %250 = arith.addf %247, %249 : vector<2x8x8xf32>
    %251 = vector.broadcast %181 : f32 to vector<2x8x8xf32>
    %252 = arith.mulf %251, %19 : vector<2x8x8xf32>
    %253 = arith.addf %250, %252 : vector<2x8x8xf32>
    %254 = vector.broadcast %182 : f32 to vector<2x8x8xf32>
    %255 = arith.mulf %254, %21 : vector<2x8x8xf32>
    %256 = arith.addf %253, %255 : vector<2x8x8xf32>
    %257 = vector.broadcast %183 : f32 to vector<2x8x8xf32>
    %258 = arith.mulf %257, %25 : vector<2x8x8xf32>
    %259 = arith.addf %256, %258 : vector<2x8x8xf32>
    %260 = vector.broadcast %184 : f32 to vector<2x8x8xf32>
    %261 = arith.mulf %260, %27 : vector<2x8x8xf32>
    %262 = arith.addf %259, %261 : vector<2x8x8xf32>
    %263 = vector.broadcast %185 : f32 to vector<2x8x8xf32>
    %264 = arith.mulf %263, %29 : vector<2x8x8xf32>
    %265 = arith.addf %262, %264 : vector<2x8x8xf32>
    %266 = arith.maximumf %239, %265 : vector<2x8x8xf32>
    %267 = vector.broadcast %177 : f32 to vector<2x8x8xf32>
    %268 = arith.mulf %267, %11 : vector<2x8x8xf32>
    %269 = vector.broadcast %178 : f32 to vector<2x8x8xf32>
    %270 = arith.mulf %269, %13 : vector<2x8x8xf32>
    %271 = arith.addf %268, %270 : vector<2x8x8xf32>
    %272 = vector.broadcast %179 : f32 to vector<2x8x8xf32>
    %273 = arith.mulf %272, %15 : vector<2x8x8xf32>
    %274 = arith.addf %271, %273 : vector<2x8x8xf32>
    %275 = vector.broadcast %180 : f32 to vector<2x8x8xf32>
    %276 = arith.mulf %275, %19 : vector<2x8x8xf32>
    %277 = arith.addf %274, %276 : vector<2x8x8xf32>
    %278 = vector.broadcast %181 : f32 to vector<2x8x8xf32>
    %279 = arith.mulf %278, %21 : vector<2x8x8xf32>
    %280 = arith.addf %277, %279 : vector<2x8x8xf32>
    %281 = vector.broadcast %182 : f32 to vector<2x8x8xf32>
    %282 = arith.mulf %281, %23 : vector<2x8x8xf32>
    %283 = arith.addf %280, %282 : vector<2x8x8xf32>
    %284 = vector.broadcast %183 : f32 to vector<2x8x8xf32>
    %285 = arith.mulf %284, %27 : vector<2x8x8xf32>
    %286 = arith.addf %283, %285 : vector<2x8x8xf32>
    %287 = vector.broadcast %184 : f32 to vector<2x8x8xf32>
    %288 = arith.mulf %287, %29 : vector<2x8x8xf32>
    %289 = arith.addf %286, %288 : vector<2x8x8xf32>
    %290 = vector.broadcast %185 : f32 to vector<2x8x8xf32>
    %291 = arith.mulf %290, %31 : vector<2x8x8xf32>
    %292 = arith.addf %289, %291 : vector<2x8x8xf32>
    %293 = arith.maximumf %266, %292 : vector<2x8x8xf32>
    %294 = vector.broadcast %186 : f32 to vector<2x8x8xf32>
    %295 = arith.addf %293, %294 : vector<2x8x8xf32>
    %cst_105 = arith.constant 0.000000e+00 : f32
    %296 = vector.broadcast %cst_105 : f32 to vector<2x8x8xf32>
    %297 = arith.maximumf %295, %296 : vector<2x8x8xf32>
    %298 = vector.extract_strided_slice %297 {offsets = [0, 0, 0], sizes = [2, 1, 8], strides = [1, 1, 1]} : vector<2x8x8xf32> to vector<2x1x8xf32>
    %299 = vector.shape_cast %298 : vector<2x1x8xf32> to vector<2x8xf32>
    %c0_106 = arith.constant 0 : index
    %c64 = arith.constant 64 : index
    %300 = vector.load %arg8[%c0_106, %c64] : memref<2x384xf32, #tpu.memory_space<vmem>>, vector<2x8xf32>
    tpu.vector_store %arg8[%c0_106, %c64], %299 {strides = array<i32>} : memref<2x384xf32, #tpu.memory_space<vmem>>, vector<2x8xf32>,
    %301 = vector.extract_strided_slice %297 {offsets = [0, 1, 0], sizes = [2, 1, 8], strides = [1, 1, 1]} : vector<2x8x8xf32> to vector<2x1x8xf32>
    %302 = vector.shape_cast %301 : vector<2x1x8xf32> to vector<2x8xf32>
    %c0_107 = arith.constant 0 : index
    %c72 = arith.constant 72 : index
    %303 = vector.load %arg8[%c0_107, %c72] : memref<2x384xf32, #tpu.memory_space<vmem>>, vector<2x8xf32>
    tpu.vector_store %arg8[%c0_107, %c72], %302 {strides = array<i32>} : memref<2x384xf32, #tpu.memory_space<vmem>>, vector<2x8xf32>,
    %304 = vector.extract_strided_slice %297 {offsets = [0, 2, 0], sizes = [2, 1, 8], strides = [1, 1, 1]} : vector<2x8x8xf32> to vector<2x1x8xf32>
    %305 = vector.shape_cast %304 : vector<2x1x8xf32> to vector<2x8xf32>
    %c0_108 = arith.constant 0 : index
    %c80 = arith.constant 80 : index
    %306 = vector.load %arg8[%c0_108, %c80] : memref<2x384xf32, #tpu.memory_space<vmem>>, vector<2x8xf32>
    tpu.vector_store %arg8[%c0_108, %c80], %305 {strides = array<i32>} : memref<2x384xf32, #tpu.memory_space<vmem>>, vector<2x8xf32>,
    %307 = vector.extract_strided_slice %297 {offsets = [0, 3, 0], sizes = [2, 1, 8], strides = [1, 1, 1]} : vector<2x8x8xf32> to vector<2x1x8xf32>
    %308 = vector.shape_cast %307 : vector<2x1x8xf32> to vector<2x8xf32>
    %c0_109 = arith.constant 0 : index
    %c88 = arith.constant 88 : index
    %309 = vector.load %arg8[%c0_109, %c88] : memref<2x384xf32, #tpu.memory_space<vmem>>, vector<2x8xf32>
    tpu.vector_store %arg8[%c0_109, %c88], %308 {strides = array<i32>} : memref<2x384xf32, #tpu.memory_space<vmem>>, vector<2x8xf32>,
    %310 = vector.extract_strided_slice %297 {offsets = [0, 4, 0], sizes = [2, 1, 8], strides = [1, 1, 1]} : vector<2x8x8xf32> to vector<2x1x8xf32>
    %311 = vector.shape_cast %310 : vector<2x1x8xf32> to vector<2x8xf32>
    %c0_110 = arith.constant 0 : index
    %c96 = arith.constant 96 : index
    %312 = vector.load %arg8[%c0_110, %c96] : memref<2x384xf32, #tpu.memory_space<vmem>>, vector<2x8xf32>
    tpu.vector_store %arg8[%c0_110, %c96], %311 {strides = array<i32>} : memref<2x384xf32, #tpu.memory_space<vmem>>, vector<2x8xf32>,
    %313 = vector.extract_strided_slice %297 {offsets = [0, 5, 0], sizes = [2, 1, 8], strides = [1, 1, 1]} : vector<2x8x8xf32> to vector<2x1x8xf32>
    %314 = vector.shape_cast %313 : vector<2x1x8xf32> to vector<2x8xf32>
    %c0_111 = arith.constant 0 : index
    %c104 = arith.constant 104 : index
    %315 = vector.load %arg8[%c0_111, %c104] : memref<2x384xf32, #tpu.memory_space<vmem>>, vector<2x8xf32>
    tpu.vector_store %arg8[%c0_111, %c104], %314 {strides = array<i32>} : memref<2x384xf32, #tpu.memory_space<vmem>>, vector<2x8xf32>,
    %316 = vector.extract_strided_slice %297 {offsets = [0, 6, 0], sizes = [2, 1, 8], strides = [1, 1, 1]} : vector<2x8x8xf32> to vector<2x1x8xf32>
    %317 = vector.shape_cast %316 : vector<2x1x8xf32> to vector<2x8xf32>
    %c0_112 = arith.constant 0 : index
    %c112 = arith.constant 112 : index
    %318 = vector.load %arg8[%c0_112, %c112] : memref<2x384xf32, #tpu.memory_space<vmem>>, vector<2x8xf32>
    tpu.vector_store %arg8[%c0_112, %c112], %317 {strides = array<i32>} : memref<2x384xf32, #tpu.memory_space<vmem>>, vector<2x8xf32>,
    %319 = vector.extract_strided_slice %297 {offsets = [0, 7, 0], sizes = [2, 1, 8], strides = [1, 1, 1]} : vector<2x8x8xf32> to vector<2x1x8xf32>
    %320 = vector.shape_cast %319 : vector<2x1x8xf32> to vector<2x8xf32>
    %c0_113 = arith.constant 0 : index
    %c120 = arith.constant 120 : index
    %321 = vector.load %arg8[%c0_113, %c120] : memref<2x384xf32, #tpu.memory_space<vmem>>, vector<2x8xf32>
    tpu.vector_store %arg8[%c0_113, %c120], %320 {strides = array<i32>} : memref<2x384xf32, #tpu.memory_space<vmem>>, vector<2x8xf32>,
    %c2_114 = arith.constant 2 : index
    %c0_115 = arith.constant 0 : index
    %322 = memref.load %arg1[%c2_114, %c0_115] : memref<6x9xf32, #tpu.memory_space<smem>>
    %c2_116 = arith.constant 2 : index
    %c1_117 = arith.constant 1 : index
    %323 = memref.load %arg1[%c2_116, %c1_117] : memref<6x9xf32, #tpu.memory_space<smem>>
    %c2_118 = arith.constant 2 : index
    %c2_119 = arith.constant 2 : index
    %324 = memref.load %arg1[%c2_118, %c2_119] : memref<6x9xf32, #tpu.memory_space<smem>>
    %c2_120 = arith.constant 2 : index
    %c3_121 = arith.constant 3 : index
    %325 = memref.load %arg1[%c2_120, %c3_121] : memref<6x9xf32, #tpu.memory_space<smem>>
    %c2_122 = arith.constant 2 : index
    %c4_123 = arith.constant 4 : index
    %326 = memref.load %arg1[%c2_122, %c4_123] : memref<6x9xf32, #tpu.memory_space<smem>>
    %c2_124 = arith.constant 2 : index
    %c5_125 = arith.constant 5 : index
    %327 = memref.load %arg1[%c2_124, %c5_125] : memref<6x9xf32, #tpu.memory_space<smem>>
    %c2_126 = arith.constant 2 : index
    %c6_127 = arith.constant 6 : index
    %328 = memref.load %arg1[%c2_126, %c6_127] : memref<6x9xf32, #tpu.memory_space<smem>>
    %c2_128 = arith.constant 2 : index
    %c7_129 = arith.constant 7 : index
    %329 = memref.load %arg1[%c2_128, %c7_129] : memref<6x9xf32, #tpu.memory_space<smem>>
    %c2_130 = arith.constant 2 : index
    %c8_131 = arith.constant 8 : index
    %330 = memref.load %arg1[%c2_130, %c8_131] : memref<6x9xf32, #tpu.memory_space<smem>>
    %c0_132 = arith.constant 0 : index
    %c2_133 = arith.constant 2 : index
    %331 = memref.load %arg2[%c0_132, %c2_133] : memref<1x6xf32, #tpu.memory_space<smem>>
    %332 = vector.broadcast %322 : f32 to vector<2x8x8xf32>
    %333 = arith.mulf %332, %1 : vector<2x8x8xf32>
    %334 = vector.broadcast %323 : f32 to vector<2x8x8xf32>
    %335 = arith.mulf %334, %3 : vector<2x8x8xf32>
    %336 = arith.addf %333, %335 : vector<2x8x8xf32>
    %337 = vector.broadcast %324 : f32 to vector<2x8x8xf32>
    %338 = arith.mulf %337, %5 : vector<2x8x8xf32>
    %339 = arith.addf %336, %338 : vector<2x8x8xf32>
    %340 = vector.broadcast %325 : f32 to vector<2x8x8xf32>
    %341 = arith.mulf %340, %9 : vector<2x8x8xf32>
    %342 = arith.addf %339, %341 : vector<2x8x8xf32>
    %343 = vector.broadcast %326 : f32 to vector<2x8x8xf32>
    %344 = arith.mulf %343, %11 : vector<2x8x8xf32>
    %345 = arith.addf %342, %344 : vector<2x8x8xf32>
    %346 = vector.broadcast %327 : f32 to vector<2x8x8xf32>
    %347 = arith.mulf %346, %13 : vector<2x8x8xf32>
    %348 = arith.addf %345, %347 : vector<2x8x8xf32>
    %349 = vector.broadcast %328 : f32 to vector<2x8x8xf32>
    %350 = arith.mulf %349, %17 : vector<2x8x8xf32>
    %351 = arith.addf %348, %350 : vector<2x8x8xf32>
    %352 = vector.broadcast %329 : f32 to vector<2x8x8xf32>
    %353 = arith.mulf %352, %19 : vector<2x8x8xf32>
    %354 = arith.addf %351, %353 : vector<2x8x8xf32>
    %355 = vector.broadcast %330 : f32 to vector<2x8x8xf32>
    %356 = arith.mulf %355, %21 : vector<2x8x8xf32>
    %357 = arith.addf %354, %356 : vector<2x8x8xf32>
    %358 = vector.broadcast %322 : f32 to vector<2x8x8xf32>
    %359 = arith.mulf %358, %3 : vector<2x8x8xf32>
    %360 = vector.broadcast %323 : f32 to vector<2x8x8xf32>
    %361 = arith.mulf %360, %5 : vector<2x8x8xf32>
    %362 = arith.addf %359, %361 : vector<2x8x8xf32>
    %363 = vector.broadcast %324 : f32 to vector<2x8x8xf32>
    %364 = arith.mulf %363, %7 : vector<2x8x8xf32>
    %365 = arith.addf %362, %364 : vector<2x8x8xf32>
    %366 = vector.broadcast %325 : f32 to vector<2x8x8xf32>
    %367 = arith.mulf %366, %11 : vector<2x8x8xf32>
    %368 = arith.addf %365, %367 : vector<2x8x8xf32>
    %369 = vector.broadcast %326 : f32 to vector<2x8x8xf32>
    %370 = arith.mulf %369, %13 : vector<2x8x8xf32>
    %371 = arith.addf %368, %370 : vector<2x8x8xf32>
    %372 = vector.broadcast %327 : f32 to vector<2x8x8xf32>
    %373 = arith.mulf %372, %15 : vector<2x8x8xf32>
    %374 = arith.addf %371, %373 : vector<2x8x8xf32>
    %375 = vector.broadcast %328 : f32 to vector<2x8x8xf32>
    %376 = arith.mulf %375, %19 : vector<2x8x8xf32>
    %377 = arith.addf %374, %376 : vector<2x8x8xf32>
    %378 = vector.broadcast %329 : f32 to vector<2x8x8xf32>
    %379 = arith.mulf %378, %21 : vector<2x8x8xf32>
    %380 = arith.addf %377, %379 : vector<2x8x8xf32>
    %381 = vector.broadcast %330 : f32 to vector<2x8x8xf32>
    %382 = arith.mulf %381, %23 : vector<2x8x8xf32>
    %383 = arith.addf %380, %382 : vector<2x8x8xf32>
    %384 = arith.maximumf %357, %383 : vector<2x8x8xf32>
    %385 = vector.broadcast %322 : f32 to vector<2x8x8xf32>
    %386 = arith.mulf %385, %9 : vector<2x8x8xf32>
    %387 = vector.broadcast %323 : f32 to vector<2x8x8xf32>
    %388 = arith.mulf %387, %11 : vector<2x8x8xf32>
    %389 = arith.addf %386, %388 : vector<2x8x8xf32>
    %390 = vector.broadcast %324 : f32 to vector<2x8x8xf32>
    %391 = arith.mulf %390, %13 : vector<2x8x8xf32>
    %392 = arith.addf %389, %391 : vector<2x8x8xf32>
    %393 = vector.broadcast %325 : f32 to vector<2x8x8xf32>
    %394 = arith.mulf %393, %17 : vector<2x8x8xf32>
    %395 = arith.addf %392, %394 : vector<2x8x8xf32>
    %396 = vector.broadcast %326 : f32 to vector<2x8x8xf32>
    %397 = arith.mulf %396, %19 : vector<2x8x8xf32>
    %398 = arith.addf %395, %397 : vector<2x8x8xf32>
    %399 = vector.broadcast %327 : f32 to vector<2x8x8xf32>
    %400 = arith.mulf %399, %21 : vector<2x8x8xf32>
    %401 = arith.addf %398, %400 : vector<2x8x8xf32>
    %402 = vector.broadcast %328 : f32 to vector<2x8x8xf32>
    %403 = arith.mulf %402, %25 : vector<2x8x8xf32>
    %404 = arith.addf %401, %403 : vector<2x8x8xf32>
    %405 = vector.broadcast %329 : f32 to vector<2x8x8xf32>
    %406 = arith.mulf %405, %27 : vector<2x8x8xf32>
    %407 = arith.addf %404, %406 : vector<2x8x8xf32>
    %408 = vector.broadcast %330 : f32 to vector<2x8x8xf32>
    %409 = arith.mulf %408, %29 : vector<2x8x8xf32>
    %410 = arith.addf %407, %409 : vector<2x8x8xf32>
    %411 = arith.maximumf %384, %410 : vector<2x8x8xf32>
    %412 = vector.broadcast %322 : f32 to vector<2x8x8xf32>
    %413 = arith.mulf %412, %11 : vector<2x8x8xf32>
    %414 = vector.broadcast %323 : f32 to vector<2x8x8xf32>
    %415 = arith.mulf %414, %13 : vector<2x8x8xf32>
    %416 = arith.addf %413, %415 : vector<2x8x8xf32>
    %417 = vector.broadcast %324 : f32 to vector<2x8x8xf32>
    %418 = arith.mulf %417, %15 : vector<2x8x8xf32>
    %419 = arith.addf %416, %418 : vector<2x8x8xf32>
    %420 = vector.broadcast %325 : f32 to vector<2x8x8xf32>
    %421 = arith.mulf %420, %19 : vector<2x8x8xf32>
    %422 = arith.addf %419, %421 : vector<2x8x8xf32>
    %423 = vector.broadcast %326 : f32 to vector<2x8x8xf32>
    %424 = arith.mulf %423, %21 : vector<2x8x8xf32>
    %425 = arith.addf %422, %424 : vector<2x8x8xf32>
    %426 = vector.broadcast %327 : f32 to vector<2x8x8xf32>
    %427 = arith.mulf %426, %23 : vector<2x8x8xf32>
    %428 = arith.addf %425, %427 : vector<2x8x8xf32>
    %429 = vector.broadcast %328 : f32 to vector<2x8x8xf32>
    %430 = arith.mulf %429, %27 : vector<2x8x8xf32>
    %431 = arith.addf %428, %430 : vector<2x8x8xf32>
    %432 = vector.broadcast %329 : f32 to vector<2x8x8xf32>
    %433 = arith.mulf %432, %29 : vector<2x8x8xf32>
    %434 = arith.addf %431, %433 : vector<2x8x8xf32>
    %435 = vector.broadcast %330 : f32 to vector<2x8x8xf32>
    %436 = arith.mulf %435, %31 : vector<2x8x8xf32>
    %437 = arith.addf %434, %436 : vector<2x8x8xf32>
    %438 = arith.maximumf %411, %437 : vector<2x8x8xf32>
    %439 = vector.broadcast %331 : f32 to vector<2x8x8xf32>
    %440 = arith.addf %438, %439 : vector<2x8x8xf32>
    %cst_134 = arith.constant 0.000000e+00 : f32
    %441 = vector.broadcast %cst_134 : f32 to vector<2x8x8xf32>
    %442 = arith.maximumf %440, %441 : vector<2x8x8xf32>
    %443 = vector.extract_strided_slice %442 {offsets = [0, 0, 0], sizes = [2, 1, 8], strides = [1, 1, 1]} : vector<2x8x8xf32> to vector<2x1x8xf32>
    %444 = vector.shape_cast %443 : vector<2x1x8xf32> to vector<2x8xf32>
    %c0_135 = arith.constant 0 : index
    %c128 = arith.constant 128 : index
    %445 = vector.load %arg8[%c0_135, %c128] : memref<2x384xf32, #tpu.memory_space<vmem>>, vector<2x8xf32>
    tpu.vector_store %arg8[%c0_135, %c128], %444 {strides = array<i32>} : memref<2x384xf32, #tpu.memory_space<vmem>>, vector<2x8xf32>,
    %446 = vector.extract_strided_slice %442 {offsets = [0, 1, 0], sizes = [2, 1, 8], strides = [1, 1, 1]} : vector<2x8x8xf32> to vector<2x1x8xf32>
    %447 = vector.shape_cast %446 : vector<2x1x8xf32> to vector<2x8xf32>
    %c0_136 = arith.constant 0 : index
    %c136 = arith.constant 136 : index
    %448 = vector.load %arg8[%c0_136, %c136] : memref<2x384xf32, #tpu.memory_space<vmem>>, vector<2x8xf32>
    tpu.vector_store %arg8[%c0_136, %c136], %447 {strides = array<i32>} : memref<2x384xf32, #tpu.memory_space<vmem>>, vector<2x8xf32>,
    %449 = vector.extract_strided_slice %442 {offsets = [0, 2, 0], sizes = [2, 1, 8], strides = [1, 1, 1]} : vector<2x8x8xf32> to vector<2x1x8xf32>
    %450 = vector.shape_cast %449 : vector<2x1x8xf32> to vector<2x8xf32>
    %c0_137 = arith.constant 0 : index
    %c144 = arith.constant 144 : index
    %451 = vector.load %arg8[%c0_137, %c144] : memref<2x384xf32, #tpu.memory_space<vmem>>, vector<2x8xf32>
    tpu.vector_store %arg8[%c0_137, %c144], %450 {strides = array<i32>} : memref<2x384xf32, #tpu.memory_space<vmem>>, vector<2x8xf32>,
    %452 = vector.extract_strided_slice %442 {offsets = [0, 3, 0], sizes = [2, 1, 8], strides = [1, 1, 1]} : vector<2x8x8xf32> to vector<2x1x8xf32>
    %453 = vector.shape_cast %452 : vector<2x1x8xf32> to vector<2x8xf32>
    %c0_138 = arith.constant 0 : index
    %c152 = arith.constant 152 : index
    %454 = vector.load %arg8[%c0_138, %c152] : memref<2x384xf32, #tpu.memory_space<vmem>>, vector<2x8xf32>
    tpu.vector_store %arg8[%c0_138, %c152], %453 {strides = array<i32>} : memref<2x384xf32, #tpu.memory_space<vmem>>, vector<2x8xf32>,
    %455 = vector.extract_strided_slice %442 {offsets = [0, 4, 0], sizes = [2, 1, 8], strides = [1, 1, 1]} : vector<2x8x8xf32> to vector<2x1x8xf32>
    %456 = vector.shape_cast %455 : vector<2x1x8xf32> to vector<2x8xf32>
    %c0_139 = arith.constant 0 : index
    %c160 = arith.constant 160 : index
    %457 = vector.load %arg8[%c0_139, %c160] : memref<2x384xf32, #tpu.memory_space<vmem>>, vector<2x8xf32>
    tpu.vector_store %arg8[%c0_139, %c160], %456 {strides = array<i32>} : memref<2x384xf32, #tpu.memory_space<vmem>>, vector<2x8xf32>,
    %458 = vector.extract_strided_slice %442 {offsets = [0, 5, 0], sizes = [2, 1, 8], strides = [1, 1, 1]} : vector<2x8x8xf32> to vector<2x1x8xf32>
    %459 = vector.shape_cast %458 : vector<2x1x8xf32> to vector<2x8xf32>
    %c0_140 = arith.constant 0 : index
    %c168 = arith.constant 168 : index
    %460 = vector.load %arg8[%c0_140, %c168] : memref<2x384xf32, #tpu.memory_space<vmem>>, vector<2x8xf32>
    tpu.vector_store %arg8[%c0_140, %c168], %459 {strides = array<i32>} : memref<2x384xf32, #tpu.memory_space<vmem>>, vector<2x8xf32>,
    %461 = vector.extract_strided_slice %442 {offsets = [0, 6, 0], sizes = [2, 1, 8], strides = [1, 1, 1]} : vector<2x8x8xf32> to vector<2x1x8xf32>
    %462 = vector.shape_cast %461 : vector<2x1x8xf32> to vector<2x8xf32>
    %c0_141 = arith.constant 0 : index
    %c176 = arith.constant 176 : index
    %463 = vector.load %arg8[%c0_141, %c176] : memref<2x384xf32, #tpu.memory_space<vmem>>, vector<2x8xf32>
    tpu.vector_store %arg8[%c0_141, %c176], %462 {strides = array<i32>} : memref<2x384xf32, #tpu.memory_space<vmem>>, vector<2x8xf32>,
    %464 = vector.extract_strided_slice %442 {offsets = [0, 7, 0], sizes = [2, 1, 8], strides = [1, 1, 1]} : vector<2x8x8xf32> to vector<2x1x8xf32>
    %465 = vector.shape_cast %464 : vector<2x1x8xf32> to vector<2x8xf32>
    %c0_142 = arith.constant 0 : index
    %c184 = arith.constant 184 : index
    %466 = vector.load %arg8[%c0_142, %c184] : memref<2x384xf32, #tpu.memory_space<vmem>>, vector<2x8xf32>
    tpu.vector_store %arg8[%c0_142, %c184], %465 {strides = array<i32>} : memref<2x384xf32, #tpu.memory_space<vmem>>, vector<2x8xf32>,
    %c3_143 = arith.constant 3 : index
    %c0_144 = arith.constant 0 : index
    %467 = memref.load %arg1[%c3_143, %c0_144] : memref<6x9xf32, #tpu.memory_space<smem>>
    %c3_145 = arith.constant 3 : index
    %c1_146 = arith.constant 1 : index
    %468 = memref.load %arg1[%c3_145, %c1_146] : memref<6x9xf32, #tpu.memory_space<smem>>
    %c3_147 = arith.constant 3 : index
    %c2_148 = arith.constant 2 : index
    %469 = memref.load %arg1[%c3_147, %c2_148] : memref<6x9xf32, #tpu.memory_space<smem>>
    %c3_149 = arith.constant 3 : index
    %c3_150 = arith.constant 3 : index
    %470 = memref.load %arg1[%c3_149, %c3_150] : memref<6x9xf32, #tpu.memory_space<smem>>
    %c3_151 = arith.constant 3 : index
    %c4_152 = arith.constant 4 : index
    %471 = memref.load %arg1[%c3_151, %c4_152] : memref<6x9xf32, #tpu.memory_space<smem>>
    %c3_153 = arith.constant 3 : index
    %c5_154 = arith.constant 5 : index
    %472 = memref.load %arg1[%c3_153, %c5_154] : memref<6x9xf32, #tpu.memory_space<smem>>
    %c3_155 = arith.constant 3 : index
    %c6_156 = arith.constant 6 : index
    %473 = memref.load %arg1[%c3_155, %c6_156] : memref<6x9xf32, #tpu.memory_space<smem>>
    %c3_157 = arith.constant 3 : index
    %c7_158 = arith.constant 7 : index
    %474 = memref.load %arg1[%c3_157, %c7_158] : memref<6x9xf32, #tpu.memory_space<smem>>
    %c3_159 = arith.constant 3 : index
    %c8_160 = arith.constant 8 : index
    %475 = memref.load %arg1[%c3_159, %c8_160] : memref<6x9xf32, #tpu.memory_space<smem>>
    %c0_161 = arith.constant 0 : index
    %c3_162 = arith.constant 3 : index
    %476 = memref.load %arg2[%c0_161, %c3_162] : memref<1x6xf32, #tpu.memory_space<smem>>
    %477 = vector.broadcast %467 : f32 to vector<2x8x8xf32>
    %478 = arith.mulf %477, %1 : vector<2x8x8xf32>
    %479 = vector.broadcast %468 : f32 to vector<2x8x8xf32>
    %480 = arith.mulf %479, %3 : vector<2x8x8xf32>
    %481 = arith.addf %478, %480 : vector<2x8x8xf32>
    %482 = vector.broadcast %469 : f32 to vector<2x8x8xf32>
    %483 = arith.mulf %482, %5 : vector<2x8x8xf32>
    %484 = arith.addf %481, %483 : vector<2x8x8xf32>
    %485 = vector.broadcast %470 : f32 to vector<2x8x8xf32>
    %486 = arith.mulf %485, %9 : vector<2x8x8xf32>
    %487 = arith.addf %484, %486 : vector<2x8x8xf32>
    %488 = vector.broadcast %471 : f32 to vector<2x8x8xf32>
    %489 = arith.mulf %488, %11 : vector<2x8x8xf32>
    %490 = arith.addf %487, %489 : vector<2x8x8xf32>
    %491 = vector.broadcast %472 : f32 to vector<2x8x8xf32>
    %492 = arith.mulf %491, %13 : vector<2x8x8xf32>
    %493 = arith.addf %490, %492 : vector<2x8x8xf32>
    %494 = vector.broadcast %473 : f32 to vector<2x8x8xf32>
    %495 = arith.mulf %494, %17 : vector<2x8x8xf32>
    %496 = arith.addf %493, %495 : vector<2x8x8xf32>
    %497 = vector.broadcast %474 : f32 to vector<2x8x8xf32>
    %498 = arith.mulf %497, %19 : vector<2x8x8xf32>
    %499 = arith.addf %496, %498 : vector<2x8x8xf32>
    %500 = vector.broadcast %475 : f32 to vector<2x8x8xf32>
    %501 = arith.mulf %500, %21 : vector<2x8x8xf32>
    %502 = arith.addf %499, %501 : vector<2x8x8xf32>
    %503 = vector.broadcast %467 : f32 to vector<2x8x8xf32>
    %504 = arith.mulf %503, %3 : vector<2x8x8xf32>
    %505 = vector.broadcast %468 : f32 to vector<2x8x8xf32>
    %506 = arith.mulf %505, %5 : vector<2x8x8xf32>
    %507 = arith.addf %504, %506 : vector<2x8x8xf32>
    %508 = vector.broadcast %469 : f32 to vector<2x8x8xf32>
    %509 = arith.mulf %508, %7 : vector<2x8x8xf32>
    %510 = arith.addf %507, %509 : vector<2x8x8xf32>
    %511 = vector.broadcast %470 : f32 to vector<2x8x8xf32>
    %512 = arith.mulf %511, %11 : vector<2x8x8xf32>
    %513 = arith.addf %510, %512 : vector<2x8x8xf32>
    %514 = vector.broadcast %471 : f32 to vector<2x8x8xf32>
    %515 = arith.mulf %514, %13 : vector<2x8x8xf32>
    %516 = arith.addf %513, %515 : vector<2x8x8xf32>
    %517 = vector.broadcast %472 : f32 to vector<2x8x8xf32>
    %518 = arith.mulf %517, %15 : vector<2x8x8xf32>
    %519 = arith.addf %516, %518 : vector<2x8x8xf32>
    %520 = vector.broadcast %473 : f32 to vector<2x8x8xf32>
    %521 = arith.mulf %520, %19 : vector<2x8x8xf32>
    %522 = arith.addf %519, %521 : vector<2x8x8xf32>
    %523 = vector.broadcast %474 : f32 to vector<2x8x8xf32>
    %524 = arith.mulf %523, %21 : vector<2x8x8xf32>
    %525 = arith.addf %522, %524 : vector<2x8x8xf32>
    %526 = vector.broadcast %475 : f32 to vector<2x8x8xf32>
    %527 = arith.mulf %526, %23 : vector<2x8x8xf32>
    %528 = arith.addf %525, %527 : vector<2x8x8xf32>
    %529 = arith.maximumf %502, %528 : vector<2x8x8xf32>
    %530 = vector.broadcast %467 : f32 to vector<2x8x8xf32>
    %531 = arith.mulf %530, %9 : vector<2x8x8xf32>
    %532 = vector.broadcast %468 : f32 to vector<2x8x8xf32>
    %533 = arith.mulf %532, %11 : vector<2x8x8xf32>
    %534 = arith.addf %531, %533 : vector<2x8x8xf32>
    %535 = vector.broadcast %469 : f32 to vector<2x8x8xf32>
    %536 = arith.mulf %535, %13 : vector<2x8x8xf32>
    %537 = arith.addf %534, %536 : vector<2x8x8xf32>
    %538 = vector.broadcast %470 : f32 to vector<2x8x8xf32>
    %539 = arith.mulf %538, %17 : vector<2x8x8xf32>
    %540 = arith.addf %537, %539 : vector<2x8x8xf32>
    %541 = vector.broadcast %471 : f32 to vector<2x8x8xf32>
    %542 = arith.mulf %541, %19 : vector<2x8x8xf32>
    %543 = arith.addf %540, %542 : vector<2x8x8xf32>
    %544 = vector.broadcast %472 : f32 to vector<2x8x8xf32>
    %545 = arith.mulf %544, %21 : vector<2x8x8xf32>
    %546 = arith.addf %543, %545 : vector<2x8x8xf32>
    %547 = vector.broadcast %473 : f32 to vector<2x8x8xf32>
    %548 = arith.mulf %547, %25 : vector<2x8x8xf32>
    %549 = arith.addf %546, %548 : vector<2x8x8xf32>
    %550 = vector.broadcast %474 : f32 to vector<2x8x8xf32>
    %551 = arith.mulf %550, %27 : vector<2x8x8xf32>
    %552 = arith.addf %549, %551 : vector<2x8x8xf32>
    %553 = vector.broadcast %475 : f32 to vector<2x8x8xf32>
    %554 = arith.mulf %553, %29 : vector<2x8x8xf32>
    %555 = arith.addf %552, %554 : vector<2x8x8xf32>
    %556 = arith.maximumf %529, %555 : vector<2x8x8xf32>
    %557 = vector.broadcast %467 : f32 to vector<2x8x8xf32>
    %558 = arith.mulf %557, %11 : vector<2x8x8xf32>
    %559 = vector.broadcast %468 : f32 to vector<2x8x8xf32>
    %560 = arith.mulf %559, %13 : vector<2x8x8xf32>
    %561 = arith.addf %558, %560 : vector<2x8x8xf32>
    %562 = vector.broadcast %469 : f32 to vector<2x8x8xf32>
    %563 = arith.mulf %562, %15 : vector<2x8x8xf32>
    %564 = arith.addf %561, %563 : vector<2x8x8xf32>
    %565 = vector.broadcast %470 : f32 to vector<2x8x8xf32>
    %566 = arith.mulf %565, %19 : vector<2x8x8xf32>
    %567 = arith.addf %564, %566 : vector<2x8x8xf32>
    %568 = vector.broadcast %471 : f32 to vector<2x8x8xf32>
    %569 = arith.mulf %568, %21 : vector<2x8x8xf32>
    %570 = arith.addf %567, %569 : vector<2x8x8xf32>
    %571 = vector.broadcast %472 : f32 to vector<2x8x8xf32>
    %572 = arith.mulf %571, %23 : vector<2x8x8xf32>
    %573 = arith.addf %570, %572 : vector<2x8x8xf32>
    %574 = vector.broadcast %473 : f32 to vector<2x8x8xf32>
    %575 = arith.mulf %574, %27 : vector<2x8x8xf32>
    %576 = arith.addf %573, %575 : vector<2x8x8xf32>
    %577 = vector.broadcast %474 : f32 to vector<2x8x8xf32>
    %578 = arith.mulf %577, %29 : vector<2x8x8xf32>
    %579 = arith.addf %576, %578 : vector<2x8x8xf32>
    %580 = vector.broadcast %475 : f32 to vector<2x8x8xf32>
    %581 = arith.mulf %580, %31 : vector<2x8x8xf32>
    %582 = arith.addf %579, %581 : vector<2x8x8xf32>
    %583 = arith.maximumf %556, %582 : vector<2x8x8xf32>
    %584 = vector.broadcast %476 : f32 to vector<2x8x8xf32>
    %585 = arith.addf %583, %584 : vector<2x8x8xf32>
    %cst_163 = arith.constant 0.000000e+00 : f32
    %586 = vector.broadcast %cst_163 : f32 to vector<2x8x8xf32>
    %587 = arith.maximumf %585, %586 : vector<2x8x8xf32>
    %588 = vector.extract_strided_slice %587 {offsets = [0, 0, 0], sizes = [2, 1, 8], strides = [1, 1, 1]} : vector<2x8x8xf32> to vector<2x1x8xf32>
    %589 = vector.shape_cast %588 : vector<2x1x8xf32> to vector<2x8xf32>
    %c0_164 = arith.constant 0 : index
    %c192 = arith.constant 192 : index
    %590 = vector.load %arg8[%c0_164, %c192] : memref<2x384xf32, #tpu.memory_space<vmem>>, vector<2x8xf32>
    tpu.vector_store %arg8[%c0_164, %c192], %589 {strides = array<i32>} : memref<2x384xf32, #tpu.memory_space<vmem>>, vector<2x8xf32>,
    %591 = vector.extract_strided_slice %587 {offsets = [0, 1, 0], sizes = [2, 1, 8], strides = [1, 1, 1]} : vector<2x8x8xf32> to vector<2x1x8xf32>
    %592 = vector.shape_cast %591 : vector<2x1x8xf32> to vector<2x8xf32>
    %c0_165 = arith.constant 0 : index
    %c200 = arith.constant 200 : index
    %593 = vector.load %arg8[%c0_165, %c200] : memref<2x384xf32, #tpu.memory_space<vmem>>, vector<2x8xf32>
    tpu.vector_store %arg8[%c0_165, %c200], %592 {strides = array<i32>} : memref<2x384xf32, #tpu.memory_space<vmem>>, vector<2x8xf32>,
    %594 = vector.extract_strided_slice %587 {offsets = [0, 2, 0], sizes = [2, 1, 8], strides = [1, 1, 1]} : vector<2x8x8xf32> to vector<2x1x8xf32>
    %595 = vector.shape_cast %594 : vector<2x1x8xf32> to vector<2x8xf32>
    %c0_166 = arith.constant 0 : index
    %c208 = arith.constant 208 : index
    %596 = vector.load %arg8[%c0_166, %c208] : memref<2x384xf32, #tpu.memory_space<vmem>>, vector<2x8xf32>
    tpu.vector_store %arg8[%c0_166, %c208], %595 {strides = array<i32>} : memref<2x384xf32, #tpu.memory_space<vmem>>, vector<2x8xf32>,
    %597 = vector.extract_strided_slice %587 {offsets = [0, 3, 0], sizes = [2, 1, 8], strides = [1, 1, 1]} : vector<2x8x8xf32> to vector<2x1x8xf32>
    %598 = vector.shape_cast %597 : vector<2x1x8xf32> to vector<2x8xf32>
    %c0_167 = arith.constant 0 : index
    %c216 = arith.constant 216 : index
    %599 = vector.load %arg8[%c0_167, %c216] : memref<2x384xf32, #tpu.memory_space<vmem>>, vector<2x8xf32>
    tpu.vector_store %arg8[%c0_167, %c216], %598 {strides = array<i32>} : memref<2x384xf32, #tpu.memory_space<vmem>>, vector<2x8xf32>,
    %600 = vector.extract_strided_slice %587 {offsets = [0, 4, 0], sizes = [2, 1, 8], strides = [1, 1, 1]} : vector<2x8x8xf32> to vector<2x1x8xf32>
    %601 = vector.shape_cast %600 : vector<2x1x8xf32> to vector<2x8xf32>
    %c0_168 = arith.constant 0 : index
    %c224 = arith.constant 224 : index
    %602 = vector.load %arg8[%c0_168, %c224] : memref<2x384xf32, #tpu.memory_space<vmem>>, vector<2x8xf32>
    tpu.vector_store %arg8[%c0_168, %c224], %601 {strides = array<i32>} : memref<2x384xf32, #tpu.memory_space<vmem>>, vector<2x8xf32>,
    %603 = vector.extract_strided_slice %587 {offsets = [0, 5, 0], sizes = [2, 1, 8], strides = [1, 1, 1]} : vector<2x8x8xf32> to vector<2x1x8xf32>
    %604 = vector.shape_cast %603 : vector<2x1x8xf32> to vector<2x8xf32>
    %c0_169 = arith.constant 0 : index
    %c232 = arith.constant 232 : index
    %605 = vector.load %arg8[%c0_169, %c232] : memref<2x384xf32, #tpu.memory_space<vmem>>, vector<2x8xf32>
    tpu.vector_store %arg8[%c0_169, %c232], %604 {strides = array<i32>} : memref<2x384xf32, #tpu.memory_space<vmem>>, vector<2x8xf32>,
    %606 = vector.extract_strided_slice %587 {offsets = [0, 6, 0], sizes = [2, 1, 8], strides = [1, 1, 1]} : vector<2x8x8xf32> to vector<2x1x8xf32>
    %607 = vector.shape_cast %606 : vector<2x1x8xf32> to vector<2x8xf32>
    %c0_170 = arith.constant 0 : index
    %c240 = arith.constant 240 : index
    %608 = vector.load %arg8[%c0_170, %c240] : memref<2x384xf32, #tpu.memory_space<vmem>>, vector<2x8xf32>
    tpu.vector_store %arg8[%c0_170, %c240], %607 {strides = array<i32>} : memref<2x384xf32, #tpu.memory_space<vmem>>, vector<2x8xf32>,
    %609 = vector.extract_strided_slice %587 {offsets = [0, 7, 0], sizes = [2, 1, 8], strides = [1, 1, 1]} : vector<2x8x8xf32> to vector<2x1x8xf32>
    %610 = vector.shape_cast %609 : vector<2x1x8xf32> to vector<2x8xf32>
    %c0_171 = arith.constant 0 : index
    %c248 = arith.constant 248 : index
    %611 = vector.load %arg8[%c0_171, %c248] : memref<2x384xf32, #tpu.memory_space<vmem>>, vector<2x8xf32>
    tpu.vector_store %arg8[%c0_171, %c248], %610 {strides = array<i32>} : memref<2x384xf32, #tpu.memory_space<vmem>>, vector<2x8xf32>,
    %c4_172 = arith.constant 4 : index
    %c0_173 = arith.constant 0 : index
    %612 = memref.load %arg1[%c4_172, %c0_173] : memref<6x9xf32, #tpu.memory_space<smem>>
    %c4_174 = arith.constant 4 : index
    %c1_175 = arith.constant 1 : index
    %613 = memref.load %arg1[%c4_174, %c1_175] : memref<6x9xf32, #tpu.memory_space<smem>>
    %c4_176 = arith.constant 4 : index
    %c2_177 = arith.constant 2 : index
    %614 = memref.load %arg1[%c4_176, %c2_177] : memref<6x9xf32, #tpu.memory_space<smem>>
    %c4_178 = arith.constant 4 : index
    %c3_179 = arith.constant 3 : index
    %615 = memref.load %arg1[%c4_178, %c3_179] : memref<6x9xf32, #tpu.memory_space<smem>>
    %c4_180 = arith.constant 4 : index
    %c4_181 = arith.constant 4 : index
    %616 = memref.load %arg1[%c4_180, %c4_181] : memref<6x9xf32, #tpu.memory_space<smem>>
    %c4_182 = arith.constant 4 : index
    %c5_183 = arith.constant 5 : index
    %617 = memref.load %arg1[%c4_182, %c5_183] : memref<6x9xf32, #tpu.memory_space<smem>>
    %c4_184 = arith.constant 4 : index
    %c6_185 = arith.constant 6 : index
    %618 = memref.load %arg1[%c4_184, %c6_185] : memref<6x9xf32, #tpu.memory_space<smem>>
    %c4_186 = arith.constant 4 : index
    %c7_187 = arith.constant 7 : index
    %619 = memref.load %arg1[%c4_186, %c7_187] : memref<6x9xf32, #tpu.memory_space<smem>>
    %c4_188 = arith.constant 4 : index
    %c8_189 = arith.constant 8 : index
    %620 = memref.load %arg1[%c4_188, %c8_189] : memref<6x9xf32, #tpu.memory_space<smem>>
    %c0_190 = arith.constant 0 : index
    %c4_191 = arith.constant 4 : index
    %621 = memref.load %arg2[%c0_190, %c4_191] : memref<1x6xf32, #tpu.memory_space<smem>>
    %622 = vector.broadcast %612 : f32 to vector<2x8x8xf32>
    %623 = arith.mulf %622, %1 : vector<2x8x8xf32>
    %624 = vector.broadcast %613 : f32 to vector<2x8x8xf32>
    %625 = arith.mulf %624, %3 : vector<2x8x8xf32>
    %626 = arith.addf %623, %625 : vector<2x8x8xf32>
    %627 = vector.broadcast %614 : f32 to vector<2x8x8xf32>
    %628 = arith.mulf %627, %5 : vector<2x8x8xf32>
    %629 = arith.addf %626, %628 : vector<2x8x8xf32>
    %630 = vector.broadcast %615 : f32 to vector<2x8x8xf32>
    %631 = arith.mulf %630, %9 : vector<2x8x8xf32>
    %632 = arith.addf %629, %631 : vector<2x8x8xf32>
    %633 = vector.broadcast %616 : f32 to vector<2x8x8xf32>
    %634 = arith.mulf %633, %11 : vector<2x8x8xf32>
    %635 = arith.addf %632, %634 : vector<2x8x8xf32>
    %636 = vector.broadcast %617 : f32 to vector<2x8x8xf32>
    %637 = arith.mulf %636, %13 : vector<2x8x8xf32>
    %638 = arith.addf %635, %637 : vector<2x8x8xf32>
    %639 = vector.broadcast %618 : f32 to vector<2x8x8xf32>
    %640 = arith.mulf %639, %17 : vector<2x8x8xf32>
    %641 = arith.addf %638, %640 : vector<2x8x8xf32>
    %642 = vector.broadcast %619 : f32 to vector<2x8x8xf32>
    %643 = arith.mulf %642, %19 : vector<2x8x8xf32>
    %644 = arith.addf %641, %643 : vector<2x8x8xf32>
    %645 = vector.broadcast %620 : f32 to vector<2x8x8xf32>
    %646 = arith.mulf %645, %21 : vector<2x8x8xf32>
    %647 = arith.addf %644, %646 : vector<2x8x8xf32>
    %648 = vector.broadcast %612 : f32 to vector<2x8x8xf32>
    %649 = arith.mulf %648, %3 : vector<2x8x8xf32>
    %650 = vector.broadcast %613 : f32 to vector<2x8x8xf32>
    %651 = arith.mulf %650, %5 : vector<2x8x8xf32>
    %652 = arith.addf %649, %651 : vector<2x8x8xf32>
    %653 = vector.broadcast %614 : f32 to vector<2x8x8xf32>
    %654 = arith.mulf %653, %7 : vector<2x8x8xf32>
    %655 = arith.addf %652, %654 : vector<2x8x8xf32>
    %656 = vector.broadcast %615 : f32 to vector<2x8x8xf32>
    %657 = arith.mulf %656, %11 : vector<2x8x8xf32>
    %658 = arith.addf %655, %657 : vector<2x8x8xf32>
    %659 = vector.broadcast %616 : f32 to vector<2x8x8xf32>
    %660 = arith.mulf %659, %13 : vector<2x8x8xf32>
    %661 = arith.addf %658, %660 : vector<2x8x8xf32>
    %662 = vector.broadcast %617 : f32 to vector<2x8x8xf32>
    %663 = arith.mulf %662, %15 : vector<2x8x8xf32>
    %664 = arith.addf %661, %663 : vector<2x8x8xf32>
    %665 = vector.broadcast %618 : f32 to vector<2x8x8xf32>
    %666 = arith.mulf %665, %19 : vector<2x8x8xf32>
    %667 = arith.addf %664, %666 : vector<2x8x8xf32>
    %668 = vector.broadcast %619 : f32 to vector<2x8x8xf32>
    %669 = arith.mulf %668, %21 : vector<2x8x8xf32>
    %670 = arith.addf %667, %669 : vector<2x8x8xf32>
    %671 = vector.broadcast %620 : f32 to vector<2x8x8xf32>
    %672 = arith.mulf %671, %23 : vector<2x8x8xf32>
    %673 = arith.addf %670, %672 : vector<2x8x8xf32>
    %674 = arith.maximumf %647, %673 : vector<2x8x8xf32>
    %675 = vector.broadcast %612 : f32 to vector<2x8x8xf32>
    %676 = arith.mulf %675, %9 : vector<2x8x8xf32>
    %677 = vector.broadcast %613 : f32 to vector<2x8x8xf32>
    %678 = arith.mulf %677, %11 : vector<2x8x8xf32>
    %679 = arith.addf %676, %678 : vector<2x8x8xf32>
    %680 = vector.broadcast %614 : f32 to vector<2x8x8xf32>
    %681 = arith.mulf %680, %13 : vector<2x8x8xf32>
    %682 = arith.addf %679, %681 : vector<2x8x8xf32>
    %683 = vector.broadcast %615 : f32 to vector<2x8x8xf32>
    %684 = arith.mulf %683, %17 : vector<2x8x8xf32>
    %685 = arith.addf %682, %684 : vector<2x8x8xf32>
    %686 = vector.broadcast %616 : f32 to vector<2x8x8xf32>
    %687 = arith.mulf %686, %19 : vector<2x8x8xf32>
    %688 = arith.addf %685, %687 : vector<2x8x8xf32>
    %689 = vector.broadcast %617 : f32 to vector<2x8x8xf32>
    %690 = arith.mulf %689, %21 : vector<2x8x8xf32>
    %691 = arith.addf %688, %690 : vector<2x8x8xf32>
    %692 = vector.broadcast %618 : f32 to vector<2x8x8xf32>
    %693 = arith.mulf %692, %25 : vector<2x8x8xf32>
    %694 = arith.addf %691, %693 : vector<2x8x8xf32>
    %695 = vector.broadcast %619 : f32 to vector<2x8x8xf32>
    %696 = arith.mulf %695, %27 : vector<2x8x8xf32>
    %697 = arith.addf %694, %696 : vector<2x8x8xf32>
    %698 = vector.broadcast %620 : f32 to vector<2x8x8xf32>
    %699 = arith.mulf %698, %29 : vector<2x8x8xf32>
    %700 = arith.addf %697, %699 : vector<2x8x8xf32>
    %701 = arith.maximumf %674, %700 : vector<2x8x8xf32>
    %702 = vector.broadcast %612 : f32 to vector<2x8x8xf32>
    %703 = arith.mulf %702, %11 : vector<2x8x8xf32>
    %704 = vector.broadcast %613 : f32 to vector<2x8x8xf32>
    %705 = arith.mulf %704, %13 : vector<2x8x8xf32>
    %706 = arith.addf %703, %705 : vector<2x8x8xf32>
    %707 = vector.broadcast %614 : f32 to vector<2x8x8xf32>
    %708 = arith.mulf %707, %15 : vector<2x8x8xf32>
    %709 = arith.addf %706, %708 : vector<2x8x8xf32>
    %710 = vector.broadcast %615 : f32 to vector<2x8x8xf32>
    %711 = arith.mulf %710, %19 : vector<2x8x8xf32>
    %712 = arith.addf %709, %711 : vector<2x8x8xf32>
    %713 = vector.broadcast %616 : f32 to vector<2x8x8xf32>
    %714 = arith.mulf %713, %21 : vector<2x8x8xf32>
    %715 = arith.addf %712, %714 : vector<2x8x8xf32>
    %716 = vector.broadcast %617 : f32 to vector<2x8x8xf32>
    %717 = arith.mulf %716, %23 : vector<2x8x8xf32>
    %718 = arith.addf %715, %717 : vector<2x8x8xf32>
    %719 = vector.broadcast %618 : f32 to vector<2x8x8xf32>
    %720 = arith.mulf %719, %27 : vector<2x8x8xf32>
    %721 = arith.addf %718, %720 : vector<2x8x8xf32>
    %722 = vector.broadcast %619 : f32 to vector<2x8x8xf32>
    %723 = arith.mulf %722, %29 : vector<2x8x8xf32>
    %724 = arith.addf %721, %723 : vector<2x8x8xf32>
    %725 = vector.broadcast %620 : f32 to vector<2x8x8xf32>
    %726 = arith.mulf %725, %31 : vector<2x8x8xf32>
    %727 = arith.addf %724, %726 : vector<2x8x8xf32>
    %728 = arith.maximumf %701, %727 : vector<2x8x8xf32>
    %729 = vector.broadcast %621 : f32 to vector<2x8x8xf32>
    %730 = arith.addf %728, %729 : vector<2x8x8xf32>
    %cst_192 = arith.constant 0.000000e+00 : f32
    %731 = vector.broadcast %cst_192 : f32 to vector<2x8x8xf32>
    %732 = arith.maximumf %730, %731 : vector<2x8x8xf32>
    %733 = vector.extract_strided_slice %732 {offsets = [0, 0, 0], sizes = [2, 1, 8], strides = [1, 1, 1]} : vector<2x8x8xf32> to vector<2x1x8xf32>
    %734 = vector.shape_cast %733 : vector<2x1x8xf32> to vector<2x8xf32>
    %c0_193 = arith.constant 0 : index
    %c256 = arith.constant 256 : index
    %735 = vector.load %arg8[%c0_193, %c256] : memref<2x384xf32, #tpu.memory_space<vmem>>, vector<2x8xf32>
    tpu.vector_store %arg8[%c0_193, %c256], %734 {strides = array<i32>} : memref<2x384xf32, #tpu.memory_space<vmem>>, vector<2x8xf32>,
    %736 = vector.extract_strided_slice %732 {offsets = [0, 1, 0], sizes = [2, 1, 8], strides = [1, 1, 1]} : vector<2x8x8xf32> to vector<2x1x8xf32>
    %737 = vector.shape_cast %736 : vector<2x1x8xf32> to vector<2x8xf32>
    %c0_194 = arith.constant 0 : index
    %c264 = arith.constant 264 : index
    %738 = vector.load %arg8[%c0_194, %c264] : memref<2x384xf32, #tpu.memory_space<vmem>>, vector<2x8xf32>
    tpu.vector_store %arg8[%c0_194, %c264], %737 {strides = array<i32>} : memref<2x384xf32, #tpu.memory_space<vmem>>, vector<2x8xf32>,
    %739 = vector.extract_strided_slice %732 {offsets = [0, 2, 0], sizes = [2, 1, 8], strides = [1, 1, 1]} : vector<2x8x8xf32> to vector<2x1x8xf32>
    %740 = vector.shape_cast %739 : vector<2x1x8xf32> to vector<2x8xf32>
    %c0_195 = arith.constant 0 : index
    %c272 = arith.constant 272 : index
    %741 = vector.load %arg8[%c0_195, %c272] : memref<2x384xf32, #tpu.memory_space<vmem>>, vector<2x8xf32>
    tpu.vector_store %arg8[%c0_195, %c272], %740 {strides = array<i32>} : memref<2x384xf32, #tpu.memory_space<vmem>>, vector<2x8xf32>,
    %742 = vector.extract_strided_slice %732 {offsets = [0, 3, 0], sizes = [2, 1, 8], strides = [1, 1, 1]} : vector<2x8x8xf32> to vector<2x1x8xf32>
    %743 = vector.shape_cast %742 : vector<2x1x8xf32> to vector<2x8xf32>
    %c0_196 = arith.constant 0 : index
    %c280 = arith.constant 280 : index
    %744 = vector.load %arg8[%c0_196, %c280] : memref<2x384xf32, #tpu.memory_space<vmem>>, vector<2x8xf32>
    tpu.vector_store %arg8[%c0_196, %c280], %743 {strides = array<i32>} : memref<2x384xf32, #tpu.memory_space<vmem>>, vector<2x8xf32>,
    %745 = vector.extract_strided_slice %732 {offsets = [0, 4, 0], sizes = [2, 1, 8], strides = [1, 1, 1]} : vector<2x8x8xf32> to vector<2x1x8xf32>
    %746 = vector.shape_cast %745 : vector<2x1x8xf32> to vector<2x8xf32>
    %c0_197 = arith.constant 0 : index
    %c288 = arith.constant 288 : index
    %747 = vector.load %arg8[%c0_197, %c288] : memref<2x384xf32, #tpu.memory_space<vmem>>, vector<2x8xf32>
    tpu.vector_store %arg8[%c0_197, %c288], %746 {strides = array<i32>} : memref<2x384xf32, #tpu.memory_space<vmem>>, vector<2x8xf32>,
    %748 = vector.extract_strided_slice %732 {offsets = [0, 5, 0], sizes = [2, 1, 8], strides = [1, 1, 1]} : vector<2x8x8xf32> to vector<2x1x8xf32>
    %749 = vector.shape_cast %748 : vector<2x1x8xf32> to vector<2x8xf32>
    %c0_198 = arith.constant 0 : index
    %c296 = arith.constant 296 : index
    %750 = vector.load %arg8[%c0_198, %c296] : memref<2x384xf32, #tpu.memory_space<vmem>>, vector<2x8xf32>
    tpu.vector_store %arg8[%c0_198, %c296], %749 {strides = array<i32>} : memref<2x384xf32, #tpu.memory_space<vmem>>, vector<2x8xf32>,
    %751 = vector.extract_strided_slice %732 {offsets = [0, 6, 0], sizes = [2, 1, 8], strides = [1, 1, 1]} : vector<2x8x8xf32> to vector<2x1x8xf32>
    %752 = vector.shape_cast %751 : vector<2x1x8xf32> to vector<2x8xf32>
    %c0_199 = arith.constant 0 : index
    %c304 = arith.constant 304 : index
    %753 = vector.load %arg8[%c0_199, %c304] : memref<2x384xf32, #tpu.memory_space<vmem>>, vector<2x8xf32>
    tpu.vector_store %arg8[%c0_199, %c304], %752 {strides = array<i32>} : memref<2x384xf32, #tpu.memory_space<vmem>>, vector<2x8xf32>,
    %754 = vector.extract_strided_slice %732 {offsets = [0, 7, 0], sizes = [2, 1, 8], strides = [1, 1, 1]} : vector<2x8x8xf32> to vector<2x1x8xf32>
    %755 = vector.shape_cast %754 : vector<2x1x8xf32> to vector<2x8xf32>
    %c0_200 = arith.constant 0 : index
    %c312 = arith.constant 312 : index
    %756 = vector.load %arg8[%c0_200, %c312] : memref<2x384xf32, #tpu.memory_space<vmem>>, vector<2x8xf32>
    tpu.vector_store %arg8[%c0_200, %c312], %755 {strides = array<i32>} : memref<2x384xf32, #tpu.memory_space<vmem>>, vector<2x8xf32>,
    %c5_201 = arith.constant 5 : index
    %c0_202 = arith.constant 0 : index
    %757 = memref.load %arg1[%c5_201, %c0_202] : memref<6x9xf32, #tpu.memory_space<smem>>
    %c5_203 = arith.constant 5 : index
    %c1_204 = arith.constant 1 : index
    %758 = memref.load %arg1[%c5_203, %c1_204] : memref<6x9xf32, #tpu.memory_space<smem>>
    %c5_205 = arith.constant 5 : index
    %c2_206 = arith.constant 2 : index
    %759 = memref.load %arg1[%c5_205, %c2_206] : memref<6x9xf32, #tpu.memory_space<smem>>
    %c5_207 = arith.constant 5 : index
    %c3_208 = arith.constant 3 : index
    %760 = memref.load %arg1[%c5_207, %c3_208] : memref<6x9xf32, #tpu.memory_space<smem>>
    %c5_209 = arith.constant 5 : index
    %c4_210 = arith.constant 4 : index
    %761 = memref.load %arg1[%c5_209, %c4_210] : memref<6x9xf32, #tpu.memory_space<smem>>
    %c5_211 = arith.constant 5 : index
    %c5_212 = arith.constant 5 : index
    %762 = memref.load %arg1[%c5_211, %c5_212] : memref<6x9xf32, #tpu.memory_space<smem>>
    %c5_213 = arith.constant 5 : index
    %c6_214 = arith.constant 6 : index
    %763 = memref.load %arg1[%c5_213, %c6_214] : memref<6x9xf32, #tpu.memory_space<smem>>
    %c5_215 = arith.constant 5 : index
    %c7_216 = arith.constant 7 : index
    %764 = memref.load %arg1[%c5_215, %c7_216] : memref<6x9xf32, #tpu.memory_space<smem>>
    %c5_217 = arith.constant 5 : index
    %c8_218 = arith.constant 8 : index
    %765 = memref.load %arg1[%c5_217, %c8_218] : memref<6x9xf32, #tpu.memory_space<smem>>
    %c0_219 = arith.constant 0 : index
    %c5_220 = arith.constant 5 : index
    %766 = memref.load %arg2[%c0_219, %c5_220] : memref<1x6xf32, #tpu.memory_space<smem>>
    %767 = vector.broadcast %757 : f32 to vector<2x8x8xf32>
    %768 = arith.mulf %767, %1 : vector<2x8x8xf32>
    %769 = vector.broadcast %758 : f32 to vector<2x8x8xf32>
    %770 = arith.mulf %769, %3 : vector<2x8x8xf32>
    %771 = arith.addf %768, %770 : vector<2x8x8xf32>
    %772 = vector.broadcast %759 : f32 to vector<2x8x8xf32>
    %773 = arith.mulf %772, %5 : vector<2x8x8xf32>
    %774 = arith.addf %771, %773 : vector<2x8x8xf32>
    %775 = vector.broadcast %760 : f32 to vector<2x8x8xf32>
    %776 = arith.mulf %775, %9 : vector<2x8x8xf32>
    %777 = arith.addf %774, %776 : vector<2x8x8xf32>
    %778 = vector.broadcast %761 : f32 to vector<2x8x8xf32>
    %779 = arith.mulf %778, %11 : vector<2x8x8xf32>
    %780 = arith.addf %777, %779 : vector<2x8x8xf32>
    %781 = vector.broadcast %762 : f32 to vector<2x8x8xf32>
    %782 = arith.mulf %781, %13 : vector<2x8x8xf32>
    %783 = arith.addf %780, %782 : vector<2x8x8xf32>
    %784 = vector.broadcast %763 : f32 to vector<2x8x8xf32>
    %785 = arith.mulf %784, %17 : vector<2x8x8xf32>
    %786 = arith.addf %783, %785 : vector<2x8x8xf32>
    %787 = vector.broadcast %764 : f32 to vector<2x8x8xf32>
    %788 = arith.mulf %787, %19 : vector<2x8x8xf32>
    %789 = arith.addf %786, %788 : vector<2x8x8xf32>
    %790 = vector.broadcast %765 : f32 to vector<2x8x8xf32>
    %791 = arith.mulf %790, %21 : vector<2x8x8xf32>
    %792 = arith.addf %789, %791 : vector<2x8x8xf32>
    %793 = vector.broadcast %757 : f32 to vector<2x8x8xf32>
    %794 = arith.mulf %793, %3 : vector<2x8x8xf32>
    %795 = vector.broadcast %758 : f32 to vector<2x8x8xf32>
    %796 = arith.mulf %795, %5 : vector<2x8x8xf32>
    %797 = arith.addf %794, %796 : vector<2x8x8xf32>
    %798 = vector.broadcast %759 : f32 to vector<2x8x8xf32>
    %799 = arith.mulf %798, %7 : vector<2x8x8xf32>
    %800 = arith.addf %797, %799 : vector<2x8x8xf32>
    %801 = vector.broadcast %760 : f32 to vector<2x8x8xf32>
    %802 = arith.mulf %801, %11 : vector<2x8x8xf32>
    %803 = arith.addf %800, %802 : vector<2x8x8xf32>
    %804 = vector.broadcast %761 : f32 to vector<2x8x8xf32>
    %805 = arith.mulf %804, %13 : vector<2x8x8xf32>
    %806 = arith.addf %803, %805 : vector<2x8x8xf32>
    %807 = vector.broadcast %762 : f32 to vector<2x8x8xf32>
    %808 = arith.mulf %807, %15 : vector<2x8x8xf32>
    %809 = arith.addf %806, %808 : vector<2x8x8xf32>
    %810 = vector.broadcast %763 : f32 to vector<2x8x8xf32>
    %811 = arith.mulf %810, %19 : vector<2x8x8xf32>
    %812 = arith.addf %809, %811 : vector<2x8x8xf32>
    %813 = vector.broadcast %764 : f32 to vector<2x8x8xf32>
    %814 = arith.mulf %813, %21 : vector<2x8x8xf32>
    %815 = arith.addf %812, %814 : vector<2x8x8xf32>
    %816 = vector.broadcast %765 : f32 to vector<2x8x8xf32>
    %817 = arith.mulf %816, %23 : vector<2x8x8xf32>
    %818 = arith.addf %815, %817 : vector<2x8x8xf32>
    %819 = arith.maximumf %792, %818 : vector<2x8x8xf32>
    %820 = vector.broadcast %757 : f32 to vector<2x8x8xf32>
    %821 = arith.mulf %820, %9 : vector<2x8x8xf32>
    %822 = vector.broadcast %758 : f32 to vector<2x8x8xf32>
    %823 = arith.mulf %822, %11 : vector<2x8x8xf32>
    %824 = arith.addf %821, %823 : vector<2x8x8xf32>
    %825 = vector.broadcast %759 : f32 to vector<2x8x8xf32>
    %826 = arith.mulf %825, %13 : vector<2x8x8xf32>
    %827 = arith.addf %824, %826 : vector<2x8x8xf32>
    %828 = vector.broadcast %760 : f32 to vector<2x8x8xf32>
    %829 = arith.mulf %828, %17 : vector<2x8x8xf32>
    %830 = arith.addf %827, %829 : vector<2x8x8xf32>
    %831 = vector.broadcast %761 : f32 to vector<2x8x8xf32>
    %832 = arith.mulf %831, %19 : vector<2x8x8xf32>
    %833 = arith.addf %830, %832 : vector<2x8x8xf32>
    %834 = vector.broadcast %762 : f32 to vector<2x8x8xf32>
    %835 = arith.mulf %834, %21 : vector<2x8x8xf32>
    %836 = arith.addf %833, %835 : vector<2x8x8xf32>
    %837 = vector.broadcast %763 : f32 to vector<2x8x8xf32>
    %838 = arith.mulf %837, %25 : vector<2x8x8xf32>
    %839 = arith.addf %836, %838 : vector<2x8x8xf32>
    %840 = vector.broadcast %764 : f32 to vector<2x8x8xf32>
    %841 = arith.mulf %840, %27 : vector<2x8x8xf32>
    %842 = arith.addf %839, %841 : vector<2x8x8xf32>
    %843 = vector.broadcast %765 : f32 to vector<2x8x8xf32>
    %844 = arith.mulf %843, %29 : vector<2x8x8xf32>
    %845 = arith.addf %842, %844 : vector<2x8x8xf32>
    %846 = arith.maximumf %819, %845 : vector<2x8x8xf32>
    %847 = vector.broadcast %757 : f32 to vector<2x8x8xf32>
    %848 = arith.mulf %847, %11 : vector<2x8x8xf32>
    %849 = vector.broadcast %758 : f32 to vector<2x8x8xf32>
    %850 = arith.mulf %849, %13 : vector<2x8x8xf32>
    %851 = arith.addf %848, %850 : vector<2x8x8xf32>
    %852 = vector.broadcast %759 : f32 to vector<2x8x8xf32>
    %853 = arith.mulf %852, %15 : vector<2x8x8xf32>
    %854 = arith.addf %851, %853 : vector<2x8x8xf32>
    %855 = vector.broadcast %760 : f32 to vector<2x8x8xf32>
    %856 = arith.mulf %855, %19 : vector<2x8x8xf32>
    %857 = arith.addf %854, %856 : vector<2x8x8xf32>
    %858 = vector.broadcast %761 : f32 to vector<2x8x8xf32>
    %859 = arith.mulf %858, %21 : vector<2x8x8xf32>
    %860 = arith.addf %857, %859 : vector<2x8x8xf32>
    %861 = vector.broadcast %762 : f32 to vector<2x8x8xf32>
    %862 = arith.mulf %861, %23 : vector<2x8x8xf32>
    %863 = arith.addf %860, %862 : vector<2x8x8xf32>
    %864 = vector.broadcast %763 : f32 to vector<2x8x8xf32>
    %865 = arith.mulf %864, %27 : vector<2x8x8xf32>
    %866 = arith.addf %863, %865 : vector<2x8x8xf32>
    %867 = vector.broadcast %764 : f32 to vector<2x8x8xf32>
    %868 = arith.mulf %867, %29 : vector<2x8x8xf32>
    %869 = arith.addf %866, %868 : vector<2x8x8xf32>
    %870 = vector.broadcast %765 : f32 to vector<2x8x8xf32>
    %871 = arith.mulf %870, %31 : vector<2x8x8xf32>
    %872 = arith.addf %869, %871 : vector<2x8x8xf32>
    %873 = arith.maximumf %846, %872 : vector<2x8x8xf32>
    %874 = vector.broadcast %766 : f32 to vector<2x8x8xf32>
    %875 = arith.addf %873, %874 : vector<2x8x8xf32>
    %cst_221 = arith.constant 0.000000e+00 : f32
    %876 = vector.broadcast %cst_221 : f32 to vector<2x8x8xf32>
    %877 = arith.maximumf %875, %876 : vector<2x8x8xf32>
    %878 = vector.extract_strided_slice %877 {offsets = [0, 0, 0], sizes = [2, 1, 8], strides = [1, 1, 1]} : vector<2x8x8xf32> to vector<2x1x8xf32>
    %879 = vector.shape_cast %878 : vector<2x1x8xf32> to vector<2x8xf32>
    %c0_222 = arith.constant 0 : index
    %c320 = arith.constant 320 : index
    %880 = vector.load %arg8[%c0_222, %c320] : memref<2x384xf32, #tpu.memory_space<vmem>>, vector<2x8xf32>
    tpu.vector_store %arg8[%c0_222, %c320], %879 {strides = array<i32>} : memref<2x384xf32, #tpu.memory_space<vmem>>, vector<2x8xf32>,
    %881 = vector.extract_strided_slice %877 {offsets = [0, 1, 0], sizes = [2, 1, 8], strides = [1, 1, 1]} : vector<2x8x8xf32> to vector<2x1x8xf32>
    %882 = vector.shape_cast %881 : vector<2x1x8xf32> to vector<2x8xf32>
    %c0_223 = arith.constant 0 : index
    %c328 = arith.constant 328 : index
    %883 = vector.load %arg8[%c0_223, %c328] : memref<2x384xf32, #tpu.memory_space<vmem>>, vector<2x8xf32>
    tpu.vector_store %arg8[%c0_223, %c328], %882 {strides = array<i32>} : memref<2x384xf32, #tpu.memory_space<vmem>>, vector<2x8xf32>,
    %884 = vector.extract_strided_slice %877 {offsets = [0, 2, 0], sizes = [2, 1, 8], strides = [1, 1, 1]} : vector<2x8x8xf32> to vector<2x1x8xf32>
    %885 = vector.shape_cast %884 : vector<2x1x8xf32> to vector<2x8xf32>
    %c0_224 = arith.constant 0 : index
    %c336 = arith.constant 336 : index
    %886 = vector.load %arg8[%c0_224, %c336] : memref<2x384xf32, #tpu.memory_space<vmem>>, vector<2x8xf32>
    tpu.vector_store %arg8[%c0_224, %c336], %885 {strides = array<i32>} : memref<2x384xf32, #tpu.memory_space<vmem>>, vector<2x8xf32>,
    %887 = vector.extract_strided_slice %877 {offsets = [0, 3, 0], sizes = [2, 1, 8], strides = [1, 1, 1]} : vector<2x8x8xf32> to vector<2x1x8xf32>
    %888 = vector.shape_cast %887 : vector<2x1x8xf32> to vector<2x8xf32>
    %c0_225 = arith.constant 0 : index
    %c344 = arith.constant 344 : index
    %889 = vector.load %arg8[%c0_225, %c344] : memref<2x384xf32, #tpu.memory_space<vmem>>, vector<2x8xf32>
    tpu.vector_store %arg8[%c0_225, %c344], %888 {strides = array<i32>} : memref<2x384xf32, #tpu.memory_space<vmem>>, vector<2x8xf32>,
    %890 = vector.extract_strided_slice %877 {offsets = [0, 4, 0], sizes = [2, 1, 8], strides = [1, 1, 1]} : vector<2x8x8xf32> to vector<2x1x8xf32>
    %891 = vector.shape_cast %890 : vector<2x1x8xf32> to vector<2x8xf32>
    %c0_226 = arith.constant 0 : index
    %c352 = arith.constant 352 : index
    %892 = vector.load %arg8[%c0_226, %c352] : memref<2x384xf32, #tpu.memory_space<vmem>>, vector<2x8xf32>
    tpu.vector_store %arg8[%c0_226, %c352], %891 {strides = array<i32>} : memref<2x384xf32, #tpu.memory_space<vmem>>, vector<2x8xf32>,
    %893 = vector.extract_strided_slice %877 {offsets = [0, 5, 0], sizes = [2, 1, 8], strides = [1, 1, 1]} : vector<2x8x8xf32> to vector<2x1x8xf32>
    %894 = vector.shape_cast %893 : vector<2x1x8xf32> to vector<2x8xf32>
    %c0_227 = arith.constant 0 : index
    %c360 = arith.constant 360 : index
    %895 = vector.load %arg8[%c0_227, %c360] : memref<2x384xf32, #tpu.memory_space<vmem>>, vector<2x8xf32>
    tpu.vector_store %arg8[%c0_227, %c360], %894 {strides = array<i32>} : memref<2x384xf32, #tpu.memory_space<vmem>>, vector<2x8xf32>,
    %896 = vector.extract_strided_slice %877 {offsets = [0, 6, 0], sizes = [2, 1, 8], strides = [1, 1, 1]} : vector<2x8x8xf32> to vector<2x1x8xf32>
    %897 = vector.shape_cast %896 : vector<2x1x8xf32> to vector<2x8xf32>
    %c0_228 = arith.constant 0 : index
    %c368 = arith.constant 368 : index
    %898 = vector.load %arg8[%c0_228, %c368] : memref<2x384xf32, #tpu.memory_space<vmem>>, vector<2x8xf32>
    tpu.vector_store %arg8[%c0_228, %c368], %897 {strides = array<i32>} : memref<2x384xf32, #tpu.memory_space<vmem>>, vector<2x8xf32>,
    %899 = vector.extract_strided_slice %877 {offsets = [0, 7, 0], sizes = [2, 1, 8], strides = [1, 1, 1]} : vector<2x8x8xf32> to vector<2x1x8xf32>
    %900 = vector.shape_cast %899 : vector<2x1x8xf32> to vector<2x8xf32>
    %c0_229 = arith.constant 0 : index
    %c376 = arith.constant 376 : index
    %901 = vector.load %arg8[%c0_229, %c376] : memref<2x384xf32, #tpu.memory_space<vmem>>, vector<2x8xf32>
    tpu.vector_store %arg8[%c0_229, %c376], %900 {strides = array<i32>} : memref<2x384xf32, #tpu.memory_space<vmem>>, vector<2x8xf32>,
    %c0_230 = arith.constant 0 : index
    %c0_231 = arith.constant 0 : index
    %902 = vector.load %arg8[%c0_230, %c0_231] : memref<2x384xf32, #tpu.memory_space<vmem>>, vector<2x384xf32>
    %903 = arith.truncf %902 : vector<2x384xf32> to vector<2x384xbf16>
    %c0_232 = arith.constant 0 : index
    %c0_233 = arith.constant 0 : index
    %904 = vector.load %arg3[%c0_232, %c0_233] : memref<384x32xbf16, #tpu.memory_space<vmem>>, vector<384x32xbf16>
    %cst_234 = arith.constant dense<0.000000e+00> : vector<2x32xf32>
    %905 = tpu.matmul %903, %904, %cst_234 {dimension_numbers = #tpu.dot_dimension_numbers<[1], [0], [0], [1], [0, 0, 1, 1], [], []>} : vector<2x384xbf16>, vector<384x32xbf16>, vector<2x32xf32> -> vector<2x32xf32>
    %c0_235 = arith.constant 0 : index
    %c0_236 = arith.constant 0 : index
    %906 = vector.load %arg4[%c0_235, %c0_236] : memref<1x32xf32, #tpu.memory_space<vmem>>, vector<1x32xf32>
    %907 = vector.broadcast %906 : vector<1x32xf32> to vector<2x32xf32>
    %908 = arith.addf %905, %907 : vector<2x32xf32>
    %cst_237 = arith.constant 0.000000e+00 : f32
    %909 = vector.broadcast %cst_237 : f32 to vector<2x32xf32>
    %910 = arith.maximumf %908, %909 : vector<2x32xf32>
    %911 = arith.truncf %910 : vector<2x32xf32> to vector<2x32xbf16>
    %c0_238 = arith.constant 0 : index
    %c0_239 = arith.constant 0 : index
    %912 = vector.load %arg5[%c0_238, %c0_239] : memref<32x10xbf16, #tpu.memory_space<vmem>>, vector<32x10xbf16>
    %cst_240 = arith.constant dense<0.000000e+00> : vector<2x10xf32>
    %913 = tpu.matmul %911, %912, %cst_240 {dimension_numbers = #tpu.dot_dimension_numbers<[1], [0], [0], [1], [0, 0, 1, 1], [], []>} : vector<2x32xbf16>, vector<32x10xbf16>, vector<2x10xf32> -> vector<2x10xf32>
    %c0_241 = arith.constant 0 : index
    %c0_242 = arith.constant 0 : index
    %914 = vector.load %arg6[%c0_241, %c0_242] : memref<1x10xf32, #tpu.memory_space<vmem>>, vector<1x10xf32>
    %915 = vector.broadcast %914 : vector<1x10xf32> to vector<2x10xf32>
    %916 = arith.addf %913, %915 : vector<2x10xf32>
    %c0_243 = arith.constant 0 : index
    %c0_244 = arith.constant 0 : index
    %917 = vector.load %arg7[%c0_243, %c0_244] : memref<2x10xf32, #tpu.memory_space<vmem>>, vector<2x10xf32>
    tpu.vector_store %arg7[%c0_243, %c0_244], %916 {strides = array<i32>} : memref<2x10xf32, #tpu.memory_space<vmem>>, vector<2x10xf32>,
    return
  }
}

</mosaic_0001>

<bundles_post_ra>
// kernel: cnn_digits_forward.1
= control target key start
LH: loop header
LB: loop body
LE: loop exit
PB: predicated region body
PF: predicated region fallthrough
CT: control target
= control target key end

     0   :  { %14 = vsyncpa [#allocation4], 0  ;;  %s6159_s0 = inlined_call_operand.vmem [shape: f32[4,2,9,9], index: 0, kind: input, shape index: {}]   ;;  %s6160_s1 = inlined_call_operand.vmem [shape: f32[6,9], index: 1, kind: input, shape index: {}]   ;;  %s6161_s2 = inlined_call_operand.vmem [shape: f32[1,6], index: 2, kind: input, shape index: {}]   ;;  %s6162_s3 = inlined_call_operand.vmem [shape: bf16[384,32], index: 3, kind: input, shape index: {}]   ;;  %s6163_s4 = inlined_call_operand.vmem [shape: f32[1,32], index: 4, kind: input, shape index: {}]   ;;  %s6164_s5 = inlined_call_operand.vmem [shape: bf16[32,10], index: 5, kind: input, shape index: {}]   ;;  %s6165_s6 = inlined_call_operand.vmem [shape: f32[1,10], index: 6, kind: input, shape index: {}]   ;;  %s6166_s7 = inlined_call_operand.hbm [shape: f32[2,10], index: 7, kind: output, shape index: {0}]   ;;  %s6167_s8 = inlined_call_operand.vmem [shape: f32[2,384], index: 8, kind: output, shape index: {1}]  }
   0x1   :  { %15 = vsyncpa [#allocation6], 0 }
   0x2   :  { %16 = vsyncpa [#allocation3], 0  ;;  %s24_s29 = sshll.u32 %s6160_s1, 4  ;;  %s33_s10 = sshll.u32 %s6161_s2, 4  ;;  %s25_s29 = int_to_ptr.vmem [resolvable:$true] %s24_s29  ;;  %s34_s10 = int_to_ptr.vmem [resolvable:$true] %s33_s10 }
   0x3   :  { %s3338_s11 = smov [#allocation2]   ;;  %s3339_s12 = smov [#allocation5]  }
   0x4   :  { %27 = dma.vmem_to_smem %s25_s29, 128, %s3338_s11, [#allocation4]  }
   0x5   :  { %36 = dma.vmem_to_smem %s34_s10, 16, %s3339_s12, [#allocation6]  }
   0x6   :  { %3332 = dma.done.wait [#allocation4], 128  }
   0x7   :  { %3333 = vsyncadd [#allocation4], 4294967168 }
   0x8   :  { %3334 = dma.done.wait [#allocation6], 16  }
   0x9   :  { %3335 = vsyncadd [#allocation6], 4294967280 }
   0xa   :  { %53 = sfence }
   0xb   :  { %s3032_s13 = sld [smem:[#allocation2 + $0x5]]  ;;  %v3411_v0 = vld [vmem:[%s6159_s0 + $0x40] sm:$0xff]  ;;  %s3340_s20 = smov 127   ;;  %v3436_v7 = vld [vmem:[%s6159_s0 + $0x50] sm:$0xff]  ;;  %vm391_vm0 = vcmask 1041409   ;;  %vm393_vm1 = vcmask 1043459  }
   0xc   :  { %s3029_s14 = sld [smem:[#allocation2 + $0x2]]  ;;  %6200 = vst [vmem:[#allocation11_spill] sm:$0xff] %v3411_v0  ;;  %v3416_v1 = vld [vmem:[%s6159_s0] sm:$0xff]  ;;  %v3443_v9 = vld [vmem:[%s6159_s0 + $0x10] sm:$0xff]  ;;  %vm395_vm2 = vcmask 1045509   ;;  %vm397_vm3 = vcmask 1047559  }
   0xd   :  { %s3035_s1 = sld [smem:[#allocation2 + $0x8]]  ;;  %v3429_v6 = vld [vmem:[%s6159_s0 + $0x1] sm:$0xff]  ;;  %6201 = vst [vmem:[#allocation12_spill] sm:$0xff] %v3436_v7  ;;  %v3455_v13 = vld [vmem:[%s6159_s0 + $0x11] sm:$0xff]  ;;  %vm400_vm4 = vcmask 58368   ;;  %s3342_s17 = smov 16  }
   0xe   :  { %s3028_s23 = sld [smem:[#allocation2 + $0x1]]  ;;  %v3471_v18 = vld [vmem:[%s6159_s0 + $0x20] sm:$0xff]  ;;  %v3482_v21 = vld [vmem:[%s6159_s0 + $0x30] sm:$0xff]  ;;  %s3343_s2 = smov 24   ;;  %vm412_vm5 = vcmask 123968   ;;  %vm430_vm6 = vcmask 189568  }
   0xf   :  { %s3031_s28 = sld [smem:[#allocation2 + $0x4]]  ;;  %6202 = vst [vmem:[#allocation13_spill] sm:$0xff] %v3471_v18  ;;  %v3496_v25 = vld [vmem:[%s6159_s0 + $0x70] sm:$0xff]  ;;  %v3501_v26 = vld [vmem:[%s6159_s0 + $0x60] sm:$0xff]  ;;  %s3344_s18 = smov 32   ;;  %vm448_vm7 = vcmask 255168  }
  0x10   :  { %6203 = vst [vmem:[#allocation14_spill] sm:$0xff] %v3482_v21  ;;  %s3034_s11 = sld [smem:[#allocation2 + $0x7]]  ;;  %v3517_v31 = vld [vmem:[%s6159_s0 + $0x21] sm:$0xff]  ;;  %v3527_v34 = vld [vmem:[%s6159_s0 + $0x31] sm:$0xff]  ;;  %s3345_s19 = smov 40   ;;  %vm466_vm8 = vcmask 320768  }
  0x11   :  { %v3418_v2 = vstv %s3032_s13  ;;  %6204 = vst [vmem:[#allocation15_spill] sm:$0xff] %v3501_v26  ;;  %v3545_v39 = vld [vmem:[%s6159_s0 + $0x41] sm:$0xff]  ;;  %v3555_v42 = vld [vmem:[%s6159_s0 + $0x51] sm:$0xff]  ;;  %s3041_s27 = sld [smem:[#allocation2 + $0x85]]  ;;  %s3346_s21 = smov 48   ;;  %vm484_vm9 = vcmask 386368  }
  0x12   :  { %v116_v3 = vmul.f32 %v3411_v0, %v3418_v2  ;;  %v3422_v4 = vstv %s3029_s14  ;;  %v117_v11 = vmul.f32 %v3436_v7, %v3418_v2  ;;  %v194_v27 = vmul.f32 %v3496_v25, %v3418_v2  ;;  %v3591_v53 = vld [vmem:[%s6159_s0 + $0x61] sm:$0xff]  ;;  %v3601_v56 = vld [vmem:[%s6159_s0 + $0x71] sm:$0xff]  ;;  %s3037_s29 = sld [smem:[#allocation2 + $0x81]]  ;;  %s3341_s14 = smov 8  }
  0x13   :  { %v93_v5 = vmul.f32 %v3422_v4, %v3416_v1  ;;  %v3438_v8 = vstv %s3035_s1  ;;  %v94_v12 = vmul.f32 %v3422_v4, %v3443_v9  ;;  %v165_v19 = vmul.f32 %v3471_v18, %v3422_v4  ;;  %s3040_s30 = sld [smem:[#allocation2 + $0x84]]  ;;  %s3347_s24 = smov 56  }
  0x14   :  { %120 = vrot.lane.b32.xlu1 %v116_v3, %s3340_s20  ;;  %v139_v10 = vmul.f32 %v3438_v8, %v3429_v6  ;;  %v140_v14 = vmul.f32 %v3438_v8, %v3455_v13  ;;  %v3461_v15 = vstv %s3028_s23  ;;  %v166_v23 = vmul.f32 %v3482_v21, %v3422_v4  ;;  %s3043_s9 = sld [smem:[#allocation2 + $0x87]] }
  0x15   :  { %97 = vrot.lane.b32.xlu0 %v93_v5, %s3340_s20  ;;  %v154_v16 = vmul.f32 %v3461_v15, %v3443_v9  ;;  %v153_v17 = vmul.f32 %v3461_v15, %v3416_v1  ;;  %v3477_v20 = vstv %s3031_s28  ;;  %v193_v28 = vmul.f32 %v3501_v26, %v3418_v2  ;;  %s3038_s28 = sld [smem:[#allocation2 + $0x82]] }
  0x16   :  { %143 = vrot.lane.b32.xlu2 %v139_v10, %s3340_s20  ;;  %v181_v22 = vmul.f32 %v3411_v0, %v3477_v20  ;;  %v182_v24 = vmul.f32 %v3436_v7, %v3477_v20  ;;  %v3508_v29 = vstv %s3034_s11  ;;  %v221_v32 = vmul.f32 %v3517_v31, %v3438_v8  ;;  %s74_s10 = sld [smem:[#allocation2]] }
  0x17   :  { %v209_v30 = vmul.f32 %v3508_v29, %v3429_v6  ;;  %v210_v33 = vmul.f32 %v3508_v29, %v3455_v13  ;;  %v222_v35 = vmul.f32 %v3527_v34, %v3438_v8  ;;  %v242_v36 = vmul.f32 %v3436_v7, %v3422_v4  ;;  %s3030_s11 = sld [smem:[#allocation2 + $0x3]] }
  0x18   :  { %v241_v37 = vmul.f32 %v3411_v0, %v3422_v4  ;;  %v261_v38 = vmul.f32 %v3418_v2, %v3429_v6  ;;  %v281_v40 = vmul.f32 %v3545_v39, %v3438_v8  ;;  %v262_v41 = vmul.f32 %v3418_v2, %v3455_v13  ;;  %s3033_s12 = sld [smem:[#allocation2 + $0x6]] }
  0x19   :  { %v282_v43 = vmul.f32 %v3555_v42, %v3438_v8  ;;  %v298_v44 = vmul.f32 %v3436_v7, %v3461_v15  ;;  %v297_v45 = vmul.f32 %v3411_v0, %v3461_v15  ;;  %v309_v46 = vmul.f32 %v3501_v26, %v3422_v4  ;;  %s83_s13 = sld [smem:[#allocation5]] }
  0x1a   :  { %v325_v47 = vmul.f32 %v3477_v20, %v3429_v6  ;;  %v310_v48 = vmul.f32 %v3496_v25, %v3422_v4  ;;  %v326_v49 = vmul.f32 %v3477_v20, %v3455_v13  ;;  %v338_v50 = vmul.f32 %v3527_v34, %v3418_v2  ;;  %s3044_s15 = sld [smem:[#allocation2 + $0x88]] }
  0x1b   :  { %v337_v51 = vmul.f32 %v3517_v31, %v3418_v2  ;;  %v353_v52 = vmul.f32 %v3545_v39, %v3508_v29  ;;  %v365_v54 = vmul.f32 %v3591_v53, %v3438_v8  ;;  %v354_v55 = vmul.f32 %v3555_v42, %v3508_v29  ;;  %s3048_s22 = sld [smem:[#allocation2 + $0x102]] }
  0x1c   :  { %122 = vrot.lane.b32.xlu1 %v117_v11, %s3340_s20  ;;  %v366_v57 = vmul.f32 %v3601_v56, %v3438_v8  ;;  %v3610_v59 = vstv %s3041_s27  ;;  %v540_v62 = vstv %s3038_s28  ;;  %v3626_v8 = vstv %s3037_s29  ;;  %s3047_s23 = sld [smem:[#allocation2 + $0x101]] }
  0x1d   :  { %99 = vrot.lane.b32.xlu0 %v94_v12, %s3340_s20  ;;  %v564_v60 = vmul.f32 %v3411_v0, %v3610_v59  ;;  %v613_v63 = vmul.f32 %v3471_v18, %v540_v62  ;;  %v541_v4 = vmul.f32 %v540_v62, %v3416_v1  ;;  %6205 = vst [vmem:[#allocation16_spill] sm:$0xff] %v3626_v8  ;;  %s3050_s25 = sld [smem:[#allocation2 + $0x104]]  ;;  %vm502_vm10 = vcmask 451968  }
  0x1e   :  { %145 = vrot.lane.b32.xlu2 %v140_v14, %s3340_s20  ;;  %v745_v10 = vmul.f32 %v3411_v0, %v3626_v8  ;;  %v542_v11 = vmul.f32 %v540_v62, %v3443_v9  ;;  %v601_v14 = vmul.f32 %v3626_v8, %v3416_v1  ;;  %s3051_s26 = sld [smem:[#allocation2 + $0x105]]  ;;  %vm520_vm11 = vcmask 517568  }
  0x1f   :  { %s3053_s27 = sld [smem:[#allocation2 + $0x107]]  ;;  %vm844_vm12 = vcmask 583168   ;;  %vm856_vm13 = vcmask 648768   ;;  %vm874_vm14 = vcmask 714368   ;;  %vm892_vm15 = vcmask 779968  }
  0x20   :  { %s3054_s28 = sld [smem:[#allocation2 + $0x108]] }
  0x21   :  { %s3036_s29 = sld [smem:[#allocation2 + $0x80]] }
  0x22   :  { %s3046_s16 = sld [smem:[#allocation2 + $0x100]] }
  0x23   :  { %s3049_s1 = sld [smem:[#allocation2 + $0x103]] }
  0x24   :  { %159 = vrot.lane.b32.xlu1 %v154_v16, %s3340_s20 }
  0x25   :  { %157 = vrot.lane.b32.xlu0 %v153_v17, %s3340_s20 }
  0x26   :  { %169 = vrot.lane.b32.xlu2 %v165_v19, %s3340_s20  ;;  %v746_v19 = vmul.f32 %v3436_v7, %v3626_v8 }
  0x2c   :  { %185 = vrot.lane.b32.xlu1 %v181_v22, %s3340_s20  ;;  %v602_v22 = vmul.f32 %v3626_v8, %v3443_v9 }
  0x2d   :  { %171 = vrot.lane.b32.xlu0 %v166_v23, %s3340_s20 }
  0x2e   :  { %187 = vrot.lane.b32.xlu2 %v182_v24, %s3340_s20  ;;  %v614_v24 = vmul.f32 %v3482_v21, %v540_v62 }
  0x34   :  { %199 = vrot.lane.b32.xlu1 %v194_v27, %s3340_s20 }
  0x35   :  { %197 = vrot.lane.b32.xlu0 %v193_v28, %s3340_s20  ;;  %v641_v28 = vmul.f32 %v3501_v26, %v3610_v59 }
  0x36   :  { %213 = vrot.lane.b32.xlu2 %v209_v30, %s3340_s20 }
  0x3c   :  { %225 = vrot.lane.b32.xlu1 %v221_v32, %s3340_s20  ;;  %v689_v32 = vmul.f32 %v3411_v0, %v540_v62 }
  0x3d   :  { %215 = vrot.lane.b32.xlu0 %v210_v33, %s3340_s20  ;;  %v3661_v33 = vstv %s3040_s30  ;;  %s5411_s30 = sld [smem:[#allocation5 + $0x4]] }
  0x3e   :  { %227 = vrot.lane.b32.xlu2 %v222_v35, %s3340_s20  ;;  %6206 = vst [vmem:[#allocation17_spill] sm:$0xff] %v3661_v33 }
  0x44   :  { %247 = vrot.lane.b32.xlu1 %v242_v36, %s3340_s20  ;;  %v629_v36 = vmul.f32 %v3411_v0, %v3661_v33 }
  0x45   :  { %245 = vrot.lane.b32.xlu0 %v241_v37, %s3340_s20 }
  0x46   :  { %265 = vrot.lane.b32.xlu2 %v261_v38, %s3340_s20  ;;  %v642_v38 = vmul.f32 %v3496_v25, %v3610_v59 }
  0x4c   :  { %285 = vrot.lane.b32.xlu1 %v281_v40, %s3340_s20 }
  0x4d   :  { %267 = vrot.lane.b32.xlu0 %v262_v41, %s3340_s20  ;;  %v690_v41 = vmul.f32 %v3436_v7, %v540_v62 }
  0x4e   :  { %287 = vrot.lane.b32.xlu2 %v282_v43, %s3340_s20 }
  0x54   :  { %303 = vrot.lane.b32.xlu1 %v298_v44, %s3340_s20  ;;  %v757_v44 = vmul.f32 %v3501_v26, %v540_v62 }
  0x55   :  { %301 = vrot.lane.b32.xlu0 %v297_v45, %s3340_s20 }
  0x56   :  { %313 = vrot.lane.b32.xlu2 %v309_v46, %s3340_s20  ;;  %v3683_v46 = vstv %s3043_s9  ;;  %s3356_s9 = smov [#allocation7]  }
  0x5c   :  { %329 = vrot.lane.b32.xlu1 %v325_v47, %s3340_s20  ;;  %v657_v47 = vmul.f32 %v3683_v46, %v3429_v6 }
  0x5d   :  { %315 = vrot.lane.b32.xlu0 %v310_v48, %s3340_s20  ;;  %v630_v48 = vmul.f32 %v3436_v7, %v3661_v33 }
  0x5e   :  { %331 = vrot.lane.b32.xlu2 %v326_v49, %s3340_s20 }
  0x64   :  { %343 = vrot.lane.b32.xlu1 %v338_v50, %s3340_s20 }
  0x65   :  { %341 = vrot.lane.b32.xlu0 %v337_v51, %s3340_s20  ;;  %v758_v51 = vmul.f32 %v3496_v25, %v540_v62  ;;  %v88_v62 = vmul.f32 %v3471_v18, %v3461_v15 }
  0x66   :  { %357 = vrot.lane.b32.xlu2 %v353_v52, %s3340_s20 }
  0x6c   :  { %369 = vrot.lane.b32.xlu1 %v365_v54, %s3340_s20  ;;  %v565_v54 = vmul.f32 %v3436_v7, %v3610_v59 }
  0x6d   :  { %359 = vrot.lane.b32.xlu0 %v354_v55, %s3340_s20 }
  0x6e   :  { %371 = vrot.lane.b32.xlu2 %v366_v57, %s3340_s20  ;;  %v709_v57 = vmul.f32 %v3610_v59, %v3429_v6 }
  0x70   :  { %v3608_v58 = vpop.permute.xlu2 %143 }
  0x74   :  { %545 = vrot.lane.b32.xlu1 %v541_v4, %s3340_s20 }
  0x75   :  { %568 = vrot.lane.b32.xlu0 %v564_v60, %s3340_s20  ;;  %v84_v60 = vstv %s74_s10  ;;  %s3039_s10 = sld [smem:[#allocation2 + $0x83]] }
  0x76   :  { %547 = vrot.lane.b32.xlu2 %v542_v11, %s3340_s20  ;;  %v235_v11 = vmul.f32 %v3411_v0, %v84_v60 }
  0x78   :  { %v3615_v61 = vpop.permute.xlu2 %145 }
  0x7c   :  { %605 = vrot.lane.b32.xlu1 %v601_v14, %s3340_s20  ;;  %v237_v14 = vmul.f32 %v3501_v26, %v3461_v15 }
  0x7d   :  { %617 = vrot.lane.b32.xlu0 %v613_v63, %s3340_s20 }
  0x7e   :  { %607 = vrot.lane.b32.xlu2 %v602_v22, %s3340_s20  ;;  %v86_v22 = vmul.f32 %v84_v60, %v3443_v9 }
  0x80   :  { %v3619_v2 = vpop.permute.xlu2 %169 }
  0x84   :  { %619 = vrot.lane.b32.xlu1 %v614_v24, %s3340_s20  ;;  %v89_v24 = vmul.f32 %v3482_v21, %v3461_v15 }
  0x85   :  { %749 = vrot.lane.b32.xlu0 %v745_v10, %s3340_s20  ;;  %v85_v10 = vmul.f32 %v84_v60, %v3416_v1 }
  0x86   :  { %v3621_v3 = vpop.permute.xlu1 %120  ;;  %693 = vrot.lane.b32.xlu2 %v689_v32, %s3340_s20  ;;  %v236_v32 = vmul.f32 %v3436_v7, %v84_v60 }
  0x87   :  { %v3624_v5 = vpop.permute.xlu0 %97 }
  0x88   :  { %v3640_v17 = vpop.permute.xlu2 %187 }
  0x8c   :  { %633 = vrot.lane.b32.xlu1 %v629_v36, %s3340_s20  ;;  %v238_v36 = vmul.f32 %v3496_v25, %v3461_v15  ;;  %v152_v15 = vmul.f32 %v3482_v21, %v84_v60 }
  0x8d   :  { %751 = vrot.lane.b32.xlu0 %v746_v19, %s3340_s20  ;;  %v773_v19 = vmul.f32 %v3661_v33, %v3429_v6 }
  0x8e   :  { %v3633_v12 = vpop.permute.xlu1 %122  ;;  %695 = vrot.lane.b32.xlu2 %v690_v41, %s3340_s20  ;;  %v710_v41 = vmul.f32 %v3610_v59, %v3455_v13 }
  0x8f   :  { %v3638_v16 = vpop.permute.xlu0 %99 }
  0x90   :  { %v3657_v30 = vpop.permute.xlu2 %213 }
  0x94   :  { %761 = vrot.lane.b32.xlu1 %v757_v44, %s3340_s20  ;;  %v3727_v44 = vstv %s3030_s11  ;;  %s3074_s11 = sld [smem:[#allocation2 + $0x208]] }
  0x95   :  { %645 = vrot.lane.b32.xlu0 %v641_v28, %s3340_s20  ;;  %v90_v28 = vadd.f32 %v88_v62, %v85_v10  ;;  %v106_v62 = vmul.f32 %v3411_v0, %v3727_v44 }
  0x96   :  { %v3648_v23 = vpop.permute.xlu1 %159  ;;  %635 = vrot.lane.b32.xlu2 %v630_v48, %s3340_s20  ;;  %v239_v48 = vadd.f32 %v237_v14, %v235_v11  ;;  %v253_v11 = vmul.f32 %v3727_v44, %v3429_v6 }
  0x97   :  { %v3652_v27 = vpop.permute.xlu0 %157  ;;  %v103_v10 = vadd.f32 %v3624_v5, %v90_v28  ;;  %v164_v5 = vadd.f32 %v3648_v23, %v152_v15  ;;  %v257_v23 = vmul.f32 %v3517_v31, %v3477_v20 }
  0x98   :  { %v3674_v40 = vpop.permute.xlu2 %227 }
  0x99   :  { %v108_v28 = vadd.f32 %v106_v62, %v103_v10  ;;  %v295_v62 = vmul.f32 %v3501_v26, %v84_v60  ;;  %v3760_v10 = vstv %s3033_s12  ;;  %s4157_s12 = sld [smem:[#allocation2 + $0x182]] }
  0x9a   :  { %v129_v0 = vmul.f32 %v3760_v10, %v3429_v6 }
  0x9c   :  { %763 = vrot.lane.b32.xlu1 %v758_v51, %s3340_s20 }
  0x9d   :  { %647 = vrot.lane.b32.xlu0 %v642_v38, %s3340_s20 }
  0x9e   :  { %v3663_v35 = vpop.permute.xlu1 %185  ;;  %570 = vrot.lane.b32.xlu2 %v565_v54, %s3340_s20  ;;  %v91_v54 = vadd.f32 %v89_v24, %v86_v22  ;;  %v774_v22 = vmul.f32 %v3661_v33, %v3455_v13  ;;  %v107_v24 = vmul.f32 %v3436_v7, %v3727_v44  ;;  %v112_v33 = vmul.f32 %v3496_v25, %v3477_v20 }
  0x9f   :  { %v3668_v37 = vpop.permute.xlu0 %171 }
  0xa0   :  { %v3691_v49 = vpop.permute.xlu2 %265  ;;  %v104_v21 = vadd.f32 %v3638_v16, %v91_v54  ;;  %v176_v16 = vadd.f32 %v3668_v37, %v164_v5 }
  0xa4   :  { %713 = vrot.lane.b32.xlu1 %v709_v57, %s3340_s20 }
  0xa5   :  { %661 = vrot.lane.b32.xlu0 %v657_v47, %s3340_s20  ;;  %v151_v47 = vmul.f32 %v3471_v18, %v84_v60 }
  0xa6   :  { %v3677_v43 = vpop.permute.xlu1 %199  ;;  %777 = vrot.lane.b32.xlu2 %v773_v19, %s3340_s20  ;;  %v240_v19 = vadd.f32 %v238_v36, %v236_v32  ;;  %v254_v32 = vmul.f32 %v3727_v44, %v3455_v13 }
  0xa7   :  { %v3681_v45 = vpop.permute.xlu0 %197  ;;  %v163_v8 = vadd.f32 %v3652_v27, %v151_v47  ;;  %v177_v27 = vmul.f32 %v3501_v26, %v3727_v44 }
  0xa8   :  { %v3705_v4 = vpop.permute.xlu2 %287 }
  0xac   :  { %715 = vrot.lane.b32.xlu1 %v710_v41, %s3340_s20  ;;  %v111_v41 = vmul.f32 %v3501_v26, %v3477_v20  ;;  %v658_v26 = vmul.f32 %v3683_v46, %v3455_v13 }
  0xae   :  { %v3693_v50 = vpop.permute.xlu1 %225  ;;  %779 = vrot.lane.b32.xlu2 %v774_v22, %s3340_s20 }
  0xaf   :  { %v3697_v52 = vpop.permute.xlu0 %215 }
  0xb0   :  { %v314_v57 = vpop.permute.xlu2 %313 }
  0xb6   :  { %v248_v55 = vpop.permute.xlu1 %247  ;;  %663 = vrot.lane.b32.xlu2 %v658_v26, %s3340_s20  ;;  %v134_v26 = vmul.f32 %v3517_v31, %v3508_v29 }
  0xb7   :  { %v246_v63 = vpop.permute.xlu0 %245  ;;  %v252_v36 = vadd.f32 %v248_v55, %v240_v19  ;;  %v109_v55 = vadd.f32 %v107_v24, %v104_v21  ;;  %v113_v19 = vadd.f32 %v111_v41, %v108_v28 }
  0xb8   :  { %v251_v14 = vadd.f32 %v246_v63, %v239_v48  ;;  %v178_v63 = vmul.f32 %v3496_v25, %v3727_v44  ;;  %v175_v48 = vadd.f32 %v3619_v2, %v163_v8  ;;  %v258_v2 = vmul.f32 %v3527_v34, %v3477_v20  ;;  %v332_v22 = vpop.permute.xlu2 %331 }
  0xb9   :  { %v256_v7 = vadd.f32 %v254_v32, %v252_v36  ;;  %v296_v8 = vmul.f32 %v3496_v25, %v84_v60  ;;  %v114_v18 = vadd.f32 %v112_v33, %v109_v55  ;;  %v126_v41 = vadd.f32 %v3621_v3, %v113_v19 }
  0xba   :  { %v255_v54 = vadd.f32 %v253_v11, %v251_v14  ;;  %v179_v37 = vadd.f32 %v177_v27, %v175_v48  ;;  %v180_v11 = vadd.f32 %v178_v63, %v176_v16  ;;  %v205_v20 = vmul.f32 %v3517_v31, %v3760_v10 }
  0xbb   :  { %v260_v60 = vadd.f32 %v258_v2, %v256_v7  ;;  %v273_v32 = vmul.f32 %v3545_v39, %v3760_v10  ;;  %v321_v3 = vmul.f32 %v3517_v31, %v3727_v44  ;;  %v322_v7 = vmul.f32 %v3527_v34, %v3727_v44 }
  0xbc   :  { %v259_v14 = vadd.f32 %v257_v23, %v255_v54  ;;  %v191_v21 = vadd.f32 %v3663_v35, %v179_v37  ;;  %v192_v28 = vadd.f32 %v3640_v17, %v180_v11  ;;  %v130_v17 = vmul.f32 %v3760_v10, %v3455_v13 }
  0xbd   :  { %v131_v54 = vadd.f32 %v129_v0, %v126_v41  ;;  %v349_v0 = vmul.f32 %v3591_v53, %v3760_v10 }
  0xbe   :  { %v3722_v38 = vpop.permute.xlu1 %285  ;;  %v203_v63 = vadd.f32 %v3681_v45, %v191_v21  ;;  %v271_v33 = vadd.f32 %v3691_v49, %v259_v14  ;;  %v127_v45 = vadd.f32 %v3633_v12, %v114_v18  ;;  %v206_v49 = vmul.f32 %v3527_v34, %v3760_v10 }
  0xbf   :  { %v3730_v51 = vpop.permute.xlu0 %267  ;;  %v135_v18 = vmul.f32 %v3527_v34, %v3508_v29  ;;  %v136_v11 = vadd.f32 %v134_v26, %v131_v54 }
  0xc0   :  { %v272_v16 = vadd.f32 %v3730_v51, %v260_v60  ;;  %v207_v44 = vadd.f32 %v205_v20, %v203_v63  ;;  %v275_v23 = vadd.f32 %v273_v32, %v271_v33  ;;  %v132_v12 = vadd.f32 %v130_v17, %v127_v45  ;;  %v358_v19 = vpop.permute.xlu2 %357 }
  0xc1   :  { %v350_v32 = vmul.f32 %v3601_v56, %v3760_v10  ;;  %v149_v33 = vadd.f32 %v3608_v58, %v136_v11 }
  0xc2   :  { %v219_v14 = vadd.f32 %v3657_v30, %v207_v44 }
  0xc6   :  { %v304_v47 = vpop.permute.xlu1 %303 }
  0xc7   :  { %v302_v15 = vpop.permute.xlu0 %301  ;;  %v308_v24 = vadd.f32 %v304_v47, %v296_v8  ;;  %v204_v47 = vadd.f32 %v3677_v43, %v192_v28  ;;  %v278_v43 = vmul.f32 %v3601_v56, %v3508_v29 }
  0xc8   :  { %v307_v5 = vadd.f32 %v302_v15, %v295_v62  ;;  %v277_v15 = vmul.f32 %v3591_v53, %v3508_v29  ;;  %v231_v29 = vadd.f32 %v3693_v50, %v219_v14  ;;  %v372_v45 = vpop.permute.xlu2 %371 }
  0xc9   :  { %v208_v2 = vadd.f32 %v206_v49, %v204_v47 }
  0xca   :  { %v319_v36 = vadd.f32 %v314_v57, %v307_v5  ;;  %v274_v57 = vmul.f32 %v3555_v42, %v3760_v10  ;;  %v279_v5 = vadd.f32 %v277_v15, %v275_v23  ;;  %v379_v10 = vstv %s83_s13  ;;  %s4162_s13 = sld [smem:[#allocation2 + $0x181]] }
  0xcb   :  { %v220_v41 = vadd.f32 %v3697_v52, %v208_v2 }
  0xcc   :  { %v323_v62 = vadd.f32 %v321_v3, %v319_v36  ;;  %v276_v8 = vadd.f32 %v274_v57, %v272_v16  ;;  %v291_v30 = vadd.f32 %v3722_v38, %v279_v5  ;;  %v233_v36 = vmax.f32 %v149_v33, %v231_v29 }
  0xce   :  { %v330_v27 = vpop.permute.xlu1 %329  ;;  %v280_v28 = vadd.f32 %v278_v43, %v276_v8 }
  0xcf   :  { %v316_v35 = vpop.permute.xlu0 %315  ;;  %v335_v37 = vadd.f32 %v330_v27, %v323_v62 }
  0xd0   :  { %v320_v48 = vadd.f32 %v316_v35, %v308_v24  ;;  %v137_v24 = vadd.f32 %v135_v18, %v132_v12  ;;  %v232_v35 = vadd.f32 %v3674_v40, %v220_v41  ;;  %v292_v3 = vadd.f32 %v3705_v4, %v280_v28 }
  0xd2   :  { %v324_v55 = vadd.f32 %v322_v7, %v320_v48  ;;  %v293_v7 = vmax.f32 %v233_v36, %v291_v30 }
  0xd4   :  { %v336_v20 = vadd.f32 %v332_v22, %v324_v55  ;;  %v150_v22 = vadd.f32 %v3615_v61, %v137_v24 }
  0xd6   :  { %v344_v51 = vpop.permute.xlu1 %343  ;;  %v234_v47 = vmax.f32 %v150_v22, %v232_v35  ;;  %v3866_v35 = vpop.permute.xlu2 %547 }
  0xd7   :  { %v342_v21 = vpop.permute.xlu0 %341  ;;  %v348_v63 = vadd.f32 %v344_v51, %v336_v20  ;;  %v785_v51 = vmul.f32 %v3517_v31, %v3610_v59 }
  0xd8   :  { %v347_v60 = vadd.f32 %v342_v21, %v335_v37  ;;  %v294_v57 = vmax.f32 %v234_v47, %v292_v3  ;;  %v786_v3 = vmul.f32 %v3527_v34, %v3610_v59 }
  0xd9   :  { %v352_v50 = vadd.f32 %v350_v32, %v348_v63 }
  0xda   :  { %v351_v27 = vadd.f32 %v349_v0, %v347_v60  ;;  %v3850_v60 = vstv %s3044_s15  ;;  %s3064_s15 = sld [smem:[#allocation2 + $0x188]] }
  0xdb   :  { %v669_v28 = vmul.f32 %v3517_v31, %v3850_v60  ;;  %v587_v32 = vmul.f32 %v3850_v60, %v3429_v6 }
  0xdc   :  { %v363_v52 = vadd.f32 %v358_v19, %v351_v27 }
  0xde   :  { %v370_v48 = vpop.permute.xlu1 %369  ;;  %v3882_v47 = vpop.permute.xlu2 %607 }
  0xdf   :  { %v375_v26 = vadd.f32 %v370_v48, %v363_v52  ;;  %v360_v17 = vpop.permute.xlu0 %359  ;;  %v588_v52 = vmul.f32 %v3850_v60, %v3455_v13 }
  0xe0   :  { %v364_v49 = vadd.f32 %v360_v17, %v352_v50 }
  0xe1   :  { %v377_v58 = vmax.f32 %v293_v7, %v375_v26 }
  0xe2   :  { %v376_v38 = vadd.f32 %v372_v45, %v364_v49 }
  0xe3   :  { %v380_v16 = vadd.f32 %v379_v10, %v377_v58 }
  0xe4   :  { %v378_v40 = vmax.f32 %v294_v57, %v376_v38  ;;  %v670_v38 = vmul.f32 %v3527_v34, %v3850_v60 }
  0xe5   :  { %v3814_v54 = vmax.f32 %v380_v16, 0.0 }
  0xe6   :  { %v381_v44 = vadd.f32 %v379_v10, %v378_v40  ;;  %v801_v10 = vmul.f32 %v3545_v39, %v3683_v46 }
  0xe7   :  { %414 = vst.sshfl [vmem:[#allocation1] sm:$0xff pattern:$0x73625140] %v3814_v54  ;;  %v402_v61 = vrot.slane %v3814_v54, 1 }
  0xe8   :  { %v3818_v4 = vmax.f32 %v381_v44, 0.0 }
  0xea   :  { %417 = vst.sshfl [vmem:[#allocation1 + $0x20] sm:$0xff pattern:$0x73625140] %v3818_v4  ;;  %v405_v23 = vsel %vm391_vm0, %v3818_v4, %v402_v61  ;;  %v390_v15 = vrot.slane %v3818_v4, 7 }
  0xeb   :  { %v406_v62 = vsel %vm393_vm1, %v3818_v4, %v405_v23  ;;  %v3897_v23 = vpop.permute.xlu2 %693 }
  0xec   :  { %v407_v55 = vsel %vm395_vm2, %v3818_v4, %v406_v62  ;;  %v392_v18 = vsel %vm391_vm0, %v390_v15, %v3814_v54  ;;  %v729_v62 = vmul.f32 %v3545_v39, %v3850_v60 }
  0xed   :  { %v408_v12 = vsel %vm397_vm3, %v3818_v4, %v407_v55  ;;  %v394_v43 = vsel %vm393_vm1, %v390_v15, %v392_v18  ;;  %v730_v55 = vmul.f32 %v3555_v42, %v3850_v60 }
  0xee   :  { %v416_v19 = vld [vmem:[#allocation1 + $0x1] ss:$4 sm:$0xff]  ;;  %409 = vrot.lane.b32.xlu0 %v408_v12, %s3341_s14  ;;  %v396_v2 = vsel %vm395_vm2, %v390_v15, %v394_v43 }
  0xef   :  { %432 = vst.sshfl [vmem:[#allocation1] sm:$0xff pattern:$0x73625140] %v3814_v54  ;;  %v398_v8 = vsel %vm397_vm3, %v390_v15, %v396_v2 }
  0xf0   :  { %401 = vst.msk [vmem:[%s6167_s8] sm:$0x3] %vm400_vm4, %v398_v8  ;;  %v3911_v8 = vpop.permute.xlu0 %568 }
  0xf1   :  { %v419_v37 = vld [vmem:[#allocation1 + $0x21] ss:$4 sm:$0xff] }
  0xf2   :  { %435 = vst.sshfl [vmem:[#allocation1 + $0x20] sm:$0xff pattern:$0x73625140] %v3818_v4  ;;  %v422_v0 = vrot.slane %v419_v37, 7 }
  0xf4   :  { %v423_v11 = vsel %vm391_vm0, %v422_v0, %v416_v19 }
  0xf5   :  { %v424_v14 = vsel %vm393_vm1, %v422_v0, %v423_v11  ;;  %v802_v11 = vmul.f32 %v3555_v42, %v3683_v46 }
  0xf6   :  { %v434_v5 = vld [vmem:[#allocation1 + $0x1] ss:$4 sm:$0xff]  ;;  %789 = vrot.lane.b32.xlu0 %v785_v51, %s3340_s20  ;;  %v425_v21 = vsel %vm395_vm2, %v422_v0, %v424_v14  ;;  %v3914_v51 = vpop.permute.xlu1 %545 }
  0xf7   :  { %450 = vst.sshfl [vmem:[#allocation1] sm:$0xff pattern:$0x73625140] %v3814_v54  ;;  %v426_v41 = vsel %vm397_vm3, %v422_v0, %v425_v21  ;;  %v438_v20 = vrot.slane %v434_v5, 1  ;;  %v813_v0 = vmul.f32 %v3591_v53, %v3850_v60  ;;  %v3921_v5 = vpop.permute.xlu2 %695 }
  0xf8   :  { %427 = vrot.lane.b32.xlu1 %v426_v41, %s3342_s17  ;;  %v984_v41 = vstv %s3048_s22  ;;  %s4547_s22 = sld [smem:[#allocation2 + $0x106]] }
  0xf9   :  { %v437_v24 = vld [vmem:[#allocation1 + $0x21] ss:$4 sm:$0xff] }
  0xfa   :  { %453 = vst.sshfl [vmem:[#allocation1 + $0x20] sm:$0xff pattern:$0x73625140] %v3818_v4  ;;  %v441_v29 = vsel %vm391_vm0, %v437_v24, %v438_v20  ;;  %v3927_v20 = vstv %s3047_s23  ;;  %s4565_s23 = sld [smem:[#allocation2 + $0x202]] }
  0xfb   :  { %v442_v63 = vsel %vm393_vm1, %v437_v24, %v441_v29  ;;  %v1045_v42 = vmul.f32 %v3927_v20, %v3416_v1  ;;  %v3932_v29 = vpop.permute.xlu0 %617 }
  0xfc   :  { %v443_v27 = vsel %vm395_vm2, %v437_v24, %v442_v63 }
  0xfd   :  { %v444_v33 = vsel %vm397_vm3, %v437_v24, %v443_v27  ;;  %v985_v24 = vmul.f32 %v984_v41, %v3416_v1  ;;  %v1046_v1 = vmul.f32 %v3927_v20, %v3443_v9 }
  0xfe   :  { %v452_v30 = vld [vmem:[#allocation1 + $0x2] ss:$4 sm:$0xff]  ;;  %445 = vrot.lane.b32.xlu2 %v444_v33, %s3343_s2  ;;  %673 = vrot.lane.b32.xlu0 %v669_v28, %s3340_s20  ;;  %v814_v28 = vmul.f32 %v3601_v56, %v3850_v60  ;;  %v3936_v63 = vpop.permute.xlu1 %605 }
  0xff   :  { %468 = vst.sshfl [vmem:[#allocation1] sm:$0xff pattern:$0x73625140] %v3814_v54  ;;  %v3938_v27 = vpop.permute.xlu2 %635  ;;  %v6207_v33 = vld [vmem:[#allocation13_spill] sm:$0xff] }
 0x100   :  { %591 = vrot.lane.b32.xlu1 %v587_v32, %s3340_s20  ;;  %v986_v32 = vmul.f32 %v984_v41, %v3443_v9 }
 0x101   :  { %v455_v36 = vld [vmem:[#allocation1 + $0x22] ss:$4 sm:$0xff] }
 0x102   :  { %471 = vst.sshfl [vmem:[#allocation1 + $0x20] sm:$0xff pattern:$0x73625140] %v3818_v4  ;;  %v458_v22 = vrot.slane %v455_v36, 7 }
 0x103   :  { %v3947_v36 = vpop.permute.xlu0 %749 }
 0x104   :  { %v459_v48 = vsel %vm391_vm0, %v458_v22, %v452_v30  ;;  %v1057_v30 = vmul.f32 %v6207_v33, %v984_v41 }
 0x105   :  { %v460_v50 = vsel %vm393_vm1, %v458_v22, %v459_v48  ;;  %v6209_v48 = vld [vmem:[#allocation14_spill] sm:$0xff] }
 0x106   :  { %v470_v7 = vld [vmem:[#allocation1 + $0x2] ss:$4 sm:$0xff]  ;;  %593 = vrot.lane.b32.xlu2 %v588_v52, %s3340_s20  ;;  %v461_v26 = vsel %vm395_vm2, %v458_v22, %v460_v50  ;;  %v3949_v56 = vpop.permute.xlu1 %619  ;;  %v1058_v9 = vmul.f32 %v6209_v48, %v984_v41 }
 0x107   :  { %486 = vst.sshfl [vmem:[#allocation1] sm:$0xff pattern:$0x73625140] %v3814_v54  ;;  %v462_v17 = vsel %vm397_vm3, %v458_v22, %v461_v26  ;;  %v474_v45 = vrot.slane %v470_v7, 1  ;;  %v3954_v60 = vpop.permute.xlu2 %570  ;;  %v6208_v52 = vld [vmem:[#allocation11_spill] sm:$0xff]  ;;  %v3967_v26 = vstv %s3050_s25  ;;  %s3042_s25 = sld [smem:[#allocation2 + $0x86]] }
 0x108   :  { %791 = vrot.lane.b32.xlu1 %v786_v3, %s3340_s20  ;;  %463 = vrot.lane.b32.xlu0 %v462_v17, %s3344_s18  ;;  %v1189_v22 = vmul.f32 %v6208_v52, %v3927_v20  ;;  %v1133_v3 = vmul.f32 %v6208_v52, %v984_v41 }
 0x109   :  { %v473_v59 = vld [vmem:[#allocation1 + $0x22] ss:$4 sm:$0xff] }
 0x10a   :  { %489 = vst.sshfl [vmem:[#allocation1 + $0x20] sm:$0xff pattern:$0x73625140] %v3818_v4  ;;  %v477_v49 = vsel %vm391_vm0, %v473_v59, %v474_v45  ;;  %v6210_v45 = vld [vmem:[#allocation12_spill] sm:$0xff] }
 0x10b   :  { %v478_v58 = vsel %vm393_vm1, %v473_v59, %v477_v49  ;;  %v3962_v50 = vpop.permute.xlu0 %751  ;;  %v1073_v49 = vmul.f32 %v6208_v52, %v3967_v26 }
 0x10c   :  { %v479_v57 = vsel %vm395_vm2, %v473_v59, %v478_v58  ;;  %v3979_v58 = vstv %s3051_s26  ;;  %s4286_s26 = sld [smem:[#allocation5 + $0x1]] }
 0x10d   :  { %v480_v40 = vsel %vm397_vm3, %v473_v59, %v479_v57  ;;  %v1190_v59 = vmul.f32 %v6210_v45, %v3927_v20 }
 0x10e   :  { %v488_v16 = vld [vmem:[#allocation1 + $0x3] ss:$4 sm:$0xff]  ;;  %805 = vrot.lane.b32.xlu2 %v801_v10, %s3340_s20  ;;  %v3965_v7 = vpop.permute.xlu1 %633  ;;  %v1134_v10 = vmul.f32 %v6210_v45, %v984_v41 }
 0x10f   :  { %504 = vst.sshfl [vmem:[#allocation1] sm:$0xff pattern:$0x73625140] %v3814_v54  ;;  %v3969_v17 = vpop.permute.xlu2 %777 }
 0x110   :  { %481 = vrot.lane.b32.xlu1 %v480_v40, %s3345_s19  ;;  %675 = vrot.lane.b32.xlu0 %v670_v38, %s3340_s20  ;;  %v1008_v40 = vmul.f32 %v6208_v52, %v3979_v58 }
 0x111   :  { %v491_v44 = vld [vmem:[#allocation1 + $0x23] ss:$4 sm:$0xff] }
 0x112   :  { %507 = vst.sshfl [vmem:[#allocation1 + $0x20] sm:$0xff pattern:$0x73625140] %v3818_v4  ;;  %v494_v61 = vrot.slane %v491_v44, 7  ;;  %v6211_v44 = vld [vmem:[#allocation15_spill] sm:$0xff] }
 0x113   :  { %v3981_v57 = vpop.permute.xlu0 %645 }
 0x114   :  { %v495_v15 = vsel %vm391_vm0, %v494_v61, %v488_v16  ;;  %v1074_v16 = vmul.f32 %v6210_v45, %v3967_v26 }
 0x115   :  { %v496_v54 = vsel %vm393_vm1, %v494_v61, %v495_v15 }
 0x116   :  { %v506_v18 = vld [vmem:[#allocation1 + $0x3] ss:$4 sm:$0xff]  ;;  %v497_v12 = vsel %vm395_vm2, %v494_v61, %v496_v54  ;;  %v3983_v38 = vpop.permute.xlu1 %761  ;;  %v1202_v54 = vmul.f32 %v3496_v25, %v984_v41 }
 0x117   :  { %v498_v43 = vsel %vm397_vm3, %v494_v61, %v497_v12  ;;  %v510_v19 = vrot.slane %v506_v18, 1  ;;  %v1201_v61 = vmul.f32 %v6211_v44, %v984_v41  ;;  %v3990_v15 = vpop.permute.xlu2 %779  ;;  %v1085_v18 = vmul.f32 %v6211_v44, %v3979_v58 }
 0x118   :  { %499 = vrot.lane.b32.xlu2 %v498_v43, %s3346_s21  ;;  %733 = vrot.lane.b32.xlu1 %v729_v62, %s3340_s20  ;;  %v1009_v62 = vmul.f32 %v6210_v45, %v3979_v58 }
 0x119   :  { %v509_v4 = vld [vmem:[#allocation1 + $0x23] ss:$4 sm:$0xff]  ;;  %735 = vrot.lane.b32.xlu0 %v730_v55, %s3340_s20 }
 0x11a   :  { %v513_v2 = vsel %vm391_vm0, %v509_v4, %v510_v19  ;;  %v1217_v19 = vmul.f32 %v3967_v26, %v3429_v6 }
 0x11b   :  { %v514_v37 = vsel %vm393_vm1, %v509_v4, %v513_v2  ;;  %v3998_v55 = vpop.permute.xlu0 %647  ;;  %v1086_v2 = vmul.f32 %v3496_v25, %v3979_v58  ;;  %v1154_v25 = vmul.f32 %v3979_v58, %v3455_v13 }
 0x11c   :  { %v515_v14 = vsel %vm395_vm2, %v509_v4, %v514_v37 }
 0x11d   :  { %v516_v21 = vsel %vm397_vm3, %v509_v4, %v515_v14  ;;  %v1153_v4 = vmul.f32 %v3979_v58, %v3429_v6  ;;  %v4022_v14 = vstv %s3053_s27  ;;  %s3070_s27 = sld [smem:[#allocation2 + $0x204]] }
 0x11e   :  { %v4002_v12 = vpop.permute.xlu1 %763  ;;  %v1101_v41 = vmul.f32 %v4022_v14, %v3429_v6 }
 0x11f   :  { %v4004_v43 = vpop.permute.xlu2 %663 }
 0x120   :  { %817 = vrot.lane.b32.xlu2 %v813_v0, %s3340_s20  ;;  %807 = vrot.lane.b32.xlu1 %v802_v11, %s3340_s20 }
 0x121   :  { %517 = vrot.lane.b32.xlu0 %v516_v21, %s3347_s24  ;;  %v1218_v21 = vmul.f32 %v3967_v26, %v3455_v13 }
 0x123   :  { %v4015_v37 = vpop.permute.xlu0 %661 }
 0x126   :  { %v4017_v0 = vpop.permute.xlu1 %713 }
 0x128   :  { %989 = vrot.lane.b32.xlu2 %v985_v24, %s3340_s20  ;;  %1049 = vrot.lane.b32.xlu1 %v1045_v42, %s3340_s20 }
 0x129   :  { %819 = vrot.lane.b32.xlu0 %v814_v28, %s3340_s20  ;;  %v4039_v28 = vstv %s3054_s28  ;;  %s3071_s28 = sld [smem:[#allocation2 + $0x205]] }
 0x12a   :  { %v1031_v52 = vmul.f32 %v4039_v28, %v3429_v6 }
 0x130   :  { %991 = vrot.lane.b32.xlu2 %v986_v32, %s3340_s20  ;;  %1061 = vrot.lane.b32.xlu1 %v1057_v30, %s3340_s20  ;;  %v4041_v32 = vpop.permute.xlu1 %715  ;;  %v4043_v30 = vstv %s3036_s29  ;;  %s3060_s29 = sld [smem:[#allocation2 + $0x184]] }
 0x131   :  { %1051 = vrot.lane.b32.xlu0 %v1046_v1, %s3340_s20  ;;  %v1102_v1 = vmul.f32 %v4022_v14, %v3455_v13 }
 0x138   :  { %1193 = vrot.lane.b32.xlu2 %v1189_v22, %s3340_s20  ;;  %1137 = vrot.lane.b32.xlu1 %v1133_v3, %s3340_s20  ;;  %v1229_v22 = vmul.f32 %v3517_v31, %v3979_v58  ;;  %v6212_v3 = vld [vmem:[#allocation16_spill] sm:$0xff] }
 0x139   :  { %1063 = vrot.lane.b32.xlu0 %v1058_v9, %s3340_s20  ;;  %v536_v48 = vmul.f32 %v6207_v33, %v6212_v3  ;;  %v4056_v9 = vld [vmem:[%s6159_s0] sm:$0xff] }
 0x13a   :  { %v533_v45 = vmul.f32 %v4056_v9, %v4043_v30 }
 0x140   :  { %1195 = vrot.lane.b32.xlu2 %v1190_v59, %s3340_s20  ;;  %1139 = vrot.lane.b32.xlu1 %v1134_v10, %s3340_s20 }
 0x141   :  { %1077 = vrot.lane.b32.xlu0 %v1073_v49, %s3340_s20  ;;  %v538_v49 = vadd.f32 %v536_v48, %v533_v45  ;;  %v1173_v48 = vmul.f32 %v3545_v39, %v4039_v28  ;;  %v4122_v45 = vld [vmem:[%s6159_s0 + $0x1] sm:$0xff] }
 0x148   :  { %1079 = vrot.lane.b32.xlu2 %v1074_v16, %s3340_s20  ;;  %1012 = vrot.lane.b32.xlu1 %v1008_v40, %s3340_s20  ;;  %v599_v16 = vmul.f32 %v6207_v33, %v4043_v30  ;;  %v4073_v40 = vstv %s3039_s10  ;;  %v4086_v33 = vld [vmem:[%s6159_s0 + $0x40] sm:$0xff]  ;;  %s3061_s10 = sld [smem:[#allocation2 + $0x185]] }
 0x149   :  { %1205 = vrot.lane.b32.xlu0 %v1201_v61, %s3340_s20  ;;  %v1032_v61 = vmul.f32 %v4039_v28, %v3455_v13  ;;  %v1113_v13 = vmul.f32 %v3517_v31, %v4039_v28 }
 0x150   :  { %1014 = vrot.lane.b32.xlu2 %v1009_v62, %s3340_s20  ;;  %1207 = vrot.lane.b32.xlu1 %v1202_v54, %s3340_s20  ;;  %v1230_v62 = vmul.f32 %v3527_v34, %v3979_v58  ;;  %v683_v54 = vmul.f32 %v4086_v33, %v4043_v30  ;;  %v554_v58 = vmul.f32 %v4086_v33, %v4073_v40 }
 0x151   :  { %1089 = vrot.lane.b32.xlu0 %v1085_v18, %s3340_s20  ;;  %v685_v18 = vmul.f32 %v6211_v44, %v6212_v3 }
 0x158   :  { %1221 = vrot.lane.b32.xlu2 %v1217_v19, %s3340_s20  ;;  %v446_v11 = vpop.permute.xlu2 %445  ;;  %1157 = vrot.lane.b32.xlu1 %v1153_v4, %s3340_s20  ;;  %v551_v19 = vadd.f32 %v3914_v51, %v538_v49  ;;  %v611_v4 = vadd.f32 %v3936_v63, %v599_v16  ;;  %v4141_v16 = vld [vmem:[%s6159_s0 + $0x10] sm:$0xff] }
 0x159   :  { %1091 = vrot.lane.b32.xlu0 %v1086_v2, %s3340_s20  ;;  %v743_v2 = vmul.f32 %v6211_v44, %v4043_v30 }
 0x15a   :  { %v623_v63 = vadd.f32 %v3932_v29, %v611_v4  ;;  %v701_v29 = vmul.f32 %v4122_v45, %v4073_v40 }
 0x160   :  { %1223 = vrot.lane.b32.xlu2 %v1218_v21, %s3340_s20  ;;  %v4031_v24 = vpop.permute.xlu2 %593  ;;  %1159 = vrot.lane.b32.xlu1 %v1154_v25, %s3340_s20  ;;  %v410_v42 = vpop.permute.xlu0 %409  ;;  %v6213_v25 = vld [vmem:[#allocation17_spill] sm:$0xff] }
 0x161   :  { %1105 = vrot.lane.b32.xlu0 %v1101_v41, %s3340_s20  ;;  %413 = vst.msk [vmem:[%s6167_s8] sm:$0x3] %vm412_vm5, %v410_v42  ;;  %v559_v51 = vmul.f32 %v6211_v44, %v6213_v25  ;;  %v556_v41 = vadd.f32 %v554_v58, %v551_v19  ;;  %v625_v42 = vmul.f32 %v6211_v44, %v4073_v40 }
 0x168   :  { %1107 = vrot.lane.b32.xlu2 %v1102_v1, %s3340_s20  ;;  %1035 = vrot.lane.b32.xlu1 %v1031_v52, %s3340_s20  ;;  %v4062_v59 = vpop.permute.xlu2 %805  ;;  %v4065_v6 = vpop.permute.xlu0 %789  ;;  %v755_v52 = vadd.f32 %v3947_v36, %v743_v2  ;;  %v4132_v36 = vld [vmem:[%s6159_s0 + $0x30] sm:$0xff] }
 0x169   :  { %1233 = vrot.lane.b32.xlu0 %v1229_v22, %s3340_s20  ;;  %v1245_v22 = vmul.f32 %v3545_v39, %v4022_v14  ;;  %v600_v39 = vmul.f32 %v4132_v36, %v4043_v30  ;;  %v537_v49 = vmul.f32 %v4132_v36, %v6212_v3 }
 0x16a   :  { %v428_v10 = vpop.permute.xlu1 %427 }
 0x16b   :  { %431 = vst.msk [vmem:[%s6167_s8] sm:$0x3] %vm430_vm6, %v428_v10  ;;  %v1114_v10 = vmul.f32 %v3527_v34, %v4039_v28  ;;  %v561_v34 = vadd.f32 %v559_v51, %v556_v41  ;;  %v612_v4 = vadd.f32 %v3882_v47, %v600_v39 }
 0x16c   :  { %449 = vst.msk [vmem:[%s6167_s8] sm:$0x3] %vm448_vm7, %v446_v11  ;;  %v687_v11 = vadd.f32 %v685_v18, %v683_v54  ;;  %v4150_v54 = vld [vmem:[%s6159_s0 + $0x21] sm:$0xff] }
 0x16d   :  { %v769_v18 = vmul.f32 %v4150_v54, %v4073_v40  ;;  %v705_v19 = vmul.f32 %v4150_v54, %v6213_v25 }
 0x16e   :  { %v699_v44 = vadd.f32 %v3897_v23, %v687_v11  ;;  %v534_v23 = vmul.f32 %v4141_v16, %v4043_v30  ;;  %v4175_v11 = vld [vmem:[%s6159_s0 + $0x70] sm:$0xff] }
 0x16f   :  { %v686_v51 = vmul.f32 %v4175_v11, %v6212_v3  ;;  %v1257_v3 = vmul.f32 %v3591_v53, %v4039_v28  ;;  %v626_v53 = vmul.f32 %v4175_v11, %v4073_v40 }
 0x170   :  { %1037 = vrot.lane.b32.xlu2 %v1032_v61, %s3340_s20  ;;  %1235 = vrot.lane.b32.xlu1 %v1230_v62, %s3340_s20  ;;  %v4112_v1 = vpop.permute.xlu0 %673  ;;  %v627_v61 = vadd.f32 %v625_v42, %v623_v63  ;;  %v4145_v62 = vstv %s3042_s25  ;;  %v703_v58 = vadd.f32 %v701_v29, %v699_v44  ;;  %v539_v47 = vadd.f32 %v537_v49, %v534_v23  ;;  %v4196_v44 = vld [vmem:[%s6159_s0 + $0x51] sm:$0xff]  ;;  %s4570_s25 = sld [smem:[#allocation2 + $0x201]] }
 0x171   :  { %1117 = vrot.lane.b32.xlu0 %v1113_v13, %s3340_s20  ;;  %v767_v13 = vadd.f32 %v3983_v38, %v755_v52  ;;  %v4168_v38 = vld [vmem:[%s6159_s0 + $0x50] sm:$0xff]  ;;  %v574_v52 = vadd.f32 %v3911_v8, %v561_v34  ;;  %v1246_v8 = vmul.f32 %v4196_v44, %v4022_v14  ;;  %v624_v23 = vadd.f32 %v3949_v56, %v612_v4 }
 0x172   :  { %v4103_v21 = vpop.permute.xlu2 %499  ;;  %v4105_v31 = vpop.permute.xlu1 %591  ;;  %6214 = vst [vmem:[#allocation13_spill] sm:$0xff] %v4168_v38  ;;  %v684_v2 = vmul.f32 %v4168_v38, %v4043_v30  ;;  %v639_v42 = vadd.f32 %v3965_v7, %v627_v61  ;;  %v707_v7 = vadd.f32 %v705_v19, %v703_v58  ;;  %v555_v39 = vmul.f32 %v4168_v38, %v4073_v40  ;;  %v4214_v58 = vld [vmem:[%s6159_s0 + $0x41] sm:$0xff] }
 0x173   :  { %v771_v29 = vadd.f32 %v769_v18, %v767_v13  ;;  %v552_v34 = vadd.f32 %v3866_v35, %v539_v47  ;;  %v653_v18 = vmul.f32 %v4150_v54, %v4145_v62  ;;  %v721_v19 = vmul.f32 %v4214_v58, %v4145_v62 }
 0x174   :  { %v688_v49 = vadd.f32 %v686_v51, %v684_v2  ;;  %v651_v61 = vadd.f32 %v3981_v57, %v639_v42  ;;  %v582_v56 = vmul.f32 %v4150_v54, %v3683_v46  ;;  %v719_v35 = vadd.f32 %v4017_v0, %v707_v7 }
 0x175   :  { %v783_v2 = vadd.f32 %v3969_v17, %v771_v29  ;;  %v4226_v57 = vstv %s4157_s12  ;;  %v4229_v4 = vstv %s4162_s13  ;;  %v4234_v17 = vld [vmem:[%s6159_s0 + $0x11] sm:$0xff]  ;;  %v744_v0 = vmul.f32 %v4175_v11, %v4043_v30  ;;  %s3063_s13 = sld [smem:[#allocation2 + $0x187]] }
 0x176   :  { %6215 = vst [vmem:[#allocation11_spill] sm:$0xff] %v4229_v4  ;;  %v702_v51 = vmul.f32 %v4234_v17, %v4073_v40  ;;  %v700_v47 = vadd.f32 %v3921_v5, %v688_v49  ;;  %v628_v42 = vadd.f32 %v626_v53, %v624_v23  ;;  %v557_v30 = vadd.f32 %v555_v39, %v552_v34  ;;  %v4271_v39 = vld [vmem:[%s6159_s0 + $0x71] sm:$0xff]  ;;  %s5067_s12 = sld [smem:[#allocation5 + $0x3]] }
 0x177   :  { %v795_v29 = vadd.f32 %v4065_v6, %v783_v2  ;;  %v560_v7 = vmul.f32 %v4175_v11, %v6213_v25  ;;  %v1419_v6 = vmul.f32 %v4056_v9, %v4226_v57  ;;  %v723_v49 = vadd.f32 %v721_v19, %v719_v35 }
 0x178   :  { %1249 = vrot.lane.b32.xlu2 %v1245_v22, %s3340_s20  ;;  %1177 = vrot.lane.b32.xlu1 %v1173_v48, %s3340_s20  ;;  %v577_v22 = vmul.f32 %v4122_v45, %v4145_v62  ;;  %v1258_v23 = vmul.f32 %v4271_v39, %v4039_v28  ;;  %v640_v2 = vadd.f32 %v3938_v27, %v628_v42 }
 0x179   :  { %1119 = vrot.lane.b32.xlu0 %v1114_v10, %s3340_s20  ;;  %v1174_v10 = vmul.f32 %v4196_v44, %v4039_v28  ;;  %v562_v27 = vadd.f32 %v560_v7, %v557_v30 }
 0x17a   :  { %v4179_v41 = vpop.permute.xlu2 %817  ;;  %v4181_v63 = vpop.permute.xlu1 %791  ;;  %v579_v13 = vadd.f32 %v577_v22, %v574_v52 }
 0x17b   :  { %v464_v48 = vpop.permute.xlu0 %463  ;;  %v575_v30 = vadd.f32 %v3954_v60, %v562_v27 }
 0x17c   :  { %467 = vst.msk [vmem:[%s6167_s8] sm:$0x3] %vm466_vm8, %v464_v48  ;;  %v655_v48 = vadd.f32 %v653_v18, %v651_v61  ;;  %v584_v53 = vadd.f32 %v582_v56, %v579_v13  ;;  %v704_v61 = vadd.f32 %v702_v51, %v700_v47  ;;  %v756_v18 = vadd.f32 %v3962_v50, %v744_v0 }
 0x17d   :  { %v652_v51 = vadd.f32 %v3998_v55, %v640_v2  ;;  %v578_v55 = vmul.f32 %v4234_v17, %v4145_v62 }
 0x17e   :  { %v667_v28 = vadd.f32 %v4015_v37, %v655_v48  ;;  %v597_v56 = vadd.f32 %v4105_v31, %v584_v53  ;;  %v768_v37 = vadd.f32 %v4002_v12, %v756_v18  ;;  %v4310_v12 = vld [vmem:[%s6159_s0 + $0x20] sm:$0xff] }
 0x17f   :  { %v580_v60 = vadd.f32 %v578_v55, %v575_v30  ;;  %v4358_v55 = vstv %s3060_s29  ;;  %v1568_v30 = vmul.f32 %v4168_v38, %v4226_v57  ;;  %s3056_s29 = sld [smem:[#allocation2 + $0x180]] }
 0x180   :  { %1261 = vrot.lane.b32.xlu2 %v1257_v3, %s3340_s20  ;;  %1251 = vrot.lane.b32.xlu1 %v1246_v8, %s3340_s20  ;;  %v4247_v3 = vld [vmem:[%s6159_s0 + $0x61] sm:$0xff]  ;;  %v679_v50 = vadd.f32 %v4112_v1, %v667_v28  ;;  %6216 = vst [vmem:[#allocation14_spill] sm:$0xff] %v4358_v55 }
 0x181   :  { %1179 = vrot.lane.b32.xlu0 %v1174_v10, %s3340_s20  ;;  %v797_v8 = vmul.f32 %v4247_v3, %v4145_v62  ;;  %v1479_v10 = vmul.f32 %v4056_v9, %v4229_v4  ;;  %v725_v34 = vmul.f32 %v4247_v3, %v3683_v46 }
 0x182   :  { %v4241_v52 = vpop.permute.xlu2 %989  ;;  %v482_v22 = vpop.permute.xlu1 %481 }
 0x183   :  { %485 = vst.msk [vmem:[%s6167_s8] sm:$0x3] %vm484_vm9, %v482_v22  ;;  %v4255_v5 = vpop.permute.xlu0 %675  ;;  %v799_v19 = vadd.f32 %v797_v8, %v795_v29  ;;  %v727_v35 = vadd.f32 %v725_v34, %v723_v49  ;;  %v681_v22 = vmax.f32 %v597_v56, %v679_v50  ;;  %v1491_v8 = vmul.f32 %v4310_v12, %v4226_v57 }
 0x184   :  { %503 = vst.msk [vmem:[%s6167_s8] sm:$0x3] %vm502_vm10, %v4103_v21  ;;  %v4282_v21 = vld [vmem:[%s6159_s0 + $0x31] sm:$0xff]  ;;  %v722_v49 = vmul.f32 %v4196_v44, %v4145_v62 }
 0x185   :  { %v706_v13 = vmul.f32 %v4282_v21, %v6213_v25  ;;  %v770_v25 = vmul.f32 %v4282_v21, %v4073_v40  ;;  %v654_v42 = vmul.f32 %v4282_v21, %v4145_v62  ;;  %v811_v1 = vadd.f32 %v4062_v59, %v799_v19 }
 0x186   :  { %v1420_v40 = vmul.f32 %v4141_v16, %v4226_v57  ;;  %v583_v2 = vmul.f32 %v4282_v21, %v3683_v46 }
 0x187   :  { %v708_v47 = vadd.f32 %v706_v13, %v704_v61  ;;  %v823_v59 = vadd.f32 %v4179_v41, %v811_v1  ;;  %v656_v34 = vadd.f32 %v654_v42, %v652_v51  ;;  %v798_v51 = vmul.f32 %v4271_v39, %v4145_v62 }
 0x188   :  { %1423 = vrot.lane.b32.xlu2 %v1419_v6, %s3340_s20  ;;  %1483 = vrot.lane.b32.xlu1 %v1479_v10, %s3340_s20  ;;  %v1480_v6 = vmul.f32 %v4141_v16, %v4229_v4  ;;  %v772_v10 = vadd.f32 %v770_v25, %v768_v37 }
 0x189   :  { %1263 = vrot.lane.b32.xlu0 %v1258_v23, %s3340_s20  ;;  %v720_v53 = vadd.f32 %v4041_v32, %v708_v47  ;;  %v827_v23 = vstv %s4286_s26  ;;  %v726_v32 = vmul.f32 %v4271_v39, %v3683_v46  ;;  %v668_v56 = vadd.f32 %v4004_v43, %v656_v34  ;;  %s4639_s26 = sld [smem:[#allocation5 + $0x2]] }
 0x18a   :  { %v4298_v0 = vpop.permute.xlu2 %991  ;;  %v734_v31 = vpop.permute.xlu1 %733  ;;  %v784_v13 = vadd.f32 %v3990_v15, %v772_v10  ;;  %v1623_v46 = vmul.f32 %v4086_v33, %v4229_v4  ;;  %v1567_v15 = vmul.f32 %v4086_v33, %v4226_v57  ;;  %v1492_v43 = vmul.f32 %v4132_v36, %v4226_v57 }
 0x18b   :  { %v739_v48 = vadd.f32 %v734_v31, %v727_v35  ;;  %v736_v29 = vpop.permute.xlu0 %735  ;;  %v724_v18 = vadd.f32 %v722_v49, %v720_v53  ;;  %v680_v25 = vadd.f32 %v4255_v5, %v668_v56  ;;  %v4372_v10 = vstv %s3061_s10  ;;  %s3073_s10 = sld [smem:[#allocation2 + $0x207]] }
 0x18c   :  { %v796_v35 = vadd.f32 %v4181_v63, %v784_v13  ;;  %v585_v63 = vadd.f32 %v583_v2, %v580_v60  ;;  %v4395_v13 = vld [vmem:[%s6159_s0 + $0x60] sm:$0xff] }
 0x18d   :  { %v741_v7 = vmax.f32 %v681_v22, %v739_v48  ;;  %v728_v62 = vadd.f32 %v726_v32, %v724_v18  ;;  %v1442_v18 = vmul.f32 %v4086_v33, %v4372_v10  ;;  %6219 = vst [vmem:[#allocation16_spill] sm:$0xff] %v4395_v13  ;;  %v1635_v32 = vmul.f32 %v4395_v13, %v4226_v57 }
 0x18e   :  { %v598_v37 = vadd.f32 %v4031_v24, %v585_v63  ;;  %v800_v31 = vadd.f32 %v798_v51, %v796_v35 }
 0x18f   :  { %v825_v61 = vmax.f32 %v741_v7, %v823_v59  ;;  %v740_v47 = vadd.f32 %v736_v29, %v728_v62  ;;  %v1507_v59 = vmul.f32 %v4086_v33, %v4358_v55 }
 0x190   :  { %1425 = vrot.lane.b32.xlu2 %v1420_v40, %s3340_s20  ;;  %1495 = vrot.lane.b32.xlu1 %v1491_v8, %s3340_s20  ;;  %v682_v42 = vmax.f32 %v598_v37, %v680_v25  ;;  %v1624_v8 = vmul.f32 %v4168_v38, %v4229_v4  ;;  %v1003_v4 = vmul.f32 %v4395_v13, %v3967_v26 }
 0x191   :  { %1485 = vrot.lane.b32.xlu0 %v1480_v6, %s3340_s20  ;;  %v828_v41 = vadd.f32 %v827_v23, %v825_v61 }
 0x192   :  { %v4330_v28 = vpop.permute.xlu2 %1193  ;;  %v808_v19 = vpop.permute.xlu1 %807  ;;  %v742_v40 = vmax.f32 %v682_v42, %v740_v47  ;;  %v1636_v42 = vmul.f32 %v4175_v11, %v4226_v57 }
 0x193   :  { %v518_v27 = vpop.permute.xlu0 %517  ;;  %v4333_v50 = vmax.f32 %v828_v41, 0.0  ;;  %v812_v1 = vadd.f32 %v808_v19, %v800_v31  ;;  %v1443_v31 = vmul.f32 %v4168_v38, %v4372_v10 }
 0x194   :  { %521 = vst.msk [vmem:[%s6167_s8] sm:$0x3] %vm520_vm11, %v518_v27 }
 0x195   :  { %858 = vst.sshfl [vmem:[#allocation1] sm:$0xff pattern:$0x73625140] %v4333_v50  ;;  %v846_v60 = vrot.slane %v4333_v50, 1 }
 0x198   :  { %1627 = vrot.lane.b32.xlu2 %v1623_v46, %s3340_s20  ;;  %1571 = vrot.lane.b32.xlu1 %v1567_v15, %s3340_s20 }
 0x199   :  { %1497 = vrot.lane.b32.xlu0 %v1492_v43, %s3340_s20 }
 0x19a   :  { %v4354_v22 = vpop.permute.xlu2 %1195  ;;  %v4356_v48 = vpop.permute.xlu1 %1049 }
 0x19b   :  { %v820_v5 = vpop.permute.xlu0 %819 }
 0x19c   :  { %v4360_v24 = vld [vmem:[#allocation1 + $0x1] ss:$4 sm:$0xff]  ;;  %v824_v29 = vadd.f32 %v820_v5, %v812_v1  ;;  %v1519_v1 = vmul.f32 %v4395_v13, %v4372_v10 }
 0x19d   :  { %6217 = vst [vmem:[#allocation12_spill] sm:$0xff] %v4360_v24 }
 0x19e   :  { %876 = vst.sshfl [vmem:[#allocation1] sm:$0xff pattern:$0x73625140] %v4333_v50  ;;  %v826_v7 = vmax.f32 %v742_v40, %v824_v29 }
 0x1a0   :  { %v829_v6 = vadd.f32 %v827_v23, %v826_v7  ;;  %1629 = vrot.lane.b32.xlu2 %v1624_v8, %s3340_s20  ;;  %1573 = vrot.lane.b32.xlu1 %v1568_v30, %s3340_s20  ;;  %v1508_v23 = vmul.f32 %v4168_v38, %v4358_v55  ;;  %v1651_v30 = vmul.f32 %v4122_v45, %v4358_v55 }
 0x1a1   :  { %1511 = vrot.lane.b32.xlu0 %v1507_v59, %s3340_s20  ;;  %v1587_v59 = vmul.f32 %v4122_v45, %v4372_v10  ;;  %v1520_v7 = vmul.f32 %v4175_v11, %v4372_v10 }
 0x1a2   :  { %v4374_v49 = vmax.f32 %v829_v6, 0.0  ;;  %v4376_v53 = vpop.permute.xlu2 %1079  ;;  %v4378_v34 = vpop.permute.xlu1 %1061 }
 0x1a3   :  { %v4380_v61 = vpop.permute.xlu0 %1051 }
 0x1a4   :  { %861 = vst.sshfl [vmem:[#allocation1 + $0x20] sm:$0xff pattern:$0x73625140] %v4374_v49  ;;  %v836_v2 = vrot.slane %v4374_v49, 7  ;;  %v849_v19 = vsel %vm391_vm0, %v4374_v49, %v846_v60 }
 0x1a5   :  { %v4383_v41 = vld [vmem:[#allocation1 + $0x1] ss:$4 sm:$0xff]  ;;  %v850_v27 = vsel %vm393_vm1, %v4374_v49, %v849_v19  ;;  %v1652_v19 = vmul.f32 %v4234_v17, %v4358_v55 }
 0x1a6   :  { %6218 = vst [vmem:[#allocation15_spill] sm:$0xff] %v4383_v41  ;;  %v837_v56 = vsel %vm391_vm0, %v836_v2, %v4333_v50  ;;  %v851_v46 = vsel %vm395_vm2, %v4374_v49, %v850_v27 }
 0x1a7   :  { %894 = vst.sshfl [vmem:[#allocation1] sm:$0xff pattern:$0x73625140] %v4333_v50  ;;  %v838_v35 = vsel %vm393_vm1, %v836_v2, %v837_v56  ;;  %v4417_v43 = vsel %vm397_vm3, %v4374_v49, %v851_v46  ;;  %v1588_v56 = vmul.f32 %v4234_v17, %v4372_v10 }
 0x1a8   :  { %1513 = vrot.lane.b32.xlu2 %v1508_v23, %s3340_s20  ;;  %1446 = vrot.lane.b32.xlu1 %v1442_v18, %s3340_s20  ;;  %v839_v51 = vsel %vm395_vm2, %v836_v2, %v838_v35  ;;  %6221 = vst [vmem:[#allocation18_spill] sm:$0xff] %v4417_v43  ;;  %v4465_v23 = vstv %s3063_s13  ;;  %v4484_v35 = vstv %s3064_s15  ;;  %s3059_s15 = sld [smem:[#allocation2 + $0x183]] }
 0x1a9   :  { %1639 = vrot.lane.b32.xlu0 %v1635_v32, %s3340_s20  ;;  %v4413_v15 = vsel %vm397_vm3, %v836_v2, %v839_v51  ;;  %6226 = vst [vmem:[#allocation23_spill] sm:$0xff] %v4465_v23  ;;  %v1535_v27 = vmul.f32 %v4122_v45, %v4465_v23  ;;  %v4534_v43 = vstv %s3049_s1  ;;  %s4969_s1 = sld [smem:[#allocation2 + $0x282]] }
 0x1aa   :  { %6220 = vst [vmem:[#allocation17_spill] sm:$0xff] %v4413_v15  ;;  %v4419_v63 = vpop.permute.xlu2 %1014  ;;  %v4421_v25 = vpop.permute.xlu1 %1137 }
 0x1ab   :  { %v4423_v62 = vld [vmem:[#allocation1 + $0x21] ss:$4 sm:$0xff]  ;;  %v4425_v37 = vpop.permute.xlu0 %1063 }
 0x1ac   :  { %6222 = vst [vmem:[#allocation19_spill] sm:$0xff] %v4423_v62  ;;  %v1069_v62 = vmul.f32 %v4395_v13, %v4534_v43 }
 0x1ad   :  { %879 = vst.sshfl [vmem:[#allocation1 + $0x20] sm:$0xff pattern:$0x73625140] %v4374_v49 }
 0x1ae   :  { %v4427_v47 = vld [vmem:[#allocation1 + $0x2] ss:$4 sm:$0xff] }
 0x1af   :  { %6223 = vst [vmem:[#allocation20_spill] sm:$0xff] %v4427_v47 }
 0x1b0   :  { %912 = vst.sshfl [vmem:[#allocation1] sm:$0xff pattern:$0x73625140] %v4333_v50  ;;  %1448 = vrot.lane.b32.xlu2 %v1443_v31, %s3340_s20  ;;  %1641 = vrot.lane.b32.xlu1 %v1636_v42, %s3340_s20 }
 0x1b1   :  { %1523 = vrot.lane.b32.xlu0 %v1519_v1, %s3340_s20  ;;  %v1465_v1 = vmul.f32 %v4122_v45, %v4484_v35 }
 0x1b2   :  { %v4440_v5 = vpop.permute.xlu2 %1221  ;;  %v4442_v40 = vpop.permute.xlu1 %1139 }
 0x1b3   :  { %v4446_v8 = vpop.permute.xlu0 %1077 }
 0x1b4   :  { %v4444_v29 = vld [vmem:[#allocation1 + $0x21] ss:$4 sm:$0xff] }
 0x1b5   :  { %6224 = vst [vmem:[#allocation21_spill] sm:$0xff] %v4444_v29 }
 0x1b6   :  { %897 = vst.sshfl [vmem:[#allocation1 + $0x20] sm:$0xff pattern:$0x73625140] %v4374_v49 }
 0x1b7   :  { %v4448_v57 = vld [vmem:[#allocation1 + $0x2] ss:$4 sm:$0xff] }
 0x1b8   :  { %6225 = vst [vmem:[#allocation22_spill] sm:$0xff] %v4448_v57  ;;  %1655 = vrot.lane.b32.xlu2 %v1651_v30, %s3340_s20  ;;  %1591 = vrot.lane.b32.xlu1 %v1587_v59, %s3340_s20  ;;  %v1663_v30 = vmul.f32 %v4150_v54, %v4372_v10 }
 0x1b9   :  { %930 = vst.sshfl [vmem:[#allocation1] sm:$0xff pattern:$0x73625140] %v4333_v50  ;;  %1525 = vrot.lane.b32.xlu0 %v1520_v7, %s3340_s20 }
 0x1ba   :  { %v4461_v6 = vpop.permute.xlu2 %1223  ;;  %v4463_v60 = vpop.permute.xlu1 %1012 }
 0x1bb   :  { %v4469_v2 = vpop.permute.xlu0 %1205 }
 0x1bd   :  { %v4467_v18 = vld [vmem:[#allocation1 + $0x22] ss:$4 sm:$0xff] }
 0x1be   :  { %6227 = vst [vmem:[#allocation24_spill] sm:$0xff] %v4467_v18 }
 0x1bf   :  { %915 = vst.sshfl [vmem:[#allocation1 + $0x20] sm:$0xff pattern:$0x73625140] %v4374_v49 }
 0x1c0   :  { %v4471_v32 = vld [vmem:[#allocation1 + $0x3] ss:$4 sm:$0xff]  ;;  %1657 = vrot.lane.b32.xlu2 %v1652_v19, %s3340_s20  ;;  %1593 = vrot.lane.b32.xlu1 %v1588_v56, %s3340_s20 }
 0x1c1   :  { %6228 = vst [vmem:[#allocation25_spill] sm:$0xff] %v4471_v32  ;;  %1539 = vrot.lane.b32.xlu0 %v1535_v27, %s3340_s20  ;;  %v976_v27 = vstv %s3046_s16  ;;  %v1466_v32 = vmul.f32 %v4234_v17, %v4484_v35  ;;  %s3080_s16 = sld [smem:[#allocation2 + $0x284]] }
 0x1c2   :  { %948 = vst.sshfl [vmem:[#allocation1] sm:$0xff pattern:$0x73625140] %v4333_v50  ;;  %v4486_v51 = vpop.permute.xlu2 %1107  ;;  %v4488_v46 = vpop.permute.xlu1 %1207  ;;  %v1536_v50 = vmul.f32 %v4234_v17, %v4465_v23  ;;  %v1127_v57 = vmul.f32 %v4086_v33, %v976_v27  ;;  %v1187_v47 = vmul.f32 %v4395_v13, %v976_v27 }
 0x1c3   :  { %v4492_v42 = vpop.permute.xlu0 %1089 }
 0x1c6   :  { %v4490_v31 = vld [vmem:[#allocation1 + $0x22] ss:$4 sm:$0xff] }
 0x1c7   :  { %6229 = vst [vmem:[#allocation26_spill] sm:$0xff] %v4490_v31  ;;  %v1547_v31 = vmul.f32 %v4150_v54, %v4484_v35 }
 0x1c8   :  { %933 = vst.sshfl [vmem:[#allocation1 + $0x20] sm:$0xff pattern:$0x73625140] %v4374_v49  ;;  %1541 = vrot.lane.b32.xlu2 %v1536_v50, %s3340_s20  ;;  %1469 = vrot.lane.b32.xlu1 %v1465_v1, %s3340_s20  ;;  %v1664_v50 = vmul.f32 %v4282_v21, %v4372_v10  ;;  %v977_v1 = vmul.f32 %v4056_v9, %v976_v27 }
 0x1c9   :  { %1667 = vrot.lane.b32.xlu0 %v1663_v30, %s3340_s20  ;;  %v980_v30 = vmul.f32 %v4310_v12, %v3927_v20 }
 0x1ca   :  { %v4504_v59 = vpop.permute.xlu2 %1037  ;;  %v4506_v7 = vpop.permute.xlu1 %1157 }
 0x1cb   :  { %6230 = vst [vmem:[#allocation27_spill] sm:$0xff] %v4504_v59  ;;  %v4510_v56 = vpop.permute.xlu0 %1091  ;;  %v982_v10 = vadd.f32 %v980_v30, %v977_v1  ;;  %v1199_v30 = vadd.f32 %v4330_v28, %v1187_v47  ;;  %v1213_v47 = vmul.f32 %v4150_v54, %v4534_v43 }
 0x1cd   :  { %v995_v1 = vadd.f32 %v4241_v52, %v982_v10  ;;  %v1211_v10 = vadd.f32 %v4469_v2, %v1199_v30  ;;  %v1149_v30 = vmul.f32 %v4150_v54, %v3967_v26 }
 0x1cf   :  { %v4508_v19 = vld [vmem:[#allocation1 + $0x23] ss:$4 sm:$0xff] }
 0x1d0   :  { %6231 = vst [vmem:[#allocation28_spill] sm:$0xff] %v4508_v19  ;;  %v1043_v19 = vmul.f32 %v4310_v12, %v976_v27  ;;  %1471 = vrot.lane.b32.xlu2 %v1466_v32, %s3340_s20  ;;  %1669 = vrot.lane.b32.xlu1 %v1664_v50, %s3340_s20  ;;  %v1679_v32 = vmul.f32 %v4214_v58, %v4465_v23 }
 0x1d1   :  { %951 = vst.sshfl [vmem:[#allocation1 + $0x20] sm:$0xff pattern:$0x73625140] %v4374_v49  ;;  %v1129_v49 = vmul.f32 %v4395_v13, %v3927_v20  ;;  %1551 = vrot.lane.b32.xlu0 %v1547_v31, %s3340_s20  ;;  %v1607_v50 = vmul.f32 %v4214_v58, %v4484_v35  ;;  %v998_v31 = vmul.f32 %v4086_v33, %v4534_v43 }
 0x1d2   :  { %v4530_v18 = vpop.permute.xlu2 %1249  ;;  %v4532_v29 = vpop.permute.xlu1 %1159  ;;  %v1055_v41 = vadd.f32 %v4356_v48, %v1043_v19  ;;  %v1548_v48 = vmul.f32 %v4282_v21, %v4484_v35  ;;  %v981_v19 = vmul.f32 %v4132_v36, %v3927_v20  ;;  %v1691_v13 = vmul.f32 %v4247_v3, %v4484_v35 }
 0x1d3   :  { %v1131_v15 = vadd.f32 %v1129_v49, %v1127_v57  ;;  %v4537_v24 = vpop.permute.xlu0 %1105  ;;  %v978_v57 = vmul.f32 %v4141_v16, %v976_v27  ;;  %v1145_v49 = vmul.f32 %v4122_v45, %v4534_v43  ;;  %v1000_v55 = vadd.f32 %v998_v31, %v995_v1 }
 0x1d4   :  { %v1067_v52 = vadd.f32 %v4378_v34, %v1055_v41  ;;  %v999_v41 = vmul.f32 %v4168_v38, %v4534_v43  ;;  %v1215_v1 = vadd.f32 %v1213_v47, %v1211_v10 }
 0x1d5   :  { %v1143_v28 = vadd.f32 %v4421_v25, %v1131_v15  ;;  %v983_v34 = vadd.f32 %v981_v19, %v978_v57  ;;  %v1128_v15 = vmul.f32 %v4168_v38, %v976_v27  ;;  %v1130_v25 = vmul.f32 %v4175_v11, %v3927_v20 }
 0x1d6   :  { %v1071_v31 = vadd.f32 %v1069_v62, %v1067_v52  ;;  %v1188_v57 = vmul.f32 %v4175_v11, %v976_v27  ;;  %v1044_v19 = vmul.f32 %v4132_v36, %v976_v27  ;;  %v1680_v20 = vmul.f32 %v4196_v44, %v4465_v23 }
 0x1d7   :  { %v4588_v38 = vstv %s4547_s22  ;;  %v1005_v62 = vadd.f32 %v1003_v4, %v1000_v55  ;;  %v1608_v52 = vmul.f32 %v4196_v44, %v4484_v35  ;;  %v1132_v47 = vadd.f32 %v1130_v25, %v1128_v15  ;;  %s4976_s22 = sld [smem:[#allocation2 + $0x281]] }
 0x1d8   :  { %1683 = vrot.lane.b32.xlu2 %v1679_v32, %s3340_s20  ;;  %1611 = vrot.lane.b32.xlu1 %v1607_v50, %s3340_s20  ;;  %v1147_v50 = vadd.f32 %v1145_v49, %v1143_v28  ;;  %v1083_v49 = vadd.f32 %v4446_v8, %v1071_v31  ;;  %v996_v28 = vadd.f32 %v4298_v0, %v983_v34 }
 0x1d9   :  { %1553 = vrot.lane.b32.xlu0 %v1548_v48, %s3340_s20  ;;  %v1021_v27 = vmul.f32 %v4122_v45, %v4588_v38  ;;  %v1097_v10 = vmul.f32 %v4150_v54, %v4588_v38  ;;  %v1018_v23 = vadd.f32 %v4463_v60, %v1005_v62  ;;  %v1227_v4 = vadd.f32 %v4440_v5, %v1215_v1 }
 0x1da   :  { %v4577_v2 = vpop.permute.xlu2 %1261  ;;  %v1036_v32 = vpop.permute.xlu1 %1035  ;;  %v1095_v59 = vadd.f32 %v4492_v42, %v1083_v49  ;;  %v1151_v8 = vadd.f32 %v1149_v30, %v1147_v50  ;;  %v1056_v55 = vadd.f32 %v4380_v61, %v1044_v19  ;;  %v1165_v0 = vmul.f32 %v4214_v58, %v4588_v38 }
 0x1db   :  { %v1234_v48 = vpop.permute.xlu0 %1233  ;;  %v1241_v34 = vmul.f32 %v4247_v3, %v4588_v38  ;;  %v4611_v42 = vstv %s4565_s23  ;;  %v4614_v5 = vstv %s4570_s25  ;;  %v1001_v61 = vadd.f32 %v999_v41, %v996_v28  ;;  %s3353_s23 = smov 104  }
 0x1dc   :  { %v1163_v15 = vadd.f32 %v4506_v7, %v1151_v8  ;;  %v1239_v60 = vadd.f32 %v1234_v48, %v1227_v4  ;;  %v1004_v58 = vmul.f32 %v4175_v11, %v3967_v26  ;;  %v1070_v25 = vmul.f32 %v4175_v11, %v4534_v43 }
 0x1dd   :  { %v1146_v7 = vmul.f32 %v4234_v17, %v4534_v43  ;;  %v1023_v1 = vadd.f32 %v1021_v27, %v1018_v23  ;;  %v1099_v30 = vadd.f32 %v1097_v10, %v1095_v59  ;;  %v1026_v41 = vmul.f32 %v4150_v54, %v4022_v14 }
 0x1de   :  { %v1144_v19 = vadd.f32 %v4442_v40, %v1132_v47  ;;  %v1169_v49 = vmul.f32 %v4247_v3, %v4022_v14  ;;  %v1167_v62 = vadd.f32 %v1165_v0, %v1163_v15  ;;  %v1243_v23 = vadd.f32 %v1241_v34, %v1239_v60 }
 0x1df   :  { %v1692_v59 = vmul.f32 %v4271_v39, %v4484_v35  ;;  %v1028_v40 = vadd.f32 %v1026_v41, %v1023_v1  ;;  %v1200_v27 = vadd.f32 %v4354_v22, %v1188_v57  ;;  %v1006_v3 = vadd.f32 %v1004_v58, %v1001_v61 }
 0x1e0   :  { %1695 = vrot.lane.b32.xlu2 %v1691_v13, %s3340_s20  ;;  %1685 = vrot.lane.b32.xlu1 %v1680_v20, %s3340_s20  ;;  %v1068_v13 = vadd.f32 %v4425_v37, %v1056_v55  ;;  %v1855_v20 = vmul.f32 %v4056_v9, %v4611_v42  ;;  %v1915_v37 = vmul.f32 %v4056_v9, %v4614_v5 }
 0x1e1   :  { %1613 = vrot.lane.b32.xlu0 %v1608_v52, %s3340_s20  ;;  %v1111_v52 = vadd.f32 %v4537_v24, %v1099_v30  ;;  %v1148_v10 = vadd.f32 %v1146_v7, %v1144_v19  ;;  %v1150_v9 = vmul.f32 %v4282_v21, %v3967_v26  ;;  %v1041_v24 = vadd.f32 %v1036_v32, %v1028_v40 }
 0x1e2   :  { %v4621_v50 = vpop.permute.xlu2 %1423  ;;  %v4623_v31 = vpop.permute.xlu1 %1235  ;;  %v1072_v28 = vadd.f32 %v1070_v25, %v1068_v13  ;;  %v1255_v8 = vadd.f32 %v4530_v18, %v1243_v23  ;;  %v1171_v35 = vadd.f32 %v1169_v49, %v1167_v62  ;;  %v1214_v4 = vmul.f32 %v4282_v21, %v4534_v43  ;;  %v4685_v23 = vld [vmem:[#allocation1 + $0x3] ss:$4 sm:$0xff] }
 0x1e3   :  { %v1118_v48 = vpop.permute.xlu0 %1117  ;;  %v1212_v22 = vadd.f32 %v4488_v46, %v1200_v27  ;;  %v1022_v0 = vmul.f32 %v4234_v17, %v4588_v38  ;;  %v1098_v18 = vmul.f32 %v4282_v21, %v4588_v38  ;;  %v1152_v43 = vadd.f32 %v1150_v9, %v1148_v10  ;;  %6232 = vst [vmem:[#allocation29_spill] sm:$0xff] %v4685_v23  ;;  %v6233_v27 = vld [vmem:[#allocation27_spill] sm:$0xff] }
 0x1e4   :  { %v1123_v47 = vadd.f32 %v1118_v48, %v1111_v52  ;;  %v1084_v57 = vadd.f32 %v4376_v53, %v1072_v28  ;;  %v1856_v46 = vmul.f32 %v4141_v16, %v4611_v42  ;;  %v1927_v53 = vmul.f32 %v4310_v12, %v4611_v42 }
 0x1e5   :  { %v1019_v61 = vadd.f32 %v4419_v63, %v1006_v3  ;;  %v1267_v25 = vadd.f32 %v4577_v2, %v1255_v8  ;;  %v1916_v13 = vmul.f32 %v4141_v16, %v4614_v5  ;;  %v1216_v7 = vadd.f32 %v1214_v4, %v1212_v22 }
 0x1e6   :  { %v1125_v32 = vmax.f32 %v1041_v24, %v1123_v47  ;;  %v1096_v60 = vadd.f32 %v4510_v56, %v1084_v57  ;;  %v1166_v1 = vmul.f32 %v4196_v44, %v4588_v38  ;;  %v1164_v56 = vadd.f32 %v4532_v29, %v1152_v43 }
 0x1e7   :  { %v1271_v30 = vstv %s4639_s26  ;;  %v1027_v63 = vmul.f32 %v4282_v21, %v4022_v14  ;;  %v1024_v16 = vadd.f32 %v1022_v0, %v1019_v61  ;;  %v1242_v49 = vmul.f32 %v4271_v39, %v4588_v38  ;;  %v6235_v0 = vld [vmem:[#allocation13_spill] sm:$0xff]  ;;  %s3083_s26 = sld [smem:[#allocation2 + $0x287]] }
 0x1e8   :  { %1859 = vrot.lane.b32.xlu2 %v1855_v20, %s3340_s20  ;;  %1919 = vrot.lane.b32.xlu1 %v1915_v37, %s3340_s20  ;;  %v1100_v48 = vadd.f32 %v1098_v18, %v1096_v60  ;;  %v1168_v19 = vadd.f32 %v1166_v1, %v1164_v56  ;;  %v1228_v20 = vadd.f32 %v4461_v6, %v1216_v7  ;;  %v4718_v43 = vstv %s3071_s28  ;;  %s3069_s28 = sld [smem:[#allocation2 + $0x203]] }
 0x1e9   :  { %1697 = vrot.lane.b32.xlu0 %v1692_v59, %s3340_s20  ;;  %v1170_v37 = vmul.f32 %v4271_v39, %v4022_v14  ;;  %v2059_v6 = vmul.f32 %v4086_v33, %v4614_v5  ;;  %v2003_v40 = vmul.f32 %v4086_v33, %v4611_v42  ;;  %v1928_v14 = vmul.f32 %v4132_v36, %v4611_v42 }
 0x1ea   :  { %v4652_v55 = vpop.permute.xlu2 %1425  ;;  %v1178_v26 = vpop.permute.xlu1 %1177  ;;  %v1240_v59 = vadd.f32 %v4623_v31, %v1228_v20  ;;  %v1112_v28 = vadd.f32 %v4486_v51, %v1100_v48  ;;  %v1029_v38 = vadd.f32 %v1027_v63, %v1024_v16  ;;  %v2060_v18 = vmul.f32 %v6235_v0, %v4614_v5  ;;  %v6238_v48 = vld [vmem:[#allocation16_spill] sm:$0xff] }
 0x1eb   :  { %v1183_v34 = vadd.f32 %v1178_v26, %v1171_v35  ;;  %v1120_v15 = vpop.permute.xlu0 %1119  ;;  %v1172_v47 = vadd.f32 %v1170_v37, %v1168_v19  ;;  %v4704_v35 = vstv %s3070_s27  ;;  %v1878_v56 = vmul.f32 %v4086_v33, %v4718_v43  ;;  %s3084_s27 = sld [smem:[#allocation2 + $0x288]] }
 0x1ec   :  { %v1124_v39 = vadd.f32 %v1120_v15, %v1112_v28  ;;  %v1042_v10 = vadd.f32 %v6233_v27, %v1029_v38  ;;  %v1244_v9 = vadd.f32 %v1242_v49, %v1240_v59  ;;  %v1944_v1 = vmul.f32 %v6235_v0, %v4704_v35 }
 0x1ed   :  { %v1185_v58 = vmax.f32 %v1125_v32, %v1183_v34  ;;  %v2004_v32 = vmul.f32 %v6235_v0, %v4611_v42  ;;  %v1943_v34 = vmul.f32 %v4086_v33, %v4704_v35  ;;  %v2071_v63 = vmul.f32 %v6238_v48, %v4611_v42 }
 0x1ee   :  { %v1126_v51 = vmax.f32 %v1042_v10, %v1124_v39  ;;  %v1879_v39 = vmul.f32 %v6235_v0, %v4718_v43  ;;  %v1955_v27 = vmul.f32 %v6238_v48, %v4718_v43 }
 0x1ef   :  { %v1269_v41 = vmax.f32 %v1185_v58, %v1267_v25  ;;  %v4727_v25 = vld [vmem:[#allocation1 + $0x23] ss:$4 sm:$0xff] }
 0x1f0   :  { %1861 = vrot.lane.b32.xlu2 %v1856_v46, %s3340_s20  ;;  %1931 = vrot.lane.b32.xlu1 %v1927_v53, %s3340_s20  ;;  %6236 = vst [vmem:[#allocation13_spill] sm:$0xff] %v4727_v25 }
 0x1f1   :  { %1921 = vrot.lane.b32.xlu0 %v1916_v13, %s3340_s20  ;;  %v1272_v2 = vadd.f32 %v1271_v30, %v1269_v41  ;;  %v4738_v41 = vstv %s3056_s29  ;;  %s3072_s29 = sld [smem:[#allocation2 + $0x206]] }
 0x1f2   :  { %v4677_v44 = vpop.permute.xlu2 %1627  ;;  %v1252_v29 = vpop.permute.xlu1 %1251  ;;  %v1478_v19 = vmul.f32 %v4132_v36, %v4738_v41 }
 0x1f3   :  { %v1180_v62 = vpop.permute.xlu0 %1179  ;;  %v4683_v52 = vmax.f32 %v1272_v2, 0.0  ;;  %v1256_v3 = vadd.f32 %v1252_v29, %v1244_v9 }
 0x1f4   :  { %v1184_v31 = vadd.f32 %v1180_v62, %v1172_v47  ;;  %v2072_v47 = vmul.f32 %v4175_v11, %v4611_v42 }
 0x1f5   :  { %1298 = vst.sshfl [vmem:[#allocation1] sm:$0xff pattern:$0x73625140] %v4683_v52  ;;  %v1287_v58 = vrot.slane %v4683_v52, 1 }
 0x1f6   :  { %v1186_v22 = vmax.f32 %v1126_v51, %v1184_v31 }
 0x1f8   :  { %2063 = vrot.lane.b32.xlu2 %v2059_v6, %s3340_s20  ;;  %2007 = vrot.lane.b32.xlu1 %v2003_v40, %s3340_s20 }
 0x1f9   :  { %1933 = vrot.lane.b32.xlu0 %v1928_v14, %s3340_s20 }
 0x1fa   :  { %v4700_v24 = vpop.permute.xlu2 %1629  ;;  %v4702_v8 = vpop.permute.xlu1 %1483 }
 0x1fb   :  { %v1264_v4 = vpop.permute.xlu0 %1263 }
 0x1fc   :  { %v4706_v57 = vld [vmem:[#allocation1 + $0x1] ss:$4 sm:$0xff]  ;;  %v1268_v26 = vadd.f32 %v1264_v4, %v1256_v3  ;;  %v2087_v3 = vmul.f32 %v4122_v45, %v4704_v35  ;;  %v2023_v4 = vmul.f32 %v4122_v45, %v4718_v43 }
 0x1fd   :  { %6234 = vst [vmem:[#allocation27_spill] sm:$0xff] %v4706_v57 }
 0x1fe   :  { %1315 = vst.sshfl [vmem:[#allocation1] sm:$0xff pattern:$0x73625140] %v4683_v52  ;;  %v1270_v15 = vmax.f32 %v1186_v22, %v1268_v26  ;;  %v1956_v22 = vmul.f32 %v4175_v11, %v4718_v43  ;;  %v2088_v11 = vmul.f32 %v4234_v17, %v4704_v35 }
 0x200   :  { %v1273_v60 = vadd.f32 %v1271_v30, %v1270_v15  ;;  %2065 = vrot.lane.b32.xlu2 %v2060_v18, %s3340_s20  ;;  %2009 = vrot.lane.b32.xlu1 %v2004_v32, %s3340_s20  ;;  %v4812_v18 = vstv %s3073_s10  ;;  %s3001_s10 = sshll.u32 %s6166_s7, 4  ;;  %s3002_s10 = int_to_ptr.hbm [resolvable:$true] %s3001_s10 }
 0x201   :  { %1947 = vrot.lane.b32.xlu0 %v1943_v34, %s3340_s20 }
 0x202   :  { %v4720_v46 = vmax.f32 %v1273_v60, 0.0  ;;  %v4722_v53 = vpop.permute.xlu2 %1513  ;;  %v4724_v61 = vpop.permute.xlu1 %1495  ;;  %v2024_v60 = vmul.f32 %v4234_v17, %v4718_v43 }
 0x203   :  { %v1486_v13 = vpop.permute.xlu0 %1485 }
 0x204   :  { %1301 = vst.sshfl [vmem:[#allocation1 + $0x20] sm:$0xff pattern:$0x73625140] %v4720_v46  ;;  %v1290_v30 = vsel %vm391_vm0, %v4720_v46, %v1287_v58  ;;  %v1280_v16 = vrot.slane %v4720_v46, 7  ;;  %v1490_v49 = vadd.f32 %v1486_v13, %v1478_v19  ;;  %v1971_v58 = vmul.f32 %v4122_v45, %v4812_v18  ;;  %v4856_v19 = vld [vmem:[%s6159_s0] sm:$0xff] }
 0x205   :  { %v4729_v7 = vld [vmem:[#allocation1 + $0x1] ss:$4 sm:$0xff]  ;;  %v1291_v2 = vsel %vm393_vm1, %v4720_v46, %v1290_v30  ;;  %v4831_v13 = vstv %s3074_s11  ;;  %v1972_v45 = vmul.f32 %v4234_v17, %v4812_v18  ;;  %s3062_s11 = sld [smem:[#allocation2 + $0x186]] }
 0x206   :  { %6237 = vst [vmem:[#allocation30_spill] sm:$0xff] %v4729_v7  ;;  %v1292_v33 = vsel %vm395_vm2, %v4720_v46, %v1291_v2  ;;  %v1281_v29 = vsel %vm391_vm0, %v1280_v16, %v4683_v52 }
 0x207   :  { %1332 = vst.sshfl [vmem:[#allocation1] sm:$0xff pattern:$0x73625140] %v4683_v52  ;;  %v4752_v20 = vsel %vm397_vm3, %v4720_v46, %v1292_v33  ;;  %v1282_v37 = vsel %vm393_vm1, %v1280_v16, %v1281_v29  ;;  %v1411_v33 = vmul.f32 %v4856_v19, %v4738_v41  ;;  %v6246_v29 = vld [vmem:[#allocation11_spill] sm:$0xff] }
 0x208   :  { %6239 = vst [vmem:[#allocation16_spill] sm:$0xff] %v4752_v20  ;;  %1949 = vrot.lane.b32.xlu2 %v1944_v1, %s3340_s20  ;;  %1882 = vrot.lane.b32.xlu1 %v1878_v56, %s3340_s20  ;;  %v1283_v59 = vsel %vm395_vm2, %v1280_v16, %v1282_v37  ;;  %v1414_v37 = vmul.f32 %v4310_v12, %v6246_v29 }
 0x209   :  { %2075 = vrot.lane.b32.xlu0 %v2071_v63, %s3340_s20  ;;  %v1284_v40 = vsel %vm397_vm3, %v1280_v16, %v1283_v59  ;;  %v2099_v16 = vmul.f32 %v4150_v54, %v4718_v43  ;;  %v4867_v54 = vld [vmem:[%s6159_s0 + $0x10] sm:$0xff] }
 0x20a   :  { %v4760_v36 = vpop.permute.xlu2 %1448  ;;  %v4762_v62 = vpop.permute.xlu1 %1571  ;;  %1286 = vst.msk [vmem:[%s6167_s8 + $0x2] sm:$0x3] %vm400_vm4, %v1284_v40  ;;  %v4874_v59 = vld [vmem:[%s6159_s0 + $0x30] sm:$0xff] }
 0x20b   :  { %v4765_v28 = vld [vmem:[#allocation1 + $0x21] ss:$4 sm:$0xff]  ;;  %v1498_v6 = vpop.permute.xlu0 %1497 }
 0x20c   :  { %1318 = vst.sshfl [vmem:[#allocation1 + $0x20] sm:$0xff pattern:$0x73625140] %v4720_v46  ;;  %v4771_v38 = vadd.f32 %v1498_v6, %v1490_v49  ;;  %v1412_v49 = vmul.f32 %v4867_v54, %v4738_v41  ;;  %v1415_v6 = vmul.f32 %v4874_v59, %v6246_v29 }
 0x20e   :  { %v4768_v14 = vld [vmem:[#allocation1 + $0x2] ss:$4 sm:$0xff] }
 0x20f   :  { %6240 = vst [vmem:[#allocation31_spill] sm:$0xff] %v4768_v14 }
 0x210   :  { %1349 = vst.sshfl [vmem:[#allocation1] sm:$0xff pattern:$0x73625140] %v4683_v52  ;;  %1884 = vrot.lane.b32.xlu2 %v1879_v39, %s3340_s20  ;;  %2077 = vrot.lane.b32.xlu1 %v2072_v47, %s3340_s20  ;;  %v1416_v47 = vadd.f32 %v1414_v37, %v1411_v33  ;;  %v4921_v37 = vld [vmem:[%s6159_s0 + $0x50] sm:$0xff] }
 0x211   :  { %1959 = vrot.lane.b32.xlu0 %v1955_v27, %s3340_s20 }
 0x212   :  { %v4787_v10 = vpop.permute.xlu2 %1655  ;;  %v4789_v9 = vpop.permute.xlu1 %1573 }
 0x213   :  { %v4791_v42 = vld [vmem:[#allocation1 + $0x21] ss:$4 sm:$0xff]  ;;  %v4793_v31 = vpop.permute.xlu0 %1511 }
 0x214   :  { %6241 = vst [vmem:[#allocation32_spill] sm:$0xff] %v4791_v42 }
 0x215   :  { %1335 = vst.sshfl [vmem:[#allocation1 + $0x20] sm:$0xff pattern:$0x73625140] %v4720_v46 }
 0x217   :  { %v4795_v51 = vld [vmem:[#allocation1 + $0x2] ss:$4 sm:$0xff] }
 0x218   :  { %6242 = vst [vmem:[#allocation33_spill] sm:$0xff] %v4795_v51  ;;  %2091 = vrot.lane.b32.xlu2 %v2087_v3, %s3340_s20  ;;  %2027 = vrot.lane.b32.xlu1 %v2023_v4, %s3340_s20  ;;  %v1477_v4 = vmul.f32 %v4310_v12, %v4738_v41  ;;  %v4906_v12 = vld [vmem:[%s6159_s0 + $0x40] sm:$0xff]  ;;  %v4971_v51 = vstv %s3062_s11  ;;  %s5745_s11 = sld [smem:[#allocation5 + $0x5]] }
 0x219   :  { %1366 = vst.sshfl [vmem:[#allocation1] sm:$0xff pattern:$0x73625140] %v4683_v52  ;;  %1961 = vrot.lane.b32.xlu0 %v1956_v22, %s3340_s20  ;;  %v1902_v22 = vmul.f32 %v4234_v17, %v4831_v13 }
 0x21a   :  { %v4808_v26 = vpop.permute.xlu2 %1657  ;;  %v4810_v0 = vpop.permute.xlu1 %1446  ;;  %v1489_v33 = vadd.f32 %v4702_v8, %v1477_v4 }
 0x21b   :  { %v4816_v34 = vpop.permute.xlu0 %1639 }
 0x21c   :  { %v4814_v32 = vld [vmem:[#allocation1 + $0x22] ss:$4 sm:$0xff]  ;;  %v1501_v23 = vadd.f32 %v4724_v61, %v1489_v33 }
 0x21d   :  { %6243 = vst [vmem:[#allocation34_spill] sm:$0xff] %v4814_v32  ;;  %v4953_v61 = vld [vmem:[%s6159_s0 + $0x70] sm:$0xff] }
 0x21e   :  { %1352 = vst.sshfl [vmem:[#allocation1 + $0x20] sm:$0xff pattern:$0x73625140] %v4720_v46 }
 0x220   :  { %v4818_v15 = vld [vmem:[#allocation1 + $0x3] ss:$4 sm:$0xff]  ;;  %2093 = vrot.lane.b32.xlu2 %v2088_v11, %s3340_s20  ;;  %2029 = vrot.lane.b32.xlu1 %v2024_v60, %s3340_s20  ;;  %v2100_v11 = vmul.f32 %v4282_v21, %v4718_v43  ;;  %v1417_v60 = vadd.f32 %v1415_v6, %v1412_v49  ;;  %v1429_v43 = vadd.f32 %v4621_v50, %v1416_v47 }
 0x221   :  { %6244 = vst [vmem:[#allocation35_spill] sm:$0xff] %v4818_v15  ;;  %1975 = vrot.lane.b32.xlu0 %v1971_v58, %s3340_s20  ;;  %v4897_v58 = vld [vmem:[%s6159_s0 + $0x21] sm:$0xff]  ;;  %v1621_v6 = vmul.f32 %v6238_v48, %v4738_v41 }
 0x222   :  { %1383 = vst.sshfl [vmem:[#allocation1] sm:$0xff pattern:$0x73625140] %v4683_v52  ;;  %v4833_v1 = vpop.permute.xlu2 %1541  ;;  %v4835_v56 = vpop.permute.xlu1 %1641  ;;  %v4847_v52 = vld [vmem:[%s6159_s0 + $0x1] sm:$0xff]  ;;  %v1430_v49 = vadd.f32 %v4652_v55, %v1417_v60 }
 0x223   :  { %v4839_v63 = vpop.permute.xlu0 %1523  ;;  %v1901_v2 = vmul.f32 %v4847_v52, %v4831_v13  ;;  %v6248_v55 = vld [vmem:[#allocation14_spill] sm:$0xff] }
 0x224   :  { %v1437_v60 = vmul.f32 %v6238_v48, %v6248_v55 }
 0x225   :  { %v4837_v30 = vld [vmem:[#allocation1 + $0x22] ss:$4 sm:$0xff] }
 0x226   :  { %6245 = vst [vmem:[#allocation36_spill] sm:$0xff] %v4837_v30 }
 0x227   :  { %1369 = vst.sshfl [vmem:[#allocation1 + $0x20] sm:$0xff pattern:$0x73625140] %v4720_v46 }
 0x228   :  { %1977 = vrot.lane.b32.xlu2 %v1972_v45, %s3340_s20  ;;  %1905 = vrot.lane.b32.xlu1 %v1901_v2, %s3340_s20  ;;  %v1983_v45 = vmul.f32 %v4897_v58, %v4831_v13  ;;  %v4901_v2 = vstv %s3059_s15  ;;  %s3351_s15 = smov 88  }
 0x229   :  { %2103 = vrot.lane.b32.xlu0 %v2099_v16, %s3340_s20  ;;  %v1432_v17 = vmul.f32 %v4906_v12, %v4901_v2  ;;  %v1563_v16 = vmul.f32 %v6238_v48, %v6246_v29  ;;  %v1433_v50 = vmul.f32 %v4921_v37, %v4901_v2  ;;  %v1579_v33 = vmul.f32 %v4847_v52, %v4901_v2 }
 0x22a   :  { %v4879_v40 = vpop.permute.xlu2 %1471  ;;  %v4881_v39 = vpop.permute.xlu1 %1591 }
 0x22b   :  { %v4885_v3 = vpop.permute.xlu0 %1525  ;;  %v1434_v4 = vadd.f32 %v1432_v17, %v1429_v43  ;;  %v1435_v43 = vadd.f32 %v1433_v50, %v1430_v49  ;;  %v1647_v50 = vmul.f32 %v4897_v58, %v4901_v2  ;;  %v1504_v49 = vmul.f32 %v4953_v61, %v4901_v2 }
 0x22d   :  { %v1439_v30 = vadd.f32 %v1437_v60, %v1434_v4 }
 0x22e   :  { %v4883_v27 = vld [vmem:[#allocation1 + $0x23] ss:$4 sm:$0xff] }
 0x22f   :  { %6247 = vst [vmem:[#allocation11_spill] sm:$0xff] %v4883_v27  ;;  %v1452_v4 = vadd.f32 %v4810_v0, %v1439_v30  ;;  %v4995_v0 = vld [vmem:[%s6159_s0 + $0x61] sm:$0xff] }
 0x230   :  { %1386 = vst.sshfl [vmem:[#allocation1 + $0x20] sm:$0xff pattern:$0x73625140] %v4720_v46  ;;  %v1561_v46 = vmul.f32 %v4906_v12, %v4738_v41  ;;  %1907 = vrot.lane.b32.xlu2 %v1902_v22, %s3340_s20  ;;  %2105 = vrot.lane.b32.xlu1 %v2100_v11, %s3340_s20  ;;  %v1503_v11 = vmul.f32 %v6238_v48, %v4901_v2 }
 0x231   :  { %1987 = vrot.lane.b32.xlu0 %v1983_v45, %s3340_s20  ;;  %v4943_v45 = vld [vmem:[%s6159_s0 + $0x41] sm:$0xff]  ;;  %v1438_v48 = vmul.f32 %v4953_v61, %v6248_v55  ;;  %v2127_v30 = vmul.f32 %v4995_v0, %v4831_v13  ;;  %v1675_v57 = vmul.f32 %v4995_v0, %v4971_v51 }
 0x232   :  { %v4929_v8 = vpop.permute.xlu2 %1683  ;;  %v4931_v47 = vpop.permute.xlu1 %1593  ;;  %v1565_v22 = vadd.f32 %v1563_v16, %v1561_v46  ;;  %v2115_v15 = vmul.f32 %v4943_v45, %v4812_v18  ;;  %v2043_v17 = vmul.f32 %v4943_v45, %v4831_v13  ;;  %v1633_v46 = vadd.f32 %v4677_v44, %v1621_v6 }
 0x233   :  { %v4935_v25 = vpop.permute.xlu0 %1539  ;;  %v1984_v16 = vmul.f32 %v4282_v21, %v4831_v13  ;;  %v1505_v6 = vadd.f32 %v1503_v11, %v1501_v23  ;;  %v1440_v21 = vadd.f32 %v1438_v48, %v1435_v43  ;;  %v1564_v23 = vmul.f32 %v4953_v61, %v6246_v29 }
 0x234   :  { %v1577_v27 = vadd.f32 %v4762_v62, %v1565_v22  ;;  %v1645_v44 = vadd.f32 %v4816_v34, %v1633_v46  ;;  %v1562_v62 = vmul.f32 %v4921_v37, %v4738_v41  ;;  %v1583_v43 = vmul.f32 %v4897_v58, %v6248_v55 }
 0x235   :  { %v1517_v34 = vadd.f32 %v4793_v31, %v1505_v6  ;;  %v1531_v46 = vmul.f32 %v4897_v58, %v4971_v51  ;;  %v1506_v29 = vadd.f32 %v1504_v49, %v4771_v38  ;;  %v6249_v49 = vld [vmem:[#allocation23_spill] sm:$0xff]  ;;  %v1599_v32 = vmul.f32 %v4943_v45, %v4971_v51 }
 0x236   :  { %v1581_v60 = vadd.f32 %v1579_v33, %v1577_v27  ;;  %v5002_v27 = vld [vmem:[%s6159_s0 + $0x51] sm:$0xff]  ;;  %v1460_v6 = vmul.f32 %v4897_v58, %v6249_v49 }
 0x237   :  { %v1529_v31 = vadd.f32 %v4839_v63, %v1517_v34  ;;  %v2044_v38 = vmul.f32 %v5002_v27, %v4831_v13  ;;  %v5011_v63 = vld [vmem:[%s6159_s0 + $0x11] sm:$0xff]  ;;  %v1453_v34 = vadd.f32 %v4760_v36, %v1440_v21  ;;  %v1518_v7 = vadd.f32 %v4722_v53, %v1506_v29 }
 0x238   :  { %2119 = vrot.lane.b32.xlu2 %v2115_v15, %s3340_s20  ;;  %2047 = vrot.lane.b32.xlu1 %v2043_v17, %s3340_s20  ;;  %v1455_v15 = vmul.f32 %v4847_v52, %v4971_v51  ;;  %v1649_v17 = vadd.f32 %v1647_v50, %v1645_v44  ;;  %v1456_v33 = vmul.f32 %v5011_v63, %v4971_v51  ;;  %v5029_v36 = vstv %s4969_s1  ;;  %v5037_v53 = vld [vmem:[%s6159_s0 + $0x31] sm:$0xff]  ;;  %s3081_s1 = sld [smem:[#allocation2 + $0x285]] }
 0x239   :  { %1989 = vrot.lane.b32.xlu0 %v1984_v16, %s3340_s20  ;;  %v2116_v16 = vmul.f32 %v5002_v27, %v4812_v18  ;;  %v1566_v50 = vadd.f32 %v1564_v23, %v1562_v62  ;;  %v1585_v14 = vadd.f32 %v1583_v43, %v1581_v60  ;;  %v1533_v20 = vadd.f32 %v1531_v46, %v1529_v31 }
 0x23a   :  { %v4984_v22 = vpop.permute.xlu2 %1695  ;;  %v1470_v11 = vpop.permute.xlu1 %1469  ;;  %v1457_v44 = vadd.f32 %v1455_v15, %v1452_v4  ;;  %v1661_v42 = vadd.f32 %v4787_v10, %v1649_v17  ;;  %v5032_v21 = vstv %s4976_s22  ;;  %v1532_v10 = vmul.f32 %v5037_v53, %v4971_v51  ;;  %s3066_s22 = sld [smem:[#allocation2 + $0x200]] }
 0x23b   :  { %v1668_v48 = vpop.permute.xlu0 %1667  ;;  %v1597_v62 = vadd.f32 %v4881_v39, %v1585_v14  ;;  %v1530_v15 = vadd.f32 %v4885_v3, %v1518_v7  ;;  %v1545_v4 = vadd.f32 %v4935_v25, %v1533_v20  ;;  %v1622_v60 = vmul.f32 %v4953_v61, %v4738_v41  ;;  %v5059_v41 = vld [vmem:[%s6159_s0 + $0x71] sm:$0xff] }
 0x23c   :  { %v1673_v23 = vadd.f32 %v1668_v48, %v1661_v42  ;;  %v1462_v14 = vadd.f32 %v1460_v6, %v1457_v44  ;;  %v1580_v17 = vmul.f32 %v5011_v63, %v4901_v2  ;;  %v1578_v43 = vadd.f32 %v4789_v9, %v1566_v50 }
 0x23d   :  { %v2289_v7 = vmul.f32 %v4856_v19, %v5029_v36  ;;  %v2349_v25 = vmul.f32 %v4856_v19, %v5032_v21  ;;  %v1601_v20 = vadd.f32 %v1599_v32, %v1597_v62  ;;  %v2128_v31 = vmul.f32 %v5059_v41, %v4831_v13 }
 0x23e   :  { %v1475_v48 = vadd.f32 %v1470_v11, %v1462_v14  ;;  %v1677_v3 = vadd.f32 %v1675_v57, %v1673_v23  ;;  %v1603_v9 = vmul.f32 %v4995_v0, %v6249_v49  ;;  %v1458_v11 = vadd.f32 %v1456_v33, %v1453_v34 }
 0x23f   :  { %v1582_v57 = vadd.f32 %v1580_v17, %v1578_v43  ;;  %v1584_v32 = vmul.f32 %v5037_v53, %v6248_v55  ;;  %v1634_v50 = vadd.f32 %v4700_v24, %v1622_v60  ;;  %v1648_v44 = vmul.f32 %v5037_v53, %v4901_v2 }
 0x240   :  { %2131 = vrot.lane.b32.xlu2 %v2127_v30, %s3340_s20  ;;  %2121 = vrot.lane.b32.xlu1 %v2116_v16, %s3340_s20  ;;  %v1461_v30 = vmul.f32 %v5037_v53, %v6249_v49  ;;  %v1534_v16 = vadd.f32 %v1532_v10, %v1530_v15  ;;  %v1689_v13 = vadd.f32 %v4929_v8, %v1677_v3 }
 0x241   :  { %2049 = vrot.lane.b32.xlu0 %v2044_v38, %s3340_s20  ;;  %v1605_v33 = vadd.f32 %v1603_v9, %v1601_v20  ;;  %v1646_v6 = vadd.f32 %v4835_v56, %v1634_v50  ;;  %v1586_v23 = vadd.f32 %v1584_v32, %v1582_v57  ;;  %v2290_v14 = vmul.f32 %v4867_v54, %v5029_v36  ;;  %v5088_v56 = vld [vmem:[%s6159_s0 + $0x20] sm:$0xff] }
 0x242   :  { %v5043_v42 = vpop.permute.xlu2 %1859  ;;  %v5045_v39 = vpop.permute.xlu1 %1669  ;;  %v1463_v34 = vadd.f32 %v1461_v30, %v1458_v11  ;;  %v1546_v24 = vadd.f32 %v4833_v1, %v1534_v16  ;;  %v2361_v2 = vmul.f32 %v5088_v56, %v5029_v36  ;;  %v1600_v1 = vmul.f32 %v5002_v27, %v4971_v51  ;;  %v5109_v30 = vld [vmem:[#allocation1 + $0x3] ss:$4 sm:$0xff] }
 0x243   :  { %v1552_v46 = vpop.permute.xlu0 %1551  ;;  %v1701_v17 = vadd.f32 %v4984_v22, %v1689_v13  ;;  %v1650_v43 = vadd.f32 %v1648_v44, %v1646_v6  ;;  %v1604_v9 = vmul.f32 %v5059_v41, %v6249_v49  ;;  %v2437_v57 = vmul.f32 %v4906_v12, %v5029_v36 }
 0x244   :  { %v1557_v29 = vadd.f32 %v1552_v46, %v1545_v4  ;;  %v1476_v8 = vadd.f32 %v4879_v40, %v1463_v34  ;;  %v2350_v40 = vmul.f32 %v4867_v54, %v5032_v21  ;;  %v1598_v46 = vadd.f32 %v4931_v47, %v1586_v23 }
 0x245   :  { %v1662_v3 = vadd.f32 %v4808_v26, %v1650_v43  ;;  %v2493_v26 = vmul.f32 %v4906_v12, %v5032_v21  ;;  %v2362_v49 = vmul.f32 %v4874_v59, %v5029_v36  ;;  %v5128_v44 = vstv %s3080_s16  ;;  %s5622_s16 = sld [smem:[#allocation2 + $0x286]] }
 0x246   :  { %v1559_v38 = vmax.f32 %v1475_v48, %v1557_v29  ;;  %v1705_v29 = vstv %s5067_s12  ;;  %v1602_v20 = vadd.f32 %v1600_v1, %v1598_v46  ;;  %6250 = vst [vmem:[#allocation14_spill] sm:$0xff] %v5128_v44  ;;  %v2494_v23 = vmul.f32 %v4921_v37, %v5032_v21  ;;  %s3350_s12 = smov 80  }
 0x247   :  { %v1674_v16 = vadd.f32 %v5045_v39, %v1662_v3  ;;  %v2378_v46 = vmul.f32 %v4921_v37, %v5128_v44  ;;  %v5168_v3 = vld [vmem:[%s6159_s0 + $0x60] sm:$0xff] }
 0x248   :  { %2293 = vrot.lane.b32.xlu2 %v2289_v7, %s3340_s20  ;;  %2353 = vrot.lane.b32.xlu1 %v2349_v25, %s3340_s20  ;;  %v1606_v32 = vadd.f32 %v1604_v9, %v1602_v20  ;;  %v5163_v20 = vstv %s3066_s22 }
 0x249   :  { %2133 = vrot.lane.b32.xlu0 %v2128_v31, %s3340_s20 }
 0x24a   :  { %v5079_v62 = vpop.permute.xlu2 %1861  ;;  %v1612_v55 = vpop.permute.xlu1 %1611 }
 0x24b   :  { %v1617_v10 = vadd.f32 %v1612_v55, %v1605_v33  ;;  %v1554_v15 = vpop.permute.xlu0 %1553 }
 0x24c   :  { %v1558_v4 = vadd.f32 %v1554_v15, %v1546_v24  ;;  %v2377_v15 = vmul.f32 %v4906_v12, %v5128_v44 }
 0x24d   :  { %v1619_v60 = vmax.f32 %v1559_v38, %v1617_v10  ;;  %v1676_v38 = vmul.f32 %v5059_v41, %v4971_v51  ;;  %v2438_v10 = vmul.f32 %v4921_v37, %v5029_v36 }
 0x24e   :  { %v1560_v48 = vmax.f32 %v1476_v8, %v1558_v4 }
 0x24f   :  { %v1703_v7 = vmax.f32 %v1619_v60, %v1701_v17  ;;  %v1678_v50 = vadd.f32 %v1676_v38, %v1674_v16 }
 0x250   :  { %2295 = vrot.lane.b32.xlu2 %v2290_v14, %s3340_s20  ;;  %2365 = vrot.lane.b32.xlu1 %v2361_v2, %s3340_s20  ;;  %v5142_v14 = vstv %s3081_s1 }
 0x251   :  { %2355 = vrot.lane.b32.xlu0 %v2350_v40, %s3340_s20  ;;  %v1706_v25 = vadd.f32 %v1705_v29, %v1703_v7  ;;  %v5151_v40 = vld [vmem:[#allocation1 + $0x23] ss:$4 sm:$0xff] }
 0x252   :  { %v5103_v22 = vpop.permute.xlu2 %2063  ;;  %v1686_v31 = vpop.permute.xlu1 %1685 }
 0x253   :  { %v1614_v47 = vpop.permute.xlu0 %1613  ;;  %v5107_v11 = vmax.f32 %v1706_v25, 0.0  ;;  %v1690_v51 = vadd.f32 %v1686_v31, %v1678_v50  ;;  %v2505_v31 = vmul.f32 %v5168_v3, %v5029_v36 }
 0x254   :  { %v1618_v13 = vadd.f32 %v1614_v47, %v1606_v32  ;;  %v1914_v47 = vmul.f32 %v4874_v59, %v5163_v20 }
 0x255   :  { %1734 = vst.sshfl [vmem:[#allocation1] sm:$0xff pattern:$0x73625140] %v5107_v11  ;;  %v1723_v17 = vrot.slane %v5107_v11, 1 }
 0x256   :  { %v1620_v34 = vmax.f32 %v1560_v48, %v1618_v13  ;;  %v2312_v48 = vmul.f32 %v4906_v12, %v5142_v14 }
 0x258   :  { %2497 = vrot.lane.b32.xlu2 %v2493_v26, %s3340_s20  ;;  %2441 = vrot.lane.b32.xlu1 %v2437_v57, %s3340_s20 }
 0x259   :  { %2367 = vrot.lane.b32.xlu0 %v2362_v49, %s3340_s20 }
 0x25a   :  { %v5124_v39 = vpop.permute.xlu2 %2065  ;;  %v5126_v33 = vpop.permute.xlu1 %1919 }
 0x25b   :  { %v1698_v6 = vpop.permute.xlu0 %1697 }
 0x25c   :  { %v5130_v55 = vld [vmem:[#allocation1 + $0x1] ss:$4 sm:$0xff]  ;;  %v1702_v24 = vadd.f32 %v1698_v6, %v1690_v51 }
 0x25d   :  { %6251 = vst [vmem:[#allocation23_spill] sm:$0xff] %v5130_v55  ;;  %v1999_v55 = vmul.f32 %v5168_v3, %v4614_v5 }
 0x25e   :  { %1751 = vst.sshfl [vmem:[#allocation1] sm:$0xff pattern:$0x73625140] %v5107_v11  ;;  %v1704_v8 = vmax.f32 %v1620_v34, %v1702_v24 }
 0x260   :  { %v1707_v4 = vadd.f32 %v1705_v29, %v1704_v8  ;;  %2499 = vrot.lane.b32.xlu2 %v2494_v23, %s3340_s20  ;;  %2443 = vrot.lane.b32.xlu1 %v2438_v10, %s3340_s20  ;;  %v2313_v23 = vmul.f32 %v4921_v37, %v5142_v14  ;;  %v2506_v10 = vmul.f32 %v4953_v61, %v5029_v36 }
 0x261   :  { %2381 = vrot.lane.b32.xlu0 %v2377_v15, %s3340_s20  ;;  %v2389_v8 = vmul.f32 %v5168_v3, %v5142_v14 }
 0x262   :  { %v5144_v2 = vmax.f32 %v1707_v4, 0.0  ;;  %v5146_v1 = vpop.permute.xlu2 %1949  ;;  %v5148_v60 = vpop.permute.xlu1 %1931 }
 0x263   :  { %v1922_v43 = vpop.permute.xlu0 %1921 }
 0x264   :  { %1737 = vst.sshfl [vmem:[#allocation1 + $0x20] sm:$0xff pattern:$0x73625140] %v5144_v2  ;;  %v1714_v7 = vrot.slane %v5144_v2, 7  ;;  %v1726_v25 = vsel %vm391_vm0, %v5144_v2, %v1723_v17  ;;  %v1926_v50 = vadd.f32 %v1922_v43, %v1914_v47  ;;  %v5239_v47 = vstv %s3083_s26 }
 0x265   :  { %v5158_v29 = vld [vmem:[#allocation1 + $0x1] ss:$4 sm:$0xff]  ;;  %v1727_v9 = vsel %vm393_vm1, %v5144_v2, %v1726_v25  ;;  %v2390_v25 = vmul.f32 %v4953_v61, %v5142_v14 }
 0x266   :  { %6252 = vst [vmem:[#allocation37_spill] sm:$0xff] %v5158_v29  ;;  %v1715_v16 = vsel %vm391_vm0, %v1714_v7, %v5107_v11  ;;  %v1728_v38 = vsel %vm395_vm2, %v5144_v2, %v1727_v9 }
 0x267   :  { %1768 = vst.sshfl [vmem:[#allocation1] sm:$0xff pattern:$0x73625140] %v5107_v11  ;;  %v1716_v26 = vsel %vm393_vm1, %v1714_v7, %v1715_v16  ;;  %v5184_v57 = vsel %vm397_vm3, %v5144_v2, %v1728_v38 }
 0x268   :  { %6253 = vst [vmem:[#allocation38_spill] sm:$0xff] %v5184_v57  ;;  %2383 = vrot.lane.b32.xlu2 %v2378_v46, %s3340_s20  ;;  %2316 = vrot.lane.b32.xlu1 %v2312_v48, %s3340_s20  ;;  %v1717_v49 = vsel %vm395_vm2, %v1714_v7, %v1716_v26  ;;  %v2521_v46 = vmul.f32 %v4847_v52, %v5128_v44 }
 0x269   :  { %2509 = vrot.lane.b32.xlu0 %v2505_v31, %s3340_s20  ;;  %v5191_v32 = vsel %vm397_vm3, %v1714_v7, %v1717_v49  ;;  %v2457_v48 = vmul.f32 %v4847_v52, %v5142_v14  ;;  %v2522_v26 = vmul.f32 %v5011_v63, %v5128_v44  ;;  %v2458_v49 = vmul.f32 %v5011_v63, %v5142_v14 }
 0x26a   :  { %6254 = vst [vmem:[#allocation39_spill] sm:$0xff] %v5191_v32  ;;  %v5193_v13 = vpop.permute.xlu2 %1884  ;;  %v5195_v51 = vpop.permute.xlu1 %2007  ;;  %v1997_v57 = vmul.f32 %v4906_v12, %v5163_v20  ;;  %v5349_v44 = vstv %s3072_s29  ;;  %s3348_s29 = smov 64  }
 0x26b   :  { %v5197_v6 = vld [vmem:[#allocation1 + $0x21] ss:$4 sm:$0xff]  ;;  %v1934_v34 = vpop.permute.xlu0 %1933 }
 0x26c   :  { %6255 = vst [vmem:[#allocation40_spill] sm:$0xff] %v5197_v6  ;;  %v5200_v24 = vadd.f32 %v1934_v34, %v1926_v50  ;;  %v2405_v34 = vmul.f32 %v4847_v52, %v5239_v47 }
 0x26d   :  { %1754 = vst.sshfl [vmem:[#allocation1 + $0x20] sm:$0xff pattern:$0x73625140] %v5144_v2 }
 0x26e   :  { %v5206_v15 = vld [vmem:[#allocation1 + $0x2] ss:$4 sm:$0xff] }
 0x26f   :  { %6256 = vst [vmem:[#allocation41_spill] sm:$0xff] %v5206_v15 }
 0x270   :  { %1785 = vst.sshfl [vmem:[#allocation1] sm:$0xff pattern:$0x73625140] %v5107_v11  ;;  %2318 = vrot.lane.b32.xlu2 %v2313_v23, %s3340_s20  ;;  %2511 = vrot.lane.b32.xlu1 %v2506_v10, %s3340_s20  ;;  %v5258_v23 = vstv %s3084_s27 }
 0x271   :  { %2393 = vrot.lane.b32.xlu0 %v2389_v8, %s3340_s20  ;;  %v2417_v29 = vmul.f32 %v4897_v58, %v5258_v23 }
 0x272   :  { %v5214_v4 = vpop.permute.xlu2 %2091  ;;  %v5216_v17 = vpop.permute.xlu1 %2009 }
 0x273   :  { %v5220_v36 = vpop.permute.xlu0 %1947 }
 0x274   :  { %v5218_v43 = vld [vmem:[#allocation1 + $0x21] ss:$4 sm:$0xff] }
 0x275   :  { %6257 = vst [vmem:[#allocation42_spill] sm:$0xff] %v5218_v43 }
 0x276   :  { %1771 = vst.sshfl [vmem:[#allocation1 + $0x20] sm:$0xff pattern:$0x73625140] %v5144_v2 }
 0x277   :  { %v5227_v7 = vld [vmem:[#allocation1 + $0x2] ss:$4 sm:$0xff] }
 0x278   :  { %6258 = vst [vmem:[#allocation43_spill] sm:$0xff] %v5227_v7  ;;  %2525 = vrot.lane.b32.xlu2 %v2521_v46, %s3340_s20  ;;  %2461 = vrot.lane.b32.xlu1 %v2457_v48, %s3340_s20 }
 0x279   :  { %1802 = vst.sshfl [vmem:[#allocation1] sm:$0xff pattern:$0x73625140] %v5107_v11  ;;  %2395 = vrot.lane.b32.xlu0 %v2390_v25, %s3340_s20  ;;  %v2406_v25 = vmul.f32 %v5011_v63, %v5239_v47 }
 0x27a   :  { %v5235_v31 = vpop.permute.xlu2 %2093  ;;  %v5237_v9 = vpop.permute.xlu1 %1882 }
 0x27b   :  { %v5241_v16 = vpop.permute.xlu0 %2075 }
 0x27d   :  { %v5243_v38 = vld [vmem:[#allocation1 + $0x22] ss:$4 sm:$0xff] }
 0x27e   :  { %6259 = vst [vmem:[#allocation44_spill] sm:$0xff] %v5243_v38 }
 0x27f   :  { %1788 = vst.sshfl [vmem:[#allocation1 + $0x20] sm:$0xff pattern:$0x73625140] %v5144_v2 }
 0x280   :  { %v5250_v50 = vld [vmem:[#allocation1 + $0x3] ss:$4 sm:$0xff]  ;;  %2527 = vrot.lane.b32.xlu2 %v2522_v26, %s3340_s20  ;;  %2463 = vrot.lane.b32.xlu1 %v2458_v49, %s3340_s20  ;;  %v2533_v26 = vmul.f32 %v4897_v58, %v5142_v14  ;;  %v1847_v49 = vmul.f32 %v4856_v19, %v5163_v20 }
 0x281   :  { %6260 = vst [vmem:[#allocation45_spill] sm:$0xff] %v5250_v50  ;;  %2409 = vrot.lane.b32.xlu0 %v2405_v34, %s3340_s20  ;;  %v1850_v34 = vmul.f32 %v5088_v56, %v4614_v5  ;;  %v1848_v50 = vmul.f32 %v4867_v54, %v5163_v20  ;;  %v2336_v54 = vmul.f32 %v5011_v63, %v5258_v23 }
 0x282   :  { %1819 = vst.sshfl [vmem:[#allocation1] sm:$0xff pattern:$0x73625140] %v5107_v11  ;;  %v5260_v10 = vpop.permute.xlu2 %1977  ;;  %v5262_v8 = vpop.permute.xlu1 %2077  ;;  %v2335_v11 = vmul.f32 %v4847_v52, %v5258_v23 }
 0x283   :  { %v5264_v46 = vpop.permute.xlu0 %1959  ;;  %v1852_v19 = vadd.f32 %v1850_v34, %v1847_v49  ;;  %v5303_v49 = vstv %s3069_s28 }
 0x284   :  { %v1868_v34 = vmul.f32 %v4906_v12, %v5303_v49 }
 0x286   :  { %v5266_v48 = vld [vmem:[#allocation1 + $0x22] ss:$4 sm:$0xff] }
 0x287   :  { %6261 = vst [vmem:[#allocation46_spill] sm:$0xff] %v5266_v48  ;;  %v1851_v48 = vmul.f32 %v4874_v59, %v4614_v5 }
 0x288   :  { %1805 = vst.sshfl [vmem:[#allocation1 + $0x20] sm:$0xff pattern:$0x73625140] %v5144_v2  ;;  %2411 = vrot.lane.b32.xlu2 %v2406_v25, %s3340_s20  ;;  %2339 = vrot.lane.b32.xlu1 %v2335_v11, %s3340_s20  ;;  %v1913_v25 = vmul.f32 %v5088_v56, %v5163_v20  ;;  %v2534_v11 = vmul.f32 %v5037_v53, %v5142_v14 }
 0x289   :  { %2537 = vrot.lane.b32.xlu0 %v2533_v26, %s3340_s20  ;;  %v1853_v26 = vadd.f32 %v1851_v48, %v1848_v50 }
 0x28a   :  { %v5286_v7 = vpop.permute.xlu2 %1907  ;;  %v5288_v15 = vpop.permute.xlu1 %2027  ;;  %v1925_v14 = vadd.f32 %v5126_v33, %v1913_v25  ;;  %v1939_v25 = vmul.f32 %v5168_v3, %v5303_v49 }
 0x28b   :  { %v5290_v38 = vpop.permute.xlu0 %1961  ;;  %v1866_v50 = vadd.f32 %v5079_v62, %v1853_v26  ;;  %v1873_v62 = vmul.f32 %v5168_v3, %v4704_v35  ;;  %v2477_v26 = vmul.f32 %v4943_v45, %v5258_v23 }
 0x28f   :  { %v5292_v43 = vld [vmem:[#allocation1 + $0x23] ss:$4 sm:$0xff] }
 0x290   :  { %6262 = vst [vmem:[#allocation47_spill] sm:$0xff] %v5292_v43  ;;  %v1865_v43 = vadd.f32 %v5043_v42, %v1852_v19  ;;  %2341 = vrot.lane.b32.xlu2 %v2336_v54, %s3340_s20  ;;  %2539 = vrot.lane.b32.xlu1 %v2534_v11, %s3340_s20  ;;  %v2057_v42 = vmul.f32 %v5168_v3, %v5163_v20 }
 0x291   :  { %1822 = vst.sshfl [vmem:[#allocation1 + $0x20] sm:$0xff pattern:$0x73625140] %v5144_v2  ;;  %v1869_v2 = vmul.f32 %v4921_v37, %v5303_v49  ;;  %2421 = vrot.lane.b32.xlu0 %v2417_v29, %s3340_s20  ;;  %v2001_v19 = vadd.f32 %v1999_v55, %v1997_v57  ;;  %v1937_v11 = vadd.f32 %v5148_v60, %v1925_v14 }
 0x292   :  { %v5321_v12 = vpop.permute.xlu2 %2119  ;;  %v5323_v48 = vpop.permute.xlu1 %2029  ;;  %v1870_v33 = vadd.f32 %v1868_v34, %v1865_v43  ;;  %v2549_v29 = vmul.f32 %v4943_v45, %v5239_v47  ;;  %v2069_v6 = vadd.f32 %v5103_v22, %v2057_v42  ;;  %v1874_v55 = vmul.f32 %v4953_v61, %v4704_v35 }
 0x293   :  { %v1976_v54 = vpop.permute.xlu0 %1975  ;;  %v1871_v32 = vadd.f32 %v1869_v2, %v1866_v50  ;;  %v2418_v57 = vmul.f32 %v5037_v53, %v5258_v23  ;;  %v2015_v60 = vmul.f32 %v4847_v52, %v5303_v49  ;;  %v2013_v43 = vadd.f32 %v5195_v51, %v2001_v19 }
 0x294   :  { %v2083_v34 = vmul.f32 %v4897_v58, %v5303_v49  ;;  %v2081_v14 = vadd.f32 %v5241_v16, %v2069_v6  ;;  %v1940_v2 = vmul.f32 %v4953_v61, %v5303_v49  ;;  %v1941_v22 = vadd.f32 %v1939_v25, %v1937_v11 }
 0x295   :  { %v1875_v50 = vadd.f32 %v1873_v62, %v1870_v33  ;;  %v1876_v42 = vadd.f32 %v1874_v55, %v1871_v32  ;;  %v1998_v51 = vmul.f32 %v4921_v37, %v5163_v20  ;;  %v2000_v6 = vmul.f32 %v4953_v61, %v4614_v5 }
 0x296   :  { %v1953_v16 = vadd.f32 %v5220_v36, %v1941_v22  ;;  %v1891_v33 = vmul.f32 %v4847_v52, %v5349_v44  ;;  %v2017_v11 = vadd.f32 %v2015_v60, %v2013_v43  ;;  %v2085_v62 = vadd.f32 %v2083_v34, %v2081_v14 }
 0x297   :  { %v1888_v19 = vadd.f32 %v5237_v9, %v1875_v50  ;;  %v2019_v37 = vmul.f32 %v4897_v58, %v4704_v35  ;;  %v1942_v5 = vadd.f32 %v1940_v2, %v5200_v24  ;;  %v2550_v52 = vmul.f32 %v5002_v27, %v5239_v47 }
 0x298   :  { %2481 = vrot.lane.b32.xlu1 %v2477_v26, %s3340_s20  ;;  %2553 = vrot.lane.b32.xlu2 %v2549_v29, %s3340_s20  ;;  %v1967_v26 = vmul.f32 %v4897_v58, %v5349_v44  ;;  %v1965_v36 = vadd.f32 %v5264_v46, %v1953_v16  ;;  %v2561_v9 = vmul.f32 %v4995_v0, %v5258_v23  ;;  %v5377_v43 = vrot.slane %v4765_v28, 7 }
 0x299   :  { %2423 = vrot.lane.b32.xlu0 %v2418_v57, %s3340_s20  ;;  %v2478_v55 = vmul.f32 %v5002_v27, %v5258_v23  ;;  %v1893_v57 = vadd.f32 %v1891_v33, %v1888_v19  ;;  %v1896_v60 = vmul.f32 %v4897_v58, %v4812_v18  ;;  %v1892_v24 = vmul.f32 %v5011_v63, %v5349_v44  ;;  %v6263_v19 = vld [vmem:[#allocation27_spill] sm:$0xff] }
 0x29a   :  { %v5360_v25 = vpop.permute.xlu2 %2131  ;;  %v1906_v32 = vpop.permute.xlu1 %1905  ;;  %v2002_v46 = vadd.f32 %v2000_v6, %v1998_v51  ;;  %v2021_v34 = vadd.f32 %v2019_v37, %v2017_v11  ;;  %v2097_v14 = vadd.f32 %v5214_v4, %v2085_v62  ;;  %v1889_v2 = vadd.f32 %v5193_v13, %v1876_v42 }
 0x29b   :  { %v2104_v29 = vpop.permute.xlu0 %2103  ;;  %v1954_v22 = vadd.f32 %v5146_v1, %v1942_v5  ;;  %v1969_v50 = vadd.f32 %v1967_v26, %v1965_v36  ;;  %v2035_v28 = vmul.f32 %v4943_v45, %v5349_v44  ;;  %v2111_v51 = vmul.f32 %v4995_v0, %v5349_v44 }
 0x29c   :  { %v2033_v58 = vadd.f32 %v5288_v15, %v2021_v34  ;;  %v2109_v6 = vadd.f32 %v2104_v29, %v2097_v14  ;;  %v1968_v13 = vmul.f32 %v5037_v53, %v5349_v44  ;;  %v1898_v42 = vadd.f32 %v1896_v60, %v1893_v57 }
 0x29d   :  { %v1966_v1 = vadd.f32 %v5290_v38, %v1954_v22  ;;  %v1981_v4 = vadd.f32 %v1976_v54, %v1969_v50  ;;  %v2058_v45 = vmul.f32 %v4953_v61, %v5163_v20  ;;  %v1307_v11 = vsel %vm391_vm0, %v5377_v43, %v6263_v19 }
 0x29e   :  { %v2016_v62 = vmul.f32 %v5011_v63, %v5303_v49  ;;  %v2014_v37 = vadd.f32 %v5216_v17, %v2002_v46  ;;  %v1911_v26 = vadd.f32 %v1906_v32, %v1898_v42  ;;  %v2037_v54 = vadd.f32 %v2035_v28, %v2033_v58 }
 0x29f   :  { %v2113_v29 = vadd.f32 %v2111_v51, %v2109_v6  ;;  %v2562_v5 = vmul.f32 %v5059_v41, %v5258_v23  ;;  %v2039_v61 = vmul.f32 %v4995_v0, %v4812_v18  ;;  %v1894_v20 = vadd.f32 %v1892_v24, %v1889_v2 }
 0x2a0   :  { %2555 = vrot.lane.b32.xlu1 %v2550_v52, %s3340_s20  ;;  %2565 = vrot.lane.b32.xlu2 %v2561_v9, %s3340_s20  ;;  %v1897_v36 = vmul.f32 %v5037_v53, %v4812_v18  ;;  %v1970_v52 = vadd.f32 %v1968_v13, %v1966_v1  ;;  %v2070_v63 = vadd.f32 %v5124_v39, %v2058_v45 }
 0x2a1   :  { %2483 = vrot.lane.b32.xlu0 %v2478_v55, %s3340_s20  ;;  %v2018_v17 = vadd.f32 %v2016_v62, %v2014_v37  ;;  %v2020_v32 = vmul.f32 %v5037_v53, %v4704_v35  ;;  %v6264_v55 = vld [vmem:[#allocation16_spill] sm:$0xff]  ;;  %v2125_v23 = vadd.f32 %v5321_v12, %v2113_v29  ;;  %v2041_v0 = vadd.f32 %v2039_v61, %v2037_v54 }
 0x2a2   :  { %v5395_v16 = vpop.permute.xlu2 %2293  ;;  %v2106_v33 = vpop.permute.xlu1 %2105  ;;  %v1308_v57 = vsel %vm393_vm1, %v5377_v43, %v1307_v11  ;;  %v2084_v60 = vmul.f32 %v5037_v53, %v5303_v49  ;;  %v2082_v39 = vadd.f32 %v5262_v8, %v2070_v63  ;;  %v1899_v24 = vadd.f32 %v1897_v36, %v1894_v20 }
 0x2a3   :  { %v1988_v15 = vpop.permute.xlu0 %1987  ;;  %v1982_v34 = vadd.f32 %v5260_v10, %v1970_v52  ;;  %v2022_v22 = vadd.f32 %v2020_v32, %v2018_v17  ;;  %v2036_v28 = vmul.f32 %v5002_v27, %v5349_v44  ;;  %v2137_v53 = vadd.f32 %v5360_v25, %v2125_v23  ;;  %v5462_v17 = vld [vmem:[#allocation1 + $0x23] ss:$4 sm:$0xff] }
 0x2a4   :  { %v1993_v38 = vadd.f32 %v1988_v15, %v1981_v4  ;;  %v1912_v2 = vadd.f32 %v5286_v7, %v1899_v24  ;;  %v1309_v8 = vsel %vm395_vm2, %v5377_v43, %v1308_v57  ;;  %v2086_v49 = vadd.f32 %v2084_v60, %v2082_v39 }
 0x2a5   :  { %v2034_v51 = vadd.f32 %v5323_v48, %v2022_v22  ;;  %v2141_v10 = vstv %s5411_s30  ;;  %v1310_v7 = vsel %vm397_vm3, %v5377_v43, %v1309_v8  ;;  %v2040_v45 = vmul.f32 %v5059_v41, %v4812_v18  ;;  %v5448_v43 = vld [vmem:[#allocation1 + $0x3] ss:$4 sm:$0xff] }
 0x2a6   :  { %v1995_v9 = vmax.f32 %v1911_v26, %v1993_v38  ;;  %v2098_v27 = vadd.f32 %v5235_v31, %v2086_v49  ;;  %v2112_v11 = vmul.f32 %v5059_v41, %v5349_v44  ;;  %v6267_v49 = vld [vmem:[#allocation34_spill] sm:$0xff] }
 0x2a7   :  { %v2038_v4 = vadd.f32 %v2036_v28, %v2034_v51  ;;  %v1340_v51 = vrot.slane %v6267_v49, 7 }
 0x2a8   :  { %1294 = vrot.lane.b32.xlu1 %v6264_v55, %s3341_s14  ;;  %v2110_v19 = vadd.f32 %v2106_v33, %v2098_v27 }
 0x2a9   :  { %2567 = vrot.lane.b32.xlu0 %v2562_v5, %s3340_s20  ;;  %v2042_v62 = vadd.f32 %v2040_v45, %v2038_v4  ;;  %s3076_s20 = sld [smem:[#allocation2 + $0x280]] }
 0x2aa   :  { %v5425_v46 = vpop.permute.xlu2 %2295  ;;  %v2048_v35 = vpop.permute.xlu1 %2047  ;;  %v2114_v37 = vadd.f32 %v2112_v11, %v2110_v19 }
 0x2ab   :  { %v2053_v14 = vadd.f32 %v2048_v35, %v2041_v0  ;;  %v1990_v12 = vpop.permute.xlu0 %1989  ;;  %v6266_v35 = vld [vmem:[#allocation32_spill] sm:$0xff] }
 0x2ac   :  { %v1994_v50 = vadd.f32 %v1990_v12, %v1982_v34 }
 0x2ad   :  { %v2055_v58 = vmax.f32 %v1995_v9, %v2053_v14  ;;  %v6265_v9 = vld [vmem:[#allocation30_spill] sm:$0xff] }
 0x2ae   :  { %v1996_v6 = vmax.f32 %v1912_v2, %v1994_v50  ;;  %v1321_v63 = vrot.slane %v6265_v9, 1  ;;  %v6270_v9 = vld [vmem:[#allocation36_spill] sm:$0xff] }
 0x2af   :  { %v2139_v13 = vmax.f32 %v2055_v58, %v2137_v53  ;;  %v5468_v0 = vstv %s3076_s20  ;;  %s3349_s20 = smov 72  }
 0x2b0   :  { %v2348_v39 = vmul.f32 %v4874_v59, %v5468_v0  ;;  %v1324_v34 = vsel %vm391_vm0, %v6266_v35, %v1321_v63 }
 0x2b1   :  { %1311 = vrot.lane.b32.xlu0 %v1310_v7, %s3342_s17  ;;  %v2142_v1 = vadd.f32 %v2141_v10, %v2139_v13  ;;  %v1325_v59 = vsel %vm393_vm1, %v6266_v35, %v1324_v34  ;;  %v6271_v34 = vld [vmem:[#allocation11_spill] sm:$0xff] }
 0x2b2   :  { %v5440_v42 = vpop.permute.xlu2 %2497  ;;  %v2122_v25 = vpop.permute.xlu1 %2121 }
 0x2b3   :  { %v2050_v15 = vpop.permute.xlu0 %2049  ;;  %v5444_v48 = vmax.f32 %v2142_v1, 0.0  ;;  %v2126_v26 = vadd.f32 %v2122_v25, %v2114_v37 }
 0x2b4   :  { %v2054_v31 = vadd.f32 %v2050_v15, %v2042_v62  ;;  %v6268_v15 = vld [vmem:[#allocation31_spill] sm:$0xff] }
 0x2b5   :  { %2168 = vst.sshfl [vmem:[#allocation1] sm:$0xff pattern:$0x73625140] %v5444_v48  ;;  %v2157_v36 = vrot.slane %v5444_v48, 1  ;;  %v1341_v19 = vsel %vm391_vm0, %v1340_v51, %v6268_v15 }
 0x2b6   :  { %v2056_v29 = vmax.f32 %v1996_v6, %v2054_v31 }
 0x2ba   :  { %v5451_v38 = vpop.permute.xlu1 %2353  ;;  %v5453_v18 = vpop.permute.xlu2 %2499 }
 0x2bb   :  { %v2134_v54 = vpop.permute.xlu0 %2133 }
 0x2bc   :  { %v2138_v5 = vadd.f32 %v2134_v54, %v2126_v26  ;;  %v2170_v61 = vld [vmem:[#allocation1 + $0x1] ss:$4 sm:$0xff]  ;;  %v1342_v54 = vsel %vm393_vm1, %v1340_v51, %v1341_v19 }
 0x2bd   :  { %2185 = vst.sshfl [vmem:[#allocation1] sm:$0xff pattern:$0x73625140] %v5444_v48 }
 0x2be   :  { %v2140_v41 = vmax.f32 %v2056_v29, %v2138_v5  ;;  %v6269_v5 = vld [vmem:[#allocation33_spill] sm:$0xff] }
 0x2c0   :  { %v2143_v44 = vadd.f32 %v2141_v10, %v2140_v41  ;;  %v1326_v10 = vsel %vm395_vm2, %v6266_v35, %v1325_v59 }
 0x2c1   :  { %v1327_v4 = vsel %vm397_vm3, %v6266_v35, %v1326_v10 }
 0x2c2   :  { %v5456_v33 = vmax.f32 %v2143_v44, 0.0  ;;  %v5458_v20 = vpop.permute.xlu1 %2365  ;;  %v5473_v60 = vpop.permute.xlu2 %2383 }
 0x2c3   :  { %v2356_v52 = vpop.permute.xlu0 %2355 }
 0x2c4   :  { %v2160_v32 = vsel %vm391_vm0, %v5456_v33, %v2157_v36  ;;  %2171 = vst.sshfl [vmem:[#allocation1 + $0x20] sm:$0xff pattern:$0x73625140] %v5456_v33  ;;  %v2187_v55 = vld [vmem:[#allocation1 + $0x1] ss:$4 sm:$0xff]  ;;  %v2150_v23 = vrot.slane %v5456_v33, 7  ;;  %v2360_v28 = vadd.f32 %v2356_v52, %v2348_v39  ;;  %v1343_v52 = vsel %vm395_vm2, %v1340_v51, %v1342_v54 }
 0x2c5   :  { %v2161_v57 = vsel %vm393_vm1, %v5456_v33, %v2160_v32  ;;  %2202 = vst.sshfl [vmem:[#allocation1] sm:$0xff pattern:$0x73625140] %v5444_v48  ;;  %v2191_v37 = vrot.slane %v2187_v55, 1  ;;  %v1344_v55 = vsel %vm397_vm3, %v1340_v51, %v1343_v52  ;;  %v2284_v54 = vmul.f32 %v5088_v56, %v5032_v21 }
 0x2c6   :  { %v2162_v24 = vsel %vm395_vm2, %v5456_v33, %v2161_v57  ;;  %v2151_v14 = vsel %vm391_vm0, %v2150_v23, %v5444_v48 }
 0x2c7   :  { %v2163_v12 = vsel %vm397_vm3, %v5456_v33, %v2162_v24  ;;  %v2152_v2 = vsel %vm393_vm1, %v2150_v23, %v2151_v14  ;;  %v1374_v14 = vrot.slane %v6271_v34, 7 }
 0x2c8   :  { %2164 = vrot.lane.b32.xlu2 %v2163_v12, %s3341_s14  ;;  %v2153_v22 = vsel %vm395_vm2, %v2150_v23, %v2152_v2  ;;  %s3079_s14 = sld [smem:[#allocation2 + $0x283]] }
 0x2c9   :  { %v2154_v50 = vsel %vm397_vm3, %v2150_v23, %v2153_v22 }
 0x2ca   :  { %v5491_v58 = vpop.permute.xlu1 %2441  ;;  %2156 = vst.msk [vmem:[%s6167_s8 + $0x4] sm:$0x3] %vm400_vm4, %v2154_v50  ;;  %v5508_v25 = vpop.permute.xlu2 %2318  ;;  %vm2975_vm4 = vcmask 261120  }
 0x2cb   :  { %v2368_v53 = vpop.permute.xlu0 %2367  ;;  %v2173_v8 = vld [vmem:[#allocation1 + $0x21] ss:$4 sm:$0xff] }
 0x2cc   :  { %v5498_v6 = vadd.f32 %v2368_v53, %v2360_v28  ;;  %v2176_v13 = vrot.slane %v2173_v8, 7  ;;  %2188 = vst.sshfl [vmem:[#allocation1 + $0x20] sm:$0xff pattern:$0x73625140] %v5456_v33  ;;  %v2204_v7 = vld [vmem:[#allocation1 + $0x2] ss:$4 sm:$0xff] }
 0x2cd   :  { %2219 = vst.sshfl [vmem:[#allocation1] sm:$0xff pattern:$0x73625140] %v5444_v48  ;;  %v6272_v8 = vld [vmem:[#allocation35_spill] sm:$0xff] }
 0x2ce   :  { %v2177_v1 = vsel %vm391_vm0, %v2176_v13, %v2170_v61  ;;  %v1355_v61 = vrot.slane %v6269_v5, 1  ;;  %v1375_v49 = vsel %vm391_vm0, %v1374_v14, %v6272_v8  ;;  %v2433_v8 = vmul.f32 %v5168_v3, %v5032_v21 }
 0x2cf   :  { %v2178_v27 = vsel %vm393_vm1, %v2176_v13, %v2177_v1  ;;  %v1376_v1 = vsel %vm393_vm1, %v1374_v14, %v1375_v49 }
 0x2d0   :  { %1328 = vrot.lane.b32.xlu2 %v1327_v4, %s3343_s2  ;;  %v2179_v45 = vsel %vm395_vm2, %v2176_v13, %v2178_v27  ;;  %v1358_v63 = vsel %vm391_vm0, %v6270_v9, %v1355_v61  ;;  %v1389_v4 = vrot.slane %v5109_v30, 1  ;;  %v3270_v30 = vld [vmem:[%s6159_s0] sm:$0xff] }
 0x2d1   :  { %v2180_v11 = vsel %vm397_vm3, %v2176_v13, %v2179_v45  ;;  %v1359_v23 = vsel %vm393_vm1, %v6270_v9, %v1358_v63 }
 0x2d2   :  { %2181 = vrot.lane.b32.xlu1 %v2180_v11, %s3342_s17  ;;  %v5516_v62 = vpop.permute.xlu1 %2443  ;;  %v5535_v57 = vpop.permute.xlu2 %2525  ;;  %v1360_v12 = vsel %vm395_vm2, %v6270_v9, %v1359_v23  ;;  %v1392_v19 = vsel %vm391_vm0, %v5151_v40, %v1389_v4  ;;  %v3274_v4 = vld [vmem:[%s6159_s0 + $0x50] sm:$0xff] }
 0x2d3   :  { %v5518_v31 = vpop.permute.xlu0 %2381  ;;  %v2190_v26 = vld [vmem:[#allocation1 + $0x21] ss:$4 sm:$0xff]  ;;  %v1361_v50 = vsel %vm397_vm3, %v6270_v9, %v1360_v12  ;;  %v1393_v5 = vsel %vm393_vm1, %v5151_v40, %v1392_v19 }
 0x2d4   :  { %v2194_v29 = vsel %vm391_vm0, %v2190_v26, %v2191_v37  ;;  %2205 = vst.sshfl [vmem:[#allocation1 + $0x20] sm:$0xff pattern:$0x73625140] %v5456_v33  ;;  %v2221_v41 = vld [vmem:[#allocation1 + $0x2] ss:$4 sm:$0xff]  ;;  %v1377_v37 = vsel %vm395_vm2, %v1374_v14, %v1376_v1 }
 0x2d5   :  { %v2195_v44 = vsel %vm393_vm1, %v2190_v26, %v2194_v29  ;;  %2236 = vst.sshfl [vmem:[#allocation1] sm:$0xff pattern:$0x73625140] %v5444_v48  ;;  %v1378_v61 = vsel %vm397_vm3, %v1374_v14, %v1377_v37  ;;  %v5601_v14 = vstv %s3079_s14  ;;  %v3273_v12 = vld [vmem:[%s6159_s0 + $0x40] sm:$0xff] }
 0x2d6   :  { %v2196_v36 = vsel %vm395_vm2, %v2190_v26, %v2195_v44 }
 0x2d7   :  { %v2197_v32 = vsel %vm397_vm3, %v2190_v26, %v2196_v36  ;;  %v2281_v26 = vmul.f32 %v3270_v30, %v5468_v0  ;;  %v3272_v36 = vld [vmem:[%s6159_s0 + $0x30] sm:$0xff] }
 0x2d8   :  { %2198 = vrot.lane.b32.xlu0 %v2197_v32, %s3343_s2  ;;  %v2285_v52 = vmul.f32 %v3272_v36, %v5032_v21  ;;  %v6275_v36 = vld [vmem:[#allocation40_spill] sm:$0xff] }
 0x2d9   :  { %v2286_v63 = vadd.f32 %v2284_v54, %v2281_v26 }
 0x2da   :  { %1345 = vrot.lane.b32.xlu1 %v1344_v55, %s3344_s18  ;;  %v5538_v39 = vpop.permute.xlu1 %2316  ;;  %v5563_v27 = vpop.permute.xlu2 %2527  ;;  %v1394_v55 = vsel %vm395_vm2, %v5151_v40, %v1393_v5  ;;  %v6274_v5 = vld [vmem:[#allocation14_spill] sm:$0xff] }
 0x2db   :  { %v5540_v24 = vpop.permute.xlu0 %2509  ;;  %v2207_v35 = vld [vmem:[#allocation1 + $0x22] ss:$4 sm:$0xff] }
 0x2dc   :  { %v2210_v2 = vrot.slane %v2207_v35, 7  ;;  %2222 = vst.sshfl [vmem:[#allocation1 + $0x20] sm:$0xff pattern:$0x73625140] %v5456_v33  ;;  %v2238_v22 = vld [vmem:[#allocation1 + $0x3] ss:$4 sm:$0xff]  ;;  %v2347_v35 = vmul.f32 %v5088_v56, %v5468_v0  ;;  %v2299_v56 = vadd.f32 %v5395_v16, %v2286_v63 }
 0x2dd   :  { %2253 = vst.sshfl [vmem:[#allocation1] sm:$0xff pattern:$0x73625140] %v5444_v48  ;;  %v2225_v48 = vrot.slane %v2221_v41, 1  ;;  %v3271_v41 = vld [vmem:[%s6159_s0 + $0x10] sm:$0xff] }
 0x2de   :  { %v2211_v59 = vsel %vm391_vm0, %v2210_v2, %v2204_v7  ;;  %v2282_v44 = vmul.f32 %v3271_v41, %v5468_v0  ;;  %v6276_v63 = vld [vmem:[#allocation12_spill] sm:$0xff] }
 0x2df   :  { %v2212_v28 = vsel %vm393_vm1, %v2210_v2, %v2211_v59 }
 0x2e0   :  { %1362 = vrot.lane.b32.xlu0 %v1361_v50, %s3345_s19  ;;  %v2213_v53 = vsel %vm395_vm2, %v2210_v2, %v2212_v28  ;;  %v2287_v59 = vadd.f32 %v2285_v52, %v2282_v44  ;;  %v1395_v28 = vsel %vm397_vm3, %v5151_v40, %v1394_v55  ;;  %v2491_v40 = vmul.f32 %v5168_v3, %v5468_v0 }
 0x2e1   :  { %v2214_v51 = vsel %vm397_vm3, %v2210_v2, %v2213_v53  ;;  %v2302_v2 = vmul.f32 %v3273_v12, %v5601_v14  ;;  %v5647_v52 = vrot.slane %v6275_v36, 7 }
 0x2e2   :  { %2215 = vrot.lane.b32.xlu2 %v2214_v51, %s3344_s18  ;;  %v5557_v10 = vpop.permute.xlu1 %2511  ;;  %v5607_v50 = vpop.permute.xlu2 %2411  ;;  %v2503_v41 = vadd.f32 %v5440_v42, %v2491_v40  ;;  %v3276_v42 = vld [vmem:[%s6159_s0 + $0x1] sm:$0xff] }
 0x2e3   :  { %v5559_v13 = vpop.permute.xlu0 %2393  ;;  %v2224_v7 = vld [vmem:[#allocation1 + $0x22] ss:$4 sm:$0xff] }
 0x2e4   :  { %v2228_v45 = vsel %vm391_vm0, %v2224_v7, %v2225_v48  ;;  %2239 = vst.sshfl [vmem:[#allocation1 + $0x20] sm:$0xff pattern:$0x73625140] %v5456_v33  ;;  %v2255_v51 = vld [vmem:[#allocation1 + $0x3] ss:$4 sm:$0xff]  ;;  %v2359_v48 = vadd.f32 %v5451_v38, %v2347_v35  ;;  %v2303_v38 = vmul.f32 %v3274_v4, %v5601_v14  ;;  %v2449_v35 = vmul.f32 %v3276_v42, %v5601_v14 }
 0x2e5   :  { %v2229_v15 = vsel %vm393_vm1, %v2224_v7, %v2228_v45  ;;  %v2300_v45 = vadd.f32 %v5425_v46, %v2287_v59  ;;  %v2259_v19 = vrot.slane %v2255_v51, 1  ;;  %v5679_v51 = vstv %s5622_s16 }
 0x2e6   :  { %v2230_v11 = vsel %vm395_vm2, %v2224_v7, %v2229_v15  ;;  %v2371_v54 = vadd.f32 %v5458_v20, %v2359_v48  ;;  %v6278_v48 = vld [vmem:[#allocation23_spill] sm:$0xff] }
 0x2e7   :  { %v2231_v29 = vsel %vm397_vm3, %v2224_v7, %v2230_v11  ;;  %v2304_v11 = vadd.f32 %v2302_v2, %v2299_v56  ;;  %v2305_v20 = vadd.f32 %v2303_v38, %v2300_v45  ;;  %v3277_v2 = vld [vmem:[%s6159_s0 + $0x21] sm:$0xff] }
 0x2e8   :  { %2232 = vrot.lane.b32.xlu1 %v2231_v29, %s3345_s19  ;;  %v2373_v29 = vmul.f32 %v5168_v3, %v5601_v14  ;;  %v2517_v59 = vmul.f32 %v3277_v2, %v5601_v14  ;;  %v6279_v45 = vld [vmem:[#allocation17_spill] sm:$0xff] }
 0x2ea   :  { %1379 = vrot.lane.b32.xlu2 %v1378_v61, %s3346_s21  ;;  %v5592_v9 = vpop.permute.xlu1 %2461  ;;  %v2307_v61 = vmul.f32 %v5168_v3, %v6274_v5 }
 0x2eb   :  { %v5594_v32 = vpop.permute.xlu0 %2395  ;;  %v2241_v23 = vld [vmem:[#allocation1 + $0x23] ss:$4 sm:$0xff] }
 0x2ec   :  { %v2244_v34 = vrot.slane %v2241_v23, 7  ;;  %2256 = vst.sshfl [vmem:[#allocation1 + $0x20] sm:$0xff pattern:$0x73625140] %v5456_v33  ;;  %v2431_v33 = vmul.f32 %v3273_v12, %v5468_v0  ;;  %v5655_v23 = vld [vmem:[%s6159_s0 + $0x70] sm:$0xff] }
 0x2ed   :  { %v2308_v3 = vmul.f32 %v5655_v23, %v6274_v5  ;;  %v2374_v56 = vmul.f32 %v5655_v23, %v5601_v14 }
 0x2ee   :  { %v2245_v53 = vsel %vm391_vm0, %v2244_v34, %v2238_v22  ;;  %v6273_v22 = vld [vmem:[#allocation19_spill] sm:$0xff]  ;;  %v2435_v37 = vadd.f32 %v2433_v8, %v2431_v33  ;;  %v2375_v33 = vadd.f32 %v2373_v29, %v2371_v54  ;;  %v2309_v8 = vadd.f32 %v2307_v61, %v2304_v11 }
 0x2ef   :  { %v2246_v49 = vsel %vm393_vm1, %v2244_v34, %v2245_v53  ;;  %v5626_v1 = vrot.slane %v6273_v22, 7  ;;  %v2310_v40 = vadd.f32 %v2308_v3, %v2305_v20  ;;  %v2325_v22 = vmul.f32 %v3276_v42, %v5679_v51 }
 0x2f0   :  { %1396 = vrot.lane.b32.xlu1 %v1395_v28, %s3347_s24  ;;  %v2247_v7 = vsel %vm395_vm2, %v2244_v34, %v2246_v49  ;;  %v2447_v12 = vadd.f32 %v5491_v58, %v2435_v37  ;;  %v2515_v28 = vadd.f32 %v5540_v24, %v2503_v41  ;;  %v5673_v49 = vpop.permute.xlu2 %2341  ;;  %v6277_v58 = vld [vmem:[#allocation39_spill] sm:$0xff]  ;;  %v1743_v24 = vsel %vm391_vm0, %v5647_v52, %v6278_v48 }
 0x2f1   :  { %v2248_v16 = vsel %vm397_vm3, %v2244_v34, %v2247_v7  ;;  %v867_v55 = vsel %vm391_vm0, %v5626_v1, %v6276_v63  ;;  %v2322_v38 = vadd.f32 %v5538_v39, %v2309_v8  ;;  %v2432_v37 = vmul.f32 %v3274_v4, %v5468_v0  ;;  %v6280_v4 = vld [vmem:[#allocation15_spill] sm:$0xff] }
 0x2f2   :  { %2249 = vrot.lane.b32.xlu0 %v2248_v16, %s3346_s21  ;;  %v5634_v15 = vpop.permute.xlu1 %2463  ;;  %v868_v7 = vsel %vm393_vm1, %v5626_v1, %v867_v55  ;;  %v2387_v16 = vadd.f32 %v5518_v31, %v2375_v33  ;;  %v2451_v11 = vadd.f32 %v2449_v35, %v2447_v12  ;;  %v2453_v54 = vmul.f32 %v3277_v2, %v6274_v5  ;;  %v3278_v55 = vld [vmem:[%s6159_s0 + $0x11] sm:$0xff] }
 0x2f3   :  { %v5636_v30 = vpop.permute.xlu0 %2409  ;;  %v2258_v26 = vld [vmem:[#allocation1 + $0x23] ss:$4 sm:$0xff]  ;;  %v2376_v61 = vadd.f32 %v2374_v56, %v5498_v6  ;;  %v2434_v31 = vmul.f32 %v5655_v23, %v5032_v21  ;;  %v2401_v39 = vmul.f32 %v3277_v2, %v5679_v51  ;;  %v2327_v41 = vadd.f32 %v2325_v22, %v2322_v38 }
 0x2f4   :  { %v2262_v46 = vsel %vm391_vm0, %v2258_v26, %v2259_v19  ;;  %v869_v36 = vsel %vm395_vm2, %v5626_v1, %v868_v7  ;;  %v882_v63 = vrot.slane %v6280_v4, 1  ;;  %v2326_v6 = vmul.f32 %v3278_v55, %v5679_v51  ;;  %v3281_v56 = vld [vmem:[%s6159_s0 + $0x31] sm:$0xff]  ;;  %v6283_v22 = vld [vmem:[#allocation37_spill] sm:$0xff] }
 0x2f5   :  { %v2263_v44 = vsel %vm393_vm1, %v2258_v26, %v2262_v46  ;;  %v2399_v46 = vadd.f32 %v5559_v13, %v2387_v16  ;;  %v2455_v20 = vadd.f32 %v2453_v54, %v2451_v11  ;;  %v1744_v13 = vsel %vm393_vm1, %v5647_v52, %v1743_v24 }
 0x2f6   :  { %v2264_v34 = vsel %vm395_vm2, %v2258_v26, %v2263_v44  ;;  %v2330_v44 = vmul.f32 %v3277_v2, %v5239_v47  ;;  %v2323_v3 = vadd.f32 %v5508_v25, %v2310_v40  ;;  %v2436_v42 = vadd.f32 %v2434_v31, %v2432_v37  ;;  %v6281_v2 = vld [vmem:[#allocation38_spill] sm:$0xff] }
 0x2f7   :  { %v2265_v53 = vsel %vm397_vm3, %v2258_v26, %v2264_v34  ;;  %v2519_v26 = vadd.f32 %v2517_v59, %v2515_v28  ;;  %v2388_v35 = vadd.f32 %v5473_v60, %v2376_v61  ;;  %v2403_v34 = vadd.f32 %v2401_v39, %v2399_v46  ;;  %v3279_v59 = vld [vmem:[%s6159_s0 + $0x41] sm:$0xff] }
 0x2f8   :  { %1719 = vrot.lane.b32.xlu1 %v6277_v58, %s3348_s29  ;;  %2266 = vrot.lane.b32.xlu2 %v2265_v53, %s3347_s24  ;;  %v2554_v12 = vpop.permute.xlu2 %2553  ;;  %v2467_v28 = vadd.f32 %v5592_v9, %v2455_v20  ;;  %v3280_v25 = vld [vmem:[%s6159_s0 + $0x61] sm:$0xff]  ;;  %v2402_v33 = vmul.f32 %v3281_v56, %v5679_v51  ;;  %v2332_v48 = vadd.f32 %v2330_v44, %v2327_v41  ;;  %v1757_v38 = vrot.slane %v6283_v22, 1  ;;  %s3354_s24 = smov 112  }
 0x2f9   :  { %v2531_v21 = vadd.f32 %v5535_v57, %v2519_v26  ;;  %v2469_v57 = vmul.f32 %v3279_v59, %v5679_v51  ;;  %v2545_v60 = vmul.f32 %v3280_v25, %v5679_v51  ;;  %v2400_v8 = vadd.f32 %v5594_v32, %v2388_v35  ;;  %v6282_v9 = vld [vmem:[#allocation18_spill] sm:$0xff] }
 0x2fa   :  { %841 = vrot.lane.b32.xlu0 %v6279_v45, %s3348_s29  ;;  %v2340_v19 = vpop.permute.xlu1 %2339  ;;  %v2415_v58 = vadd.f32 %v5636_v30, %v2403_v34  ;;  %v2492_v7 = vmul.f32 %v5655_v23, %v5468_v0  ;;  %v1745_v16 = vsel %vm395_vm2, %v5647_v52, %v1744_v13  ;;  %v6284_v45 = vld [vmem:[#allocation21_spill] sm:$0xff]  ;;  %v2450_v30 = vmul.f32 %v3278_v55, %v5601_v14  ;;  %v6285_v0 = vld [vmem:[#allocation42_spill] sm:$0xff] }
 0x2fb   :  { %v2538_v29 = vpop.permute.xlu0 %2537  ;;  %v885_v32 = vsel %vm391_vm0, %v6284_v45, %v882_v63  ;;  %v2448_v11 = vadd.f32 %v5516_v62, %v2436_v42  ;;  %v2345_v37 = vadd.f32 %v2340_v19, %v2332_v48  ;;  %v2471_v54 = vadd.f32 %v2469_v57, %v2467_v28 }
 0x2fc   :  { %v2543_v53 = vadd.f32 %v2538_v29, %v2531_v21  ;;  %v2473_v61 = vmul.f32 %v3280_v25, %v5239_v47  ;;  %v1760_v23 = vsel %vm391_vm0, %v6285_v0, %v1757_v38  ;;  %v2328_v31 = vadd.f32 %v2326_v6, %v2323_v3  ;;  %v3282_v25 = vld [vmem:[%s6159_s0 + $0x51] sm:$0xff] }
 0x2fd   :  { %v2331_v46 = vmul.f32 %v3281_v56, %v5239_v47  ;;  %v2404_v39 = vadd.f32 %v2402_v33, %v2400_v8  ;;  %v1746_v44 = vsel %vm397_vm3, %v5647_v52, %v1745_v16  ;;  %v870_v62 = vsel %vm397_vm3, %v5626_v1, %v869_v36  ;;  %v6286_v52 = vld [vmem:[#allocation44_spill] sm:$0xff] }
 0x2fe   :  { %v2547_v29 = vadd.f32 %v2545_v60, %v2543_v53  ;;  %v2504_v19 = vadd.f32 %v5453_v18, %v2492_v7  ;;  %v2452_v4 = vadd.f32 %v2450_v30, %v2448_v11  ;;  %v2454_v63 = vmul.f32 %v3281_v56, %v6274_v5 }
 0x2ff   :  { %v886_v55 = vsel %vm393_vm1, %v6284_v45, %v885_v32  ;;  %v2475_v20 = vadd.f32 %v2473_v61, %v2471_v54  ;;  %v1761_v21 = vsel %vm393_vm1, %v6285_v0, %v1760_v23  ;;  %v1776_v13 = vrot.slane %v6286_v52, 7  ;;  %v6290_v23 = vld [vmem:[#allocation43_spill] sm:$0xff] }
 0x300   :  { %1730 = vrot.lane.b32.xlu1 %v6281_v2, %s3349_s20  ;;  %v2559_v6 = vadd.f32 %v2554_v12, %v2547_v29  ;;  %v2518_v1 = vmul.f32 %v3281_v56, %v5601_v14  ;;  %v2516_v18 = vadd.f32 %v5557_v10, %v2504_v19  ;;  %v2333_v36 = vadd.f32 %v2331_v46, %v2328_v31  ;;  %v2566_v3 = vpop.permute.xlu2 %2565  ;;  %v6287_v2 = vld [vmem:[#allocation24_spill] sm:$0xff]  ;;  %v6288_v56 = vld [vmem:[#allocation41_spill] sm:$0xff]  ;;  %v6294_v52 = vld [vmem:[#allocation47_spill] sm:$0xff] }
 0x301   :  { %v2416_v42 = vadd.f32 %v5607_v50, %v2404_v39  ;;  %v887_v12 = vsel %vm395_vm2, %v6284_v45, %v886_v55  ;;  %v902_v59 = vrot.slane %v6287_v2, 7  ;;  %v2456_v14 = vadd.f32 %v2454_v63, %v2452_v4 }
 0x302   :  { %853 = vrot.lane.b32.xlu0 %v6282_v9, %s3349_s20  ;;  %v5730_v24 = vpop.permute.xlu1 %2539  ;;  %v2346_v57 = vadd.f32 %v5673_v49, %v2333_v36  ;;  %v1762_v10 = vsel %vm395_vm2, %v6285_v0, %v1761_v21  ;;  %v2470_v50 = vmul.f32 %v3282_v25, %v5679_v51  ;;  %v2571_v60 = vadd.f32 %v2566_v3, %v2559_v6 }
 0x303   :  { %v2422_v40 = vpop.permute.xlu0 %2421  ;;  %v1777_v33 = vsel %vm391_vm0, %v1776_v13, %v6288_v56  ;;  %v2520_v8 = vadd.f32 %v2518_v1, %v2516_v18  ;;  %v2575_v48 = vstv %s5745_s11  ;;  %v1763_v7 = vsel %vm397_vm3, %v6285_v0, %v1762_v10  ;;  %v6297_v10 = vld [vmem:[#allocation25_spill] sm:$0xff] }
 0x304   :  { %v2427_v26 = vadd.f32 %v2422_v40, %v2415_v58  ;;  %v2468_v58 = vadd.f32 %v5634_v15, %v2456_v14  ;;  %v6289_v40 = vld [vmem:[#allocation20_spill] sm:$0xff]  ;;  %v888_v22 = vsel %vm397_vm3, %v6284_v45, %v887_v12  ;;  %v1778_v38 = vsel %vm393_vm1, %v1776_v13, %v1777_v33 }
 0x305   :  { %v903_v16 = vsel %vm391_vm0, %v902_v59, %v6289_v40  ;;  %v2532_v15 = vadd.f32 %v5563_v27, %v2520_v8  ;;  %v1779_v27 = vsel %vm395_vm2, %v1776_v13, %v1778_v38  ;;  %v1791_v31 = vrot.slane %v6290_v23, 1 }
 0x306   :  { %v2429_v41 = vmax.f32 %v2345_v37, %v2427_v26  ;;  %v2472_v30 = vadd.f32 %v2470_v50, %v2468_v58  ;;  %v3283_v37 = vld [vmem:[%s6159_s0 + $0x71] sm:$0xff]  ;;  %v904_v29 = vsel %vm393_vm1, %v902_v59, %v903_v16  ;;  %v1780_v19 = vsel %vm397_vm3, %v1776_v13, %v1779_v27  ;;  %s3352_s0 = smov 96   ;;  %v6298_v16 = vld [vmem:[#allocation29_spill] sm:$0xff] }
 0x307   :  { %v2474_v26 = vmul.f32 %v3283_v37, %v5239_v47  ;;  %v2544_v45 = vadd.f32 %v5730_v24, %v2532_v15  ;;  %v2546_v0 = vmul.f32 %v3283_v37, %v5679_v51  ;;  %v905_v39 = vsel %vm395_vm2, %v902_v59, %v904_v29  ;;  %v6293_v51 = vld [vmem:[#allocation26_spill] sm:$0xff]  ;;  %v6299_v29 = vld [vmem:[#allocation13_spill] sm:$0xff] }
 0x308   :  { %1747 = vrot.lane.b32.xlu1 %v1746_v44, %s3350_s12  ;;  %v6292_v44 = vld [vmem:[#allocation22_spill] sm:$0xff]  ;;  %v906_v55 = vsel %vm397_vm3, %v902_v59, %v905_v39  ;;  %v1810_v1 = vrot.slane %v6294_v52, 7  ;;  %v6296_v59 = vld [vmem:[#allocation45_spill] sm:$0xff] }
 0x309   :  { %v2476_v46 = vadd.f32 %v2474_v26, %v2472_v30  ;;  %v2548_v4 = vadd.f32 %v2546_v0, %v2544_v45 }
 0x30a   :  { %871 = vrot.lane.b32.xlu0 %v870_v62, %s3350_s12  ;;  %v2482_v5 = vpop.permute.xlu1 %2481  ;;  %v918_v62 = vrot.slane %v6292_v44, 1 }
 0x30b   :  { %v2487_v35 = vadd.f32 %v2482_v5, %v2475_v20  ;;  %v2424_v34 = vpop.permute.xlu0 %2423 }
 0x30c   :  { %v2428_v28 = vadd.f32 %v2424_v34, %v2416_v42  ;;  %v921_v63 = vsel %vm391_vm0, %v6293_v51, %v918_v62  ;;  %v6295_v42 = vld [vmem:[#allocation28_spill] sm:$0xff] }
 0x30d   :  { %v2489_v53 = vmax.f32 %v2429_v41, %v2487_v35  ;;  %v6291_v41 = vld [vmem:[#allocation46_spill] sm:$0xff]  ;;  %v922_v18 = vsel %vm393_vm1, %v6293_v51, %v921_v63  ;;  %v938_v35 = vrot.slane %v6295_v42, 7 }
 0x30e   :  { %v2430_v49 = vmax.f32 %v2346_v57, %v2428_v28  ;;  %v1794_v47 = vsel %vm391_vm0, %v6291_v41, %v1791_v31  ;;  %v923_v2 = vsel %vm395_vm2, %v6293_v51, %v922_v18  ;;  %v1811_v57 = vsel %vm391_vm0, %v1810_v1, %v6296_v59 }
 0x30f   :  { %v2573_v9 = vmax.f32 %v2489_v53, %v2571_v60  ;;  %v1795_v6 = vsel %vm393_vm1, %v6291_v41, %v1794_v47  ;;  %v939_v25 = vsel %vm391_vm0, %v938_v35, %v6297_v10  ;;  %v924_v50 = vsel %vm397_vm3, %v6293_v51, %v923_v2 }
 0x310   :  { %1764 = vrot.lane.b32.xlu1 %v1763_v7, %s3351_s15  ;;  %v1796_v5 = vsel %vm395_vm2, %v6291_v41, %v1795_v6  ;;  %v1812_v60 = vsel %vm393_vm1, %v1810_v1, %v1811_v57  ;;  %v940_v58 = vsel %vm393_vm1, %v938_v35, %v939_v25 }
 0x311   :  { %v2576_v32 = vadd.f32 %v2575_v48, %v2573_v9  ;;  %v1797_v14 = vsel %vm397_vm3, %v6291_v41, %v1796_v5  ;;  %v941_v38 = vsel %vm395_vm2, %v938_v35, %v940_v58 }
 0x312   :  { %889 = vrot.lane.b32.xlu0 %v888_v22, %s3351_s15  ;;  %v2556_v11 = vpop.permute.xlu1 %2555  ;;  %v954_v22 = vrot.slane %v6298_v16, 1  ;;  %v942_v0 = vsel %vm397_vm3, %v938_v35, %v941_v38 }
 0x313   :  { %v2484_v54 = vpop.permute.xlu0 %2483  ;;  %v5792_v61 = vmax.f32 %v2576_v32, 0.0  ;;  %v2560_v20 = vadd.f32 %v2556_v11, %v2548_v4 }
 0x314   :  { %v2488_v24 = vadd.f32 %v2484_v54, %v2476_v46  ;;  %v957_v45 = vsel %vm391_vm0, %v6299_v29, %v954_v22 }
 0x315   :  { %2604 = vst.sshfl [vmem:[#allocation1] sm:$0xff pattern:$0x73625140] %v5792_v61  ;;  %v2593_v33 = vrot.slane %v5792_v61, 1  ;;  %v958_v46 = vsel %vm393_vm1, %v6299_v29, %v957_v45 }
 0x316   :  { %v2490_v36 = vmax.f32 %v2430_v49, %v2488_v24  ;;  %v1825_v49 = vrot.slane %v5448_v43, 1  ;;  %v959_v62 = vsel %vm395_vm2, %v6299_v29, %v958_v46 }
 0x317   :  { %v960_v24 = vsel %vm397_vm3, %v6299_v29, %v959_v62  ;;  %v3214_v62 = vld [vmem:[%s6162_s3 + $0xb8] sm:$0xff] }
 0x318   :  { %1781 = vrot.lane.b32.xlu1 %v1780_v19, %s3352_s0  ;;  %v1828_v30 = vsel %vm391_vm0, %v5462_v17, %v1825_v49  ;;  %2940 = vmatpush.bf16.msra.mxu2 %v3214_v62 }
 0x319   :  { %v1829_v23 = vsel %vm393_vm1, %v5462_v17, %v1828_v30 }
 0x31a   :  { %907 = vrot.lane.b32.xlu0 %v906_v55, %s3352_s0  ;;  %v1295_v21 = vpop.permute.xlu1 %1294  ;;  %v1830_v41 = vsel %vm395_vm2, %v5462_v17, %v1829_v23 }
 0x31b   :  { %1297 = vst.msk [vmem:[%s6167_s8 + $0x2] sm:$0x3] %vm412_vm5, %v1295_v21  ;;  %v2568_v13 = vpop.permute.xlu0 %2567  ;;  %v1831_v19 = vsel %vm397_vm3, %v5462_v17, %v1830_v41 }
 0x31c   :  { %v2572_v3 = vadd.f32 %v2568_v13, %v2560_v20  ;;  %v2606_v34 = vld [vmem:[#allocation1 + $0x1] ss:$4 sm:$0xff] }
 0x31d   :  { %2621 = vst.sshfl [vmem:[#allocation1] sm:$0xff pattern:$0x73625140] %v5792_v61 }
 0x31e   :  { %v2574_v12 = vmax.f32 %v2490_v36, %v2572_v3 }
 0x320   :  { %v2577_v28 = vadd.f32 %v2575_v48, %v2574_v12  ;;  %1798 = vrot.lane.b32.xlu1 %v1797_v14, %s3353_s23  ;;  %v1813_v48 = vsel %vm395_vm2, %v1810_v1, %v1812_v60 }
 0x321   :  { %v1814_v11 = vsel %vm397_vm3, %v1810_v1, %v1813_v48 }
 0x322   :  { %v5834_v53 = vmax.f32 %v2577_v28, 0.0  ;;  %925 = vrot.lane.b32.xlu0 %v924_v50, %s3353_s23  ;;  %v2165_v56 = vpop.permute.xlu2 %2164 }
 0x323   :  { %2167 = vst.msk [vmem:[%s6167_s8 + $0x4] sm:$0x3] %vm412_vm5, %v2165_v56  ;;  %v1312_v8 = vpop.permute.xlu0 %1311  ;;  %vm2992_vm5 = vcmask 74752  }
 0x324   :  { %2607 = vst.sshfl [vmem:[#allocation1 + $0x20] sm:$0xff pattern:$0x73625140] %v5834_v53  ;;  %v2584_v9 = vrot.slane %v5834_v53, 7  ;;  %v2596_v7 = vsel %vm391_vm0, %v5834_v53, %v2593_v33  ;;  %v2623_v40 = vld [vmem:[#allocation1 + $0x1] ss:$4 sm:$0xff] }
 0x325   :  { %1314 = vst.msk [vmem:[%s6167_s8 + $0x2] sm:$0x3] %vm430_vm6, %v1312_v8  ;;  %v2597_v43 = vsel %vm393_vm1, %v5834_v53, %v2596_v7  ;;  %v2627_v6 = vrot.slane %v2623_v40, 1 }
 0x326   :  { %v2585_v32 = vsel %vm391_vm0, %v2584_v9, %v5792_v61  ;;  %v2598_v15 = vsel %vm395_vm2, %v5834_v53, %v2597_v43  ;;  %2638 = vst.sshfl [vmem:[#allocation1] sm:$0xff pattern:$0x73625140] %v5792_v61 }
 0x327   :  { %v2586_v37 = vsel %vm393_vm1, %v2584_v9, %v2585_v32  ;;  %v2599_v26 = vsel %vm397_vm3, %v5834_v53, %v2598_v15 }
 0x328   :  { %1815 = vrot.lane.b32.xlu1 %v1814_v11, %s3354_s24  ;;  %v2587_v54 = vsel %vm395_vm2, %v2584_v9, %v2586_v37 }
 0x329   :  { %v2588_v27 = vsel %vm397_vm3, %v2584_v9, %v2587_v54 }
 0x32a   :  { %943 = vrot.lane.b32.xlu0 %v942_v0, %s3354_s24  ;;  %v1329_v31 = vpop.permute.xlu2 %1328  ;;  %2589 = vrot.lane.b32.xlu2 %v2588_v27, %s3348_s29  ;;  %s3355_s29 = smov 120  }
 0x32b   :  { %1331 = vst.msk [vmem:[%s6167_s8 + $0x2] sm:$0x3] %vm448_vm7, %v1329_v31  ;;  %v2609_v39 = vld [vmem:[#allocation1 + $0x21] ss:$4 sm:$0xff] }
 0x32c   :  { %v2612_v47 = vrot.slane %v2609_v39, 7  ;;  %2624 = vst.sshfl [vmem:[#allocation1 + $0x20] sm:$0xff pattern:$0x73625140] %v5834_v53 }
 0x32d   :  { %v2640_v44 = vld [vmem:[#allocation1 + $0x2] ss:$4 sm:$0xff] }
 0x32e   :  { %2655 = vst.sshfl [vmem:[#allocation1] sm:$0xff pattern:$0x73625140] %v5792_v61  ;;  %v2613_v4 = vsel %vm391_vm0, %v2612_v47, %v2606_v34 }
 0x32f   :  { %v2614_v51 = vsel %vm393_vm1, %v2612_v47, %v2613_v4  ;;  %v3205_v4 = vld [vmem:[%s6162_s3 + $0x70] sm:$0xff] }
 0x330   :  { %1832 = vrot.lane.b32.xlu1 %v1831_v19, %s3355_s29  ;;  %v2615_v17 = vsel %vm395_vm2, %v2612_v47, %v2614_v51  ;;  %v3197_v19 = vld [vmem:[%s6162_s3 + $0x30] sm:$0xff] }
 0x331   :  { %v2616_v21 = vsel %vm397_vm3, %v2612_v47, %v2615_v17  ;;  %v3198_v47 = vld [vmem:[%s6162_s3 + $0x38] sm:$0xff]  ;;  %v3196_v17 = vld [vmem:[%s6162_s3 + $0x28] sm:$0xff] }
 0x332   :  { %961 = vrot.lane.b32.xlu0 %v960_v24, %s3355_s29  ;;  %2600 = vrot.lane.b32.xlu2 %v2599_v26, %s3349_s20  ;;  %v3213_v24 = vld [vmem:[%s6162_s3 + $0xb0] sm:$0xff] }
 0x333   :  { %v2626_v63 = vld [vmem:[#allocation1 + $0x21] ss:$4 sm:$0xff]  ;;  %2914 = vmatpush.bf16.msra.mxu0 %v3198_v47  ;;  %2941 = vmatpush.bf16.msra.mxu2 %v3213_v24 }
 0x334   :  { %2641 = vst.sshfl [vmem:[#allocation1 + $0x20] sm:$0xff pattern:$0x73625140] %v5834_v53  ;;  %v2630_v20 = vsel %vm391_vm0, %v2626_v63, %v2627_v6  ;;  %v3204_v6 = vld [vmem:[%s6162_s3 + $0x68] sm:$0xff] }
 0x335   :  { %v2657_v55 = vld [vmem:[#allocation1 + $0x2] ss:$4 sm:$0xff]  ;;  %v2631_v52 = vsel %vm393_vm1, %v2626_v63, %v2630_v20 }
 0x336   :  { %2672 = vst.sshfl [vmem:[#allocation1] sm:$0xff pattern:$0x73625140] %v5792_v61  ;;  %v2632_v36 = vsel %vm395_vm2, %v2626_v63, %v2631_v52  ;;  %v3212_v20 = vld [vmem:[%s6162_s3 + $0xa8] sm:$0xff]  ;;  %v3203_v52 = vld [vmem:[%s6162_s3 + $0x60] sm:$0xff] }
 0x337   :  { %v2633_v5 = vsel %vm397_vm3, %v2626_v63, %v2632_v36  ;;  %2915 = vmatpush.bf16.msra.mxu0 %v3197_v19  ;;  %2942 = vmatpush.bf16.msra.mxu2 %v3212_v20 }
 0x33a   :  { %2617 = vrot.lane.b32.xlu2 %v2616_v21, %s3350_s12  ;;  %v3195_v21 = vld [vmem:[%s6162_s3 + $0x20] sm:$0xff] }
 0x33b   :  { %v2643_v1 = vld [vmem:[#allocation1 + $0x22] ss:$4 sm:$0xff]  ;;  %2916 = vmatpush.bf16.msra.mxu0 %v3196_v17 }
 0x33c   :  { %v2646_v13 = vrot.slane %v2643_v1, 7  ;;  %2658 = vst.sshfl [vmem:[#allocation1 + $0x20] sm:$0xff pattern:$0x73625140] %v5834_v53  ;;  %v2216_v59 = vpop.permute.xlu2 %2215  ;;  %v3211_v1 = vld [vmem:[%s6162_s3 + $0xa0] sm:$0xff] }
 0x33d   :  { %v2674_v18 = vld [vmem:[#allocation1 + $0x3] ss:$4 sm:$0xff]  ;;  %2943 = vmatpush.bf16.msra.mxu2 %v3211_v1 }
 0x33e   :  { %2689 = vst.sshfl [vmem:[#allocation1] sm:$0xff pattern:$0x73625140] %v5792_v61  ;;  %v2647_v3 = vsel %vm391_vm0, %v2646_v13, %v2640_v44  ;;  %v2661_v61 = vrot.slane %v2657_v55, 1  ;;  %v3206_v44 = vld [vmem:[%s6162_s3 + $0x78] sm:$0xff] }
 0x33f   :  { %v2648_v42 = vsel %vm393_vm1, %v2646_v13, %v2647_v3  ;;  %2927 = vmatpush.bf16.msra.mxu1 %v3206_v44  ;;  %2917 = vmatpush.bf16.msra.mxu0 %v3195_v21 }
 0x340   :  { %v2649_v12 = vsel %vm395_vm2, %v2646_v13, %v2648_v42  ;;  %v3202_v42 = vld [vmem:[%s6162_s3 + $0x58] sm:$0xff] }
 0x341   :  { %v2650_v57 = vsel %vm397_vm3, %v2646_v13, %v2649_v12 }
 0x342   :  { %2634 = vrot.lane.b32.xlu2 %v2633_v5, %s3351_s15  ;;  %v3194_v5 = vld [vmem:[%s6162_s3 + $0x18] sm:$0xff] }
 0x343   :  { %v2660_v35 = vld [vmem:[#allocation1 + $0x22] ss:$4 sm:$0xff]  ;;  %2928 = vmatpush.bf16.msra.mxu1 %v3205_v4  ;;  %2918 = vmatpush.bf16.msra.mxu0 %v3194_v5 }
 0x344   :  { %v2182_v34 = vpop.permute.xlu1 %2181  ;;  %2675 = vst.sshfl [vmem:[#allocation1 + $0x20] sm:$0xff pattern:$0x73625140] %v5834_v53  ;;  %v2664_v2 = vsel %vm391_vm0, %v2660_v35, %v2661_v61  ;;  %v1380_v58 = vpop.permute.xlu2 %1379  ;;  %v3193_v61 = vld [vmem:[%s6162_s3 + $0x10] sm:$0xff] }
 0x345   :  { %2184 = vst.msk [vmem:[%s6167_s8 + $0x4] sm:$0x3] %vm430_vm6, %v2182_v34  ;;  %v2665_v28 = vsel %vm393_vm1, %v2660_v35, %v2664_v2  ;;  %v2691_v48 = vld [vmem:[#allocation1 + $0x3] ss:$4 sm:$0xff] }
 0x346   :  { %v2666_v60 = vsel %vm395_vm2, %v2660_v35, %v2665_v28  ;;  %v2695_v7 = vrot.slane %v2691_v48, 1  ;;  %v3201_v2 = vld [vmem:[%s6162_s3 + $0x50] sm:$0xff]  ;;  %v3208_v28 = vld [vmem:[%s6162_s3 + $0x88] sm:$0xff] }
 0x347   :  { %v2667_v33 = vsel %vm397_vm3, %v2660_v35, %v2666_v60  ;;  %2929 = vmatpush.bf16.msra.mxu1 %v3204_v6  ;;  %v3210_v35 = vld [vmem:[%s6162_s3 + $0x98] sm:$0xff]  ;;  %2919 = vmatpush.bf16.msra.mxu0 %v3193_v61  ;;  %v3207_v60 = vld [vmem:[%s6162_s3 + $0x80] sm:$0xff] }
 0x348   :  { %2944 = vmatpush.bf16.msra.mxu2 %v3210_v35 }
 0x34a   :  { %2651 = vrot.lane.b32.xlu2 %v2650_v57, %s3352_s0  ;;  %v2199_v14 = vpop.permute.xlu0 %2198  ;;  %v3192_v57 = vld [vmem:[%s6162_s3 + $0x8] sm:$0xff] }
 0x34b   :  { %2201 = vst.msk [vmem:[%s6167_s8 + $0x4] sm:$0x3] %vm448_vm7, %v2199_v14  ;;  %v2677_v10 = vld [vmem:[#allocation1 + $0x23] ss:$4 sm:$0xff]  ;;  %2930 = vmatpush.bf16.msra.mxu1 %v3203_v52  ;;  %2920 = vmatpush.bf16.msra.mxu0 %v3192_v57 }
 0x34c   :  { %2218 = vst.msk [vmem:[%s6167_s8 + $0x4] sm:$0x3] %vm466_vm8, %v2216_v59  ;;  %v1346_v25 = vpop.permute.xlu1 %1345  ;;  %v2680_v50 = vrot.slane %v2677_v10, 7  ;;  %v3209_v59 = vld [vmem:[%s6162_s3 + $0x90] sm:$0xff]  ;;  %v3200_v14 = vld [vmem:[%s6162_s3 + $0x48] sm:$0xff] }
 0x34d   :  { %1348 = vst.msk [vmem:[%s6167_s8 + $0x2] sm:$0x3] %vm466_vm8, %v1346_v25  ;;  %2945 = vmatpush.bf16.msra.mxu2 %v3209_v59  ;;  %v3191_v25 = vld [vmem:[%s6162_s3] sm:$0xff] }
 0x34e   :  { %2692 = vst.sshfl [vmem:[#allocation1 + $0x20] sm:$0xff pattern:$0x73625140] %v5834_v53  ;;  %v2681_v56 = vsel %vm391_vm0, %v2680_v50, %v2674_v18 }
 0x34f   :  { %v2682_v49 = vsel %vm393_vm1, %v2680_v50, %v2681_v56  ;;  %2931 = vmatpush.bf16.msra.mxu1 %v3202_v42  ;;  %2921 = vmatpush.bf16.msra.mxu0 %v3191_v25 }
 0x350   :  { %v2683_v9 = vsel %vm395_vm2, %v2680_v50, %v2682_v49 }
 0x351   :  { %v2684_v16 = vsel %vm397_vm3, %v2680_v50, %v2683_v9  ;;  %v3199_v50 = vld [vmem:[%s6162_s3 + $0x40] sm:$0xff]  ;;  %2946 = vmatpush.bf16.msra.mxu2 %v3208_v28 }
 0x352   :  { %2668 = vrot.lane.b32.xlu2 %v2667_v33, %s3353_s23  ;;  %v1363_v8 = vpop.permute.xlu0 %1362  ;;  %v2267_v11 = vpop.permute.xlu2 %2266 }
 0x353   :  { %1365 = vst.msk [vmem:[%s6167_s8 + $0x2] sm:$0x3] %vm484_vm9, %v1363_v8  ;;  %2932 = vmatpush.bf16.msra.mxu1 %v3201_v2 }
 0x354   :  { %1382 = vst.msk [vmem:[%s6167_s8 + $0x2] sm:$0x3] %vm502_vm10, %v1380_v58 }
 0x355   :  { %v2694_v53 = vld [vmem:[#allocation1 + $0x23] ss:$4 sm:$0xff]  ;;  %2947 = vmatpush.bf16.msra.mxu2 %v3207_v60 }
 0x356   :  { %v2698_v40 = vsel %vm391_vm0, %v2694_v53, %v2695_v7  ;;  %vm910_vm0 = vcmask 845568  }
 0x357   :  { %v2699_v43 = vsel %vm393_vm1, %v2694_v53, %v2698_v40  ;;  %vm928_vm1 = vcmask 911168   ;;  %2933 = vmatpush.bf16.msra.mxu1 %v3200_v14  ;;  %v3216_v40 = vld [vmem:[%s6164_s5 + $0x8] sm:$0xff] }
 0x358   :  { %v2700_v38 = vsel %vm395_vm2, %v2694_v53, %v2699_v43  ;;  %vm946_vm2 = vcmask 976768   ;;  %2985 = vmatpush.bf16.msra.mxu3 %v3216_v40 }
 0x359   :  { %v2701_v32 = vsel %vm397_vm3, %v2694_v53, %v2700_v38  ;;  %vm964_vm3 = vcmask 1042368  }
 0x35a   :  { %v2233_v22 = vpop.permute.xlu1 %2232  ;;  %2685 = vrot.lane.b32.xlu2 %v2684_v16, %s3354_s24  ;;  %v3215_v16 = vld [vmem:[%s6164_s5] sm:$0xff] }
 0x35b   :  { %2235 = vst.msk [vmem:[%s6167_s8 + $0x4] sm:$0x3] %vm484_vm9, %v2233_v22  ;;  %2934 = vmatpush.bf16.msra.mxu1 %v3199_v50  ;;  %v3236_v22 = vld [vmem:[%s6163_s4] ss:$0 sm:$0xff] }
 0x35c   :  { %2986 = vmatpush.bf16.msra.mxu3 %v3215_v16 }
 0x362   :  { %v1397_v30 = vpop.permute.xlu1 %1396  ;;  %2702 = vrot.lane.b32.xlu2 %v2701_v32, %s3355_s29  ;;  %s2999_s29 = sshll.u32 %s3356_s9, 4  ;;  %s3000_s29 = int_to_ptr.vmem [resolvable:$true] %s2999_s29 }
 0x363   :  { %1399 = vst.msk [vmem:[%s6167_s8 + $0x2] sm:$0x3] %vm520_vm11, %v1397_v30 }
 0x364   :  { %v2250_v15 = vpop.permute.xlu0 %2249 }
 0x365   :  { %2252 = vst.msk [vmem:[%s6167_s8 + $0x4] sm:$0x3] %vm502_vm10, %v2250_v15 }
 0x366   :  { %2269 = vst.msk [vmem:[%s6167_s8 + $0x4] sm:$0x3] %vm520_vm11, %v2267_v11 }
 0x36a   :  { %v1720_v37 = vpop.permute.xlu1 %1719 }
 0x36b   :  { %1722 = vst.msk [vmem:[%s6167_s8 + $0x2] sm:$0x3] %vm844_vm12, %v1720_v37 }
 0x36c   :  { %v842_v26 = vpop.permute.xlu0 %841 }
 0x36d   :  { %845 = vst.msk [vmem:[%s6167_s8] sm:$0x3] %vm844_vm12, %v842_v26 }
 0x372   :  { %v1731_v54 = vpop.permute.xlu1 %1730 }
 0x373   :  { %1733 = vst.msk [vmem:[%s6167_s8 + $0x2] sm:$0x3] %vm856_vm13, %v1731_v54 }
 0x374   :  { %v854_v29 = vpop.permute.xlu0 %853 }
 0x375   :  { %857 = vst.msk [vmem:[%s6167_s8] sm:$0x3] %vm856_vm13, %v854_v29 }
 0x37a   :  { %v1748_v45 = vpop.permute.xlu1 %1747 }
 0x37b   :  { %1750 = vst.msk [vmem:[%s6167_s8 + $0x2] sm:$0x3] %vm874_vm14, %v1748_v45 }
 0x37c   :  { %v872_v0 = vpop.permute.xlu0 %871 }
 0x37d   :  { %875 = vst.msk [vmem:[%s6167_s8] sm:$0x3] %vm874_vm14, %v872_v0  ;;  %v3237_v0 = vld [vmem:[%s6165_s6] ss:$0 sm:$0xff] }
 0x382   :  { %v1765_v27 = vpop.permute.xlu1 %1764 }
 0x383   :  { %1767 = vst.msk [vmem:[%s6167_s8 + $0x2] sm:$0x3] %vm892_vm15, %v1765_v27 }
 0x384   :  { %v2590_v23 = vpop.permute.xlu2 %2589  ;;  %v890_v31 = vpop.permute.xlu0 %889 }
 0x385   :  { %2592 = vst.msk [vmem:[%s6167_s8 + $0x4] sm:$0x3] %vm844_vm12, %v2590_v23 }
 0x386   :  { %893 = vst.msk [vmem:[%s6167_s8] sm:$0x3] %vm892_vm15, %v890_v31 }
 0x38a   :  { %v1782_v46 = vpop.permute.xlu1 %1781 }
 0x38b   :  { %1784 = vst.msk [vmem:[%s6167_s8 + $0x2] sm:$0x3] %vm910_vm0, %v1782_v46 }
 0x38c   :  { %v2601_v39 = vpop.permute.xlu2 %2600  ;;  %v908_v41 = vpop.permute.xlu0 %907 }
 0x38d   :  { %2603 = vst.msk [vmem:[%s6167_s8 + $0x4] sm:$0x3] %vm856_vm13, %v2601_v39 }
 0x38e   :  { %911 = vst.msk [vmem:[%s6167_s8] sm:$0x3] %vm910_vm0, %v908_v41 }
 0x392   :  { %v1799_v51 = vpop.permute.xlu1 %1798 }
 0x393   :  { %1801 = vst.msk [vmem:[%s6167_s8 + $0x2] sm:$0x3] %vm928_vm1, %v1799_v51 }
 0x394   :  { %v2618_v63 = vpop.permute.xlu2 %2617  ;;  %v926_v55 = vpop.permute.xlu0 %925 }
 0x395   :  { %2620 = vst.msk [vmem:[%s6167_s8 + $0x4] sm:$0x3] %vm874_vm14, %v2618_v63 }
 0x396   :  { %929 = vst.msk [vmem:[%s6167_s8] sm:$0x3] %vm928_vm1, %v926_v55 }
 0x39a   :  { %v1816_v13 = vpop.permute.xlu1 %1815 }
 0x39b   :  { %1818 = vst.msk [vmem:[%s6167_s8 + $0x2] sm:$0x3] %vm946_vm2, %v1816_v13 }
 0x39c   :  { %v2635_v18 = vpop.permute.xlu2 %2634  ;;  %v944_v36 = vpop.permute.xlu0 %943 }
 0x39d   :  { %2637 = vst.msk [vmem:[%s6167_s8 + $0x4] sm:$0x3] %vm892_vm15, %v2635_v18 }
 0x39e   :  { %947 = vst.msk [vmem:[%s6167_s8] sm:$0x3] %vm946_vm2, %v944_v36 }
 0x3a2   :  { %v1833_v3 = vpop.permute.xlu1 %1832 }
 0x3a3   :  { %1835 = vst.msk [vmem:[%s6167_s8 + $0x2] sm:$0x3] %vm964_vm3, %v1833_v3 }
 0x3a4   :  { %v2652_v34 = vpop.permute.xlu2 %2651  ;;  %v962_v12 = vpop.permute.xlu0 %961 }
 0x3a5   :  { %2654 = vst.msk [vmem:[%s6167_s8 + $0x4] sm:$0x3] %vm910_vm0, %v2652_v34 }
 0x3a6   :  { %965 = vst.msk [vmem:[%s6167_s8] sm:$0x3] %vm964_vm3, %v962_v12 }
 0x3ac   :  { %v2669_v10 = vpop.permute.xlu2 %2668 }
 0x3ad   :  { %2671 = vst.msk [vmem:[%s6167_s8 + $0x4] sm:$0x3] %vm928_vm1, %v2669_v10 }
 0x3b4   :  { %v2686_v56 = vpop.permute.xlu2 %2685 }
 0x3b5   :  { %2688 = vst.msk [vmem:[%s6167_s8 + $0x4] sm:$0x3] %vm946_vm2, %v2686_v56 }
 0x3bc   :  { %v2703_v33 = vpop.permute.xlu2 %2702 }
 0x3bd   :  { %2705 = vst.msk [vmem:[%s6167_s8 + $0x4] sm:$0x3] %vm964_vm3, %v2703_v33 }
 0x3c4   :  { %v2706_v8 = vld [vmem:[%s6167_s8] sm:$0x3f] }
 0x3c5   :  { %2708 = vst [vmem:[#allocation1] ss:$4 sm:$0xff] %v2706_v8 }
 0x3cc   :  { %v2709_v58 = vld.sshfl [vmem:[#allocation1] sm:$0xff pattern:$0x73625140]  ;;  %v2710_v49 = vld.sshfl [vmem:[#allocation1 + $0x8] sm:$0xff pattern:$0x73625140] }
 0x3cd   :  { %v2715_v48 = vpack.c.bf16 %v2709_v58, %v2709_v58  ;;  %v2716_v53 = vpack.c.bf16 %v2710_v49, %v2710_v49  ;;  %v2711_v9 = vld.sshfl [vmem:[#allocation1 + $0x10] sm:$0xff pattern:$0x73625140] }
 0x3ce   :  { %v2717_v7 = vpack.c.bf16 %v2711_v9, %v2711_v9 }
 0x3cf   :  { %2922 = vmatmul.bf16.vlgmr.msra.gmra.mxu0 %v2715_v48  ;;  %2935 = vmatmul.bf16.vlgmr.msra.gmra.mxu1 %v2716_v53 }
 0x3d0   :  { %2948 = vmatmul.bf16.vlgmr.msra.gmra.mxu2 %v2717_v7 }
 0x44c   :  { %v2923_v43 = vpop.f32.mrf.mxu0  ;;  %v2936_v38 = vpop.f32.mrf.mxu1 }
 0x44d   :  { %v2924_v32 = vadd.f32 %v3236_v22, %v2923_v43 }
 0x44f   :  { %v2937_v30 = vadd.f32 %v2936_v38, %v2924_v32 }
 0x453   :  { %v2949_v15 = vpop.f32.mrf.mxu2 }
 0x454   :  { %v2950_v11 = vadd.f32 %v2949_v15, %v2937_v30  ;;  %v2925_v37 = vpop.f32.mrf.mxu0  ;;  %v2938_v26 = vpop.f32.mrf.mxu1 }
 0x456   :  { %v2953_v54 = vmax.f32 %v2950_v11, 0.0 }
 0x458   :  { %v2954_v29 = vpack.c.bf16 %v2953_v54, %v2953_v54 }
 0x45a   :  { %3190 = vmatmul.msk.bf16.vlgmr.msra.gmra.mxu3 %vm2975_vm4, %v2954_v29 }
 0x45b   :  { %v2951_v45 = vpop.f32.mrf.mxu2 }
 0x4dd   :  { %v2988_v27 = vpop.f32.mrf.mxu3 }
 0x4de   :  { %v2989_v23 = vadd.f32 %v3237_v0, %v2988_v27 }
 0x4e0   :  { %2993 = vst.msk [vmem:[#allocation7] sm:$0x3] %vm2992_vm5, %v2989_v23 }
 0x4e1   :  { %3004 = dma.vmem_to_hbm [thread:$0]  %s3000_s29, 32, %s3002_s10, [#allocation3]  }
 0x4e5   :  { %v2990_v31 = vpop.f32.mrf.mxu3 }
 0x4e6   :  { %3336 = dma.done.wait [#allocation3], 32  }
 0x4e7   :  { %3337 = vsyncadd [#allocation3], 4294967264 }
 0x4e8   :  { %3013 = vsyncpa [#allocation3], 1 }
 0x4e9   :  { %3014 = vsyncpa [#allocation4], 1 }
 0x4ea   :  { %3015 = vsyncpa [#allocation6], 1 }

</bundles_post_ra>
